<compile_context>
chip_gen: v6e
topology: v6e:2x2x1
jax: 0.10.0
libtpu: 0.0.40
codegen_flags: <defaults>
</compile_context>

<pallas_src>
import jax
import jax.numpy as jnp
from jax.experimental import pallas as pl
from jax.experimental.pallas import tpu as pltpu

VMEM_SPEC = pl.BlockSpec(memory_space=pltpu.MemorySpace.VMEM)


# ------------------------------ fused kernel -------------------------------

def _disc_fused_kernel(cols_ref, w1_ref, b1_ref, w2_ref, b2_ref,
                       g_ref, be_ref, w3_ref, b3_ref, o_ref, y1pad):
    B = o_ref.shape[0]

    # --- conv1 (1->64, k4 s2 p1): one bf16 MXU pass over the B*256 real rows.
    # Rows are ordered (row-parity p, col-parity q, b, ii, jj); p/q == 1 means
    # even output rows/cols (i = 2*ii), p/q == 0 means odd (i = 2*ii + 1).
    y1 = jnp.dot(cols_ref[...], w1_ref[...], preferred_element_type=jnp.float32)
    y1 = y1 + b1_ref[...]
    y1 = jnp.where(y1 >= 0.0, y1, 0.2 * y1)                 # LeakyReLU, f32
    y1 = y1.astype(jnp.bfloat16).reshape(4, B, 8, 8, 64)    # bf16 MXU operand

    # --- scatter the four parity phases into a zero-padded scratch.  The zero
    # ring realizes conv2's padding; the scratch is re-zeroed every call.
    y1pad[...] = jnp.zeros(y1pad.shape, y1pad.dtype)
    y1pad[3, :, 0:8, 0:8, :] = y1[3]    # even rows, even cols
    y1pad[2, :, 0:8, 1:9, :] = y1[2]    # even rows, odd  cols
    y1pad[1, :, 1:9, 0:8, :] = y1[1]    # odd  rows, even cols
    y1pad[0, :, 1:9, 1:9, :] = y1[0]    # odd  rows, odd  cols

    # --- conv2 (64->128, k4 s2 p1): gather all 16 taps into one lane-dense
    # (B*64, 1024) LHS and run a SINGLE K=1024 bf16 MXU pass.
    taps = []
    for di in range(4):
        for dj in range(4):
            k = (di % 2) * 2 + (dj % 2)          # phase of padded coordinate
            ra, rc = di // 2, dj // 2            # window offset inside phase
            taps.append(
                y1pad[k, :, ra:ra + 8, rc:rc + 8, :].reshape(B * 64, 64))
    lhs = jnp.concatenate(taps, axis=1)                      # (B*64, 1024) bf16
    y2 = jnp.dot(lhs, w2_ref[...], preferred_element_type=jnp.float32)
    y2 = y2 + b2_ref[...]
    y2 = jnp.where(y2 >= 0.0, y2, 0.2 * y2)                  # (B*64, 128) f32

    # --- BatchNorm2d(128), training-mode stats over the B*64 (N,H,W) rows,
    # folded algebraically into the Linear (y3 is never materialized).
    n = y2.shape[0]
    s1 = jnp.sum(y2, axis=0, keepdims=True)
    s2 = jnp.sum(y2 * y2, axis=0, keepdims=True)
    mean = s1 * (1.0 / n)
    var = jnp.maximum(s2 * (1.0 / n) - mean * mean, 0.0)     # clamp cancellation
    scale = g_ref[...] * jax.lax.rsqrt(var + 1e-5)           # (1,128)
    shift = be_ref[...] - mean * scale                       # (1,128)

    # --- Linear(8192 -> 1) + Sigmoid.  w3 was pre-permuted to (h*w, c) order,
    # so no flatten transpose is needed; N=1 stays off the MXU (VPU reduce).
    w_eff = w3_ref[...] * scale                                        # (64,128)
    t = jnp.sum(y2.reshape(B, 64, 128) * w_eff[None, :, :], axis=1)    # (B,128)
    t = t + shift * jnp.sum(w3_ref[...], axis=0, keepdims=True)        # (B,128)
    s = jnp.sum(t, axis=1, keepdims=True)                              # (B,1)
    o_ref[...] = jax.nn.sigmoid(s + b3_ref[...])


# ------------------------------- JAX glue -----------------------------------

def build_conv1_cols(x_nchw):
    """conv1 im2col, phase-ordered rows, only real output positions, bf16.

    Row order is (row-parity p, col-parity q, b, ii, jj) with p/q == 1 meaning
    even output rows/cols, matching the conv2-padded scratch layout used in
    the kernel.  No padding rows, no mask (2.25x fewer rows than before).
    """
    B = x_nchw.shape[0]
    x = x_nchw.reshape(B, 32, 32)                      # C=1: NCHW -> (B,H,W)
    xp = jnp.pad(x, ((0, 0), (1, 1), (1, 1)))          # conv1 pad=1 -> (B,34,34)
    # conv1 patches for the 16x16 output grid, feature order k = kh*4 + kw.
    pat = jnp.stack(
        [jnp.stack([xp[:, ki:ki + 31:2, kj:kj + 31:2] for kj in range(4)],
                   axis=-1) for ki in range(4)], axis=-2)
    pat = pat.reshape(B, 16, 16, 16)

    def phase(pp, qq):                                 # (B,8,8,16)
        return pat[:, (1 - pp)::2, (1 - qq)::2, :]

    cols = jnp.stack([jnp.stack([phase(pp, 0), phase(pp, 1)], axis=0)
                      for pp in (0, 1)], axis=0)       # (2,2,B,8,8,16)
    return cols.reshape(4 * B * 64, 16).astype(jnp.bfloat16)


def spectral_normalize(w, key, n_iter=10, eps=1e-12):
    """W / sigma_max(W.reshape(out, -1)) via deterministic power iteration."""
    w2d = w.reshape(w.shape[0], -1)
    u = jax.random.normal(key, (w2d.shape[0],), jnp.float32)
    u = u / (jnp.linalg.norm(u) + eps)
    v = None
    for _ in range(n_iter):
        v = w2d.T @ u
        v = v / (jnp.linalg.norm(v) + eps)
        u = w2d @ v
        u = u / (jnp.linalg.norm(u) + eps)
    sigma = u @ (w2d @ v)
    return w / sigma


def init_params(key):
    ks = jax.random.split(key, 8)
    # Conv2d(1, 64, 4, 2, 1)
    w1 = 0.05 * jax.random.normal(ks[0], (64, 1, 4, 4), jnp.float32)
    w1 = spectral_normalize(w1, ks[1])
    b1 = 0.05 * jax.random.normal(ks[2], (64,), jnp.float32)
    # Conv2d(64, 128, 4, 2, 1)
    w2 = 0.05 * jax.random.normal(ks[3], (128, 64, 4, 4), jnp.float32)
    w2 = spectral_normalize(w2, ks[4])
    b2 = 0.05 * jax.random.normal(ks[5], (128,), jnp.float32)
    # spectral_norm(BatchNorm2d(128)): sigma of gamma.reshape(128,1) = ||gamma||
    gamma = jnp.ones((128,), jnp.float32)
    gamma = gamma / jnp.linalg.norm(gamma)
    beta = jnp.zeros((128,), jnp.float32)
    # Linear(8192, 1)
    w3 = 0.02 * jax.random.normal(ks[6], (1, 128 * 8 * 8), jnp.float32)
    w3 = spectral_normalize(w3, ks[7])
    b3 = jnp.zeros((1,), jnp.float32)

    return {
        # kernel-layout parameters (MXU operands in bf16)
        "w1t": w1.reshape(64, 16).T.astype(jnp.bfloat16),              # (16,64)
        "b1": b1.reshape(1, 64),
        "w2f": jnp.transpose(w2, (2, 3, 1, 0))                         # (kh,kw,cin,cout)
                  .reshape(1024, 128).astype(jnp.bfloat16),
        "b2": b2.reshape(1, 128),
        "bn_gamma": gamma.reshape(1, 128),
        "bn_beta": beta.reshape(1, 128),
        # Linear weight permuted from (c,h,w) flatten order to (h*w, c)
        "w3p": jnp.transpose(w3.reshape(128, 8, 8), (1, 2, 0)).reshape(64, 128),
        "b3": b3.reshape(1, 1),
        # raw f32 copies for the pure-JAX reference check
        "ref": dict(w1=w1, b1=b1, w2=w2, b2=b2, gamma=gamma, beta=beta,
                    w3=w3, b3=b3),
    }


def discriminator_forward(x_nchw, p):
    B = x_nchw.shape[0]
    cols = build_conv1_cols(x_nchw)                    # (4*B*64, 16) bf16

    flops = int(2 * (256 * B) * 16 * 64                # conv1 MXU
                + 2 * (64 * B) * 1024 * 128            # conv2 MXU
                + 40 * (64 * B) * 128)                 # elementwise/BN/linear
    bytes_accessed = int(256 * B * 16 * 2 + 16 * 64 * 2 + 1024 * 128 * 2
                         + 64 * 128 * 4 + 5 * 128 * 4 + 4 * B)

    return pl.pallas_call(
        _disc_fused_kernel,
        out_shape=jax.ShapeDtypeStruct((B, 1), jnp.float32),
        in_specs=[VMEM_SPEC] * 9,
        out_specs=VMEM_SPEC,
        scratch_shapes=[pltpu.VMEM((4, B, 9, 9, 64), jnp.bfloat16)],
        compiler_params=pltpu.CompilerParams(vmem_limit_bytes=32 * 1024 * 1024),
        cost_estimate=pl.CostEstimate(flops=flops, transcendentals=128 + B,
                                      bytes_accessed=bytes_accessed),
    )(cols, p["w1t"], p["b1"], p["w2f"], p["b2"],
      p["bn_gamma"], p["bn_beta"], p["w3p"], p["b3"])


def discriminator_reference(x_nchw, p):
    """Pure-JAX f32 reference mirroring the PyTorch module (train-mode BN)."""
    r = p["ref"]
    dn = ("NCHW", "OIHW", "NCHW")
    y = jax.lax.conv_general_dilated(x_nchw, r["w1"], (2, 2), [(1, 1), (1, 1)],
                                     dimension_numbers=dn)
    y = y + r["b1"][None, :, None, None]
    y = jnp.where(y >= 0.0, y, 0.2 * y)
    y = jax.lax.conv_general_dilated(y, r["w2"], (2, 2), [(1, 1), (1, 1)],
                                     dimension_numbers=dn)
    y = y + r["b2"][None, :, None, None]
    y = jnp.where(y >= 0.0, y, 0.2 * y)
    mean = jnp.mean(y, axis=(0, 2, 3), keepdims=True)
    var = jnp.mean(jnp.square(y - mean), axis=(0, 2, 3), keepdims=True)
    y = (y - mean) * jax.lax.rsqrt(var + 1e-5)
    y = y * r["gamma"][None, :, None, None] + r["beta"][None, :, None, None]
    logit = y.reshape(y.shape[0], -1) @ r["w3"].T + r["b3"][None, :]
    return jax.nn.sigmoid(logit)


if __name__ == "__main__":
    key = jax.random.PRNGKey(0)
    k_x, k_p = jax.random.split(key)
    B = 2
    x = jax.random.normal(k_x, (B, 1, 32, 32), jnp.float32)  # NCHW like PyTorch
    params = init_params(k_p)

    out = jax.jit(discriminator_forward)(x, params)
    out = jax.block_until_ready(out)

    assert out.shape == (B, 1), out.shape
    assert bool(jnp.all(jnp.isfinite(out)))
    assert bool(jnp.all((out > 0.0) & (out < 1.0)))

    ref = discriminator_reference(x, params)
    max_err = float(jnp.max(jnp.abs(out - ref)))
    assert max_err < 3e-2, (max_err, out, ref)   # bf16 MXU operand tolerance
    print("KERNEL_OK")
</pallas_src>

<mosaic_0001>
module attributes {stable_mosaic.version = 11 : i64} {
  func.func @_disc_fused_kernel(%arg0: memref<512x16xbf16, #tpu.memory_space<vmem>>, %arg1: memref<16x64xbf16, #tpu.memory_space<vmem>>, %arg2: memref<1x64xf32, #tpu.memory_space<vmem>>, %arg3: memref<1024x128xbf16, #tpu.memory_space<vmem>>, %arg4: memref<1x128xf32, #tpu.memory_space<vmem>>, %arg5: memref<1x128xf32, #tpu.memory_space<vmem>>, %arg6: memref<1x128xf32, #tpu.memory_space<vmem>>, %arg7: memref<64x128xf32, #tpu.memory_space<vmem>>, %arg8: memref<1x1xf32, #tpu.memory_space<vmem>>, %arg9: memref<2x1xf32, #tpu.memory_space<vmem>>, %arg10: memref<4x2x9x9x64xbf16, #tpu.memory_space<vmem>>) attributes {dimension_semantics = [], scalar_prefetch = 0 : i64, scratch_operands = 1 : i64, tpu.core_type = #tpu.core_type<tc>} {
    %c0 = arith.constant 0 : index
    %c0_0 = arith.constant 0 : index
    %0 = vector.load %arg0[%c0, %c0_0] : memref<512x16xbf16, #tpu.memory_space<vmem>>, vector<512x16xbf16>
    %c0_1 = arith.constant 0 : index
    %c0_2 = arith.constant 0 : index
    %1 = vector.load %arg1[%c0_1, %c0_2] : memref<16x64xbf16, #tpu.memory_space<vmem>>, vector<16x64xbf16>
    %cst = arith.constant dense<0.000000e+00> : vector<512x64xf32>
    %2 = tpu.matmul %0, %1, %cst {dimension_numbers = #tpu.dot_dimension_numbers<[1], [0], [0], [1], [0, 0, 1, 1], [], []>} : vector<512x16xbf16>, vector<16x64xbf16>, vector<512x64xf32> -> vector<512x64xf32>
    %c0_3 = arith.constant 0 : index
    %c0_4 = arith.constant 0 : index
    %3 = vector.load %arg2[%c0_3, %c0_4] : memref<1x64xf32, #tpu.memory_space<vmem>>, vector<1x64xf32>
    %4 = vector.broadcast %3 : vector<1x64xf32> to vector<512x64xf32>
    %5 = arith.addf %2, %4 : vector<512x64xf32>
    %cst_5 = arith.constant 0.000000e+00 : f32
    %6 = vector.broadcast %cst_5 : f32 to vector<512x64xf32>
    %7 = arith.cmpf oge, %5, %6 : vector<512x64xf32>
    %cst_6 = arith.constant 2.000000e-01 : f32
    %8 = vector.broadcast %cst_6 : f32 to vector<512x64xf32>
    %9 = arith.mulf %8, %5 : vector<512x64xf32>
    %10 = arith.select %7, %5, %9 : vector<512x64xi1>, vector<512x64xf32>
    %11 = arith.truncf %10 : vector<512x64xf32> to vector<512x64xbf16>
    %12 = vector.shape_cast %11 : vector<512x64xbf16> to vector<4x2x8x8x64xbf16>
    %cst_7 = arith.constant 0.000000e+00 : bf16
    %13 = vector.broadcast %cst_7 : bf16 to vector<4x2x9x9x64xbf16>
    %c0_8 = arith.constant 0 : index
    %c0_9 = arith.constant 0 : index
    %c0_10 = arith.constant 0 : index
    %c0_11 = arith.constant 0 : index
    %c0_12 = arith.constant 0 : index
    %14 = vector.load %arg10[%c0_8, %c0_9, %c0_10, %c0_11, %c0_12] : memref<4x2x9x9x64xbf16, #tpu.memory_space<vmem>>, vector<4x2x9x9x64xbf16>
    tpu.vector_store %arg10[%c0_8, %c0_9, %c0_10, %c0_11, %c0_12], %13 {strides = array<i32>} : memref<4x2x9x9x64xbf16, #tpu.memory_space<vmem>>, vector<4x2x9x9x64xbf16>,
    %15 = vector.extract_strided_slice %12 {offsets = [3, 0, 0, 0, 0], sizes = [1, 2, 8, 8, 64], strides = [1, 1, 1, 1, 1]} : vector<4x2x8x8x64xbf16> to vector<1x2x8x8x64xbf16>
    %16 = vector.shape_cast %15 : vector<1x2x8x8x64xbf16> to vector<2x8x8x64xbf16>
    %c3 = arith.constant 3 : index
    %c0_13 = arith.constant 0 : index
    %c0_14 = arith.constant 0 : index
    %c0_15 = arith.constant 0 : index
    %c0_16 = arith.constant 0 : index
    %17 = vector.load %arg10[%c3, %c0_13, %c0_14, %c0_15, %c0_16] : memref<4x2x9x9x64xbf16, #tpu.memory_space<vmem>>, vector<1x2x8x8x64xbf16>
    %18 = vector.shape_cast %17 : vector<1x2x8x8x64xbf16> to vector<2x8x8x64xbf16>
    %19 = vector.shape_cast %16 : vector<2x8x8x64xbf16> to vector<1x2x8x8x64xbf16>
    tpu.vector_store %arg10[%c3, %c0_13, %c0_14, %c0_15, %c0_16], %19 {strides = array<i32>} : memref<4x2x9x9x64xbf16, #tpu.memory_space<vmem>>, vector<1x2x8x8x64xbf16>,
    %20 = vector.extract_strided_slice %12 {offsets = [2, 0, 0, 0, 0], sizes = [1, 2, 8, 8, 64], strides = [1, 1, 1, 1, 1]} : vector<4x2x8x8x64xbf16> to vector<1x2x8x8x64xbf16>
    %21 = vector.shape_cast %20 : vector<1x2x8x8x64xbf16> to vector<2x8x8x64xbf16>
    %c2 = arith.constant 2 : index
    %c0_17 = arith.constant 0 : index
    %c0_18 = arith.constant 0 : index
    %c1 = arith.constant 1 : index
    %c0_19 = arith.constant 0 : index
    %22 = vector.load %arg10[%c2, %c0_17, %c0_18, %c1, %c0_19] : memref<4x2x9x9x64xbf16, #tpu.memory_space<vmem>>, vector<1x2x8x8x64xbf16>
    %23 = vector.shape_cast %22 : vector<1x2x8x8x64xbf16> to vector<2x8x8x64xbf16>
    %24 = vector.shape_cast %21 : vector<2x8x8x64xbf16> to vector<1x2x8x8x64xbf16>
    tpu.vector_store %arg10[%c2, %c0_17, %c0_18, %c1, %c0_19], %24 {strides = array<i32>} : memref<4x2x9x9x64xbf16, #tpu.memory_space<vmem>>, vector<1x2x8x8x64xbf16>,
    %25 = vector.extract_strided_slice %12 {offsets = [1, 0, 0, 0, 0], sizes = [1, 2, 8, 8, 64], strides = [1, 1, 1, 1, 1]} : vector<4x2x8x8x64xbf16> to vector<1x2x8x8x64xbf16>
    %26 = vector.shape_cast %25 : vector<1x2x8x8x64xbf16> to vector<2x8x8x64xbf16>
    %c1_20 = arith.constant 1 : index
    %c0_21 = arith.constant 0 : index
    %c1_22 = arith.constant 1 : index
    %c0_23 = arith.constant 0 : index
    %c0_24 = arith.constant 0 : index
    %27 = vector.load %arg10[%c1_20, %c0_21, %c1_22, %c0_23, %c0_24] : memref<4x2x9x9x64xbf16, #tpu.memory_space<vmem>>, vector<1x2x8x8x64xbf16>
    %28 = vector.shape_cast %27 : vector<1x2x8x8x64xbf16> to vector<2x8x8x64xbf16>
    %29 = vector.shape_cast %26 : vector<2x8x8x64xbf16> to vector<1x2x8x8x64xbf16>
    tpu.vector_store %arg10[%c1_20, %c0_21, %c1_22, %c0_23, %c0_24], %29 {strides = array<i32>} : memref<4x2x9x9x64xbf16, #tpu.memory_space<vmem>>, vector<1x2x8x8x64xbf16>,
    %30 = vector.extract_strided_slice %12 {offsets = [0, 0, 0, 0, 0], sizes = [1, 2, 8, 8, 64], strides = [1, 1, 1, 1, 1]} : vector<4x2x8x8x64xbf16> to vector<1x2x8x8x64xbf16>
    %31 = vector.shape_cast %30 : vector<1x2x8x8x64xbf16> to vector<2x8x8x64xbf16>
    %c0_25 = arith.constant 0 : index
    %c0_26 = arith.constant 0 : index
    %c1_27 = arith.constant 1 : index
    %c1_28 = arith.constant 1 : index
    %c0_29 = arith.constant 0 : index
    %32 = vector.load %arg10[%c0_25, %c0_26, %c1_27, %c1_28, %c0_29] : memref<4x2x9x9x64xbf16, #tpu.memory_space<vmem>>, vector<1x2x8x8x64xbf16>
    %33 = vector.shape_cast %32 : vector<1x2x8x8x64xbf16> to vector<2x8x8x64xbf16>
    %34 = vector.shape_cast %31 : vector<2x8x8x64xbf16> to vector<1x2x8x8x64xbf16>
    tpu.vector_store %arg10[%c0_25, %c0_26, %c1_27, %c1_28, %c0_29], %34 {strides = array<i32>} : memref<4x2x9x9x64xbf16, #tpu.memory_space<vmem>>, vector<1x2x8x8x64xbf16>,
    %c0_30 = arith.constant 0 : index
    %c0_31 = arith.constant 0 : index
    %c0_32 = arith.constant 0 : index
    %c0_33 = arith.constant 0 : index
    %c0_34 = arith.constant 0 : index
    %35 = vector.load %arg10[%c0_30, %c0_31, %c0_32, %c0_33, %c0_34] : memref<4x2x9x9x64xbf16, #tpu.memory_space<vmem>>, vector<1x2x8x8x64xbf16>
    %36 = vector.shape_cast %35 : vector<1x2x8x8x64xbf16> to vector<2x8x8x64xbf16>
    %37 = vector.shape_cast %36 : vector<2x8x8x64xbf16> to vector<128x64xbf16>
    %c1_35 = arith.constant 1 : index
    %c0_36 = arith.constant 0 : index
    %c0_37 = arith.constant 0 : index
    %c0_38 = arith.constant 0 : index
    %c0_39 = arith.constant 0 : index
    %38 = vector.load %arg10[%c1_35, %c0_36, %c0_37, %c0_38, %c0_39] : memref<4x2x9x9x64xbf16, #tpu.memory_space<vmem>>, vector<1x2x8x8x64xbf16>
    %39 = vector.shape_cast %38 : vector<1x2x8x8x64xbf16> to vector<2x8x8x64xbf16>
    %40 = vector.shape_cast %39 : vector<2x8x8x64xbf16> to vector<128x64xbf16>
    %c0_40 = arith.constant 0 : index
    %c0_41 = arith.constant 0 : index
    %c0_42 = arith.constant 0 : index
    %c1_43 = arith.constant 1 : index
    %c0_44 = arith.constant 0 : index
    %41 = vector.load %arg10[%c0_40, %c0_41, %c0_42, %c1_43, %c0_44] : memref<4x2x9x9x64xbf16, #tpu.memory_space<vmem>>, vector<1x2x8x8x64xbf16>
    %42 = vector.shape_cast %41 : vector<1x2x8x8x64xbf16> to vector<2x8x8x64xbf16>
    %43 = vector.shape_cast %42 : vector<2x8x8x64xbf16> to vector<128x64xbf16>
    %c1_45 = arith.constant 1 : index
    %c0_46 = arith.constant 0 : index
    %c0_47 = arith.constant 0 : index
    %c1_48 = arith.constant 1 : index
    %c0_49 = arith.constant 0 : index
    %44 = vector.load %arg10[%c1_45, %c0_46, %c0_47, %c1_48, %c0_49] : memref<4x2x9x9x64xbf16, #tpu.memory_space<vmem>>, vector<1x2x8x8x64xbf16>
    %45 = vector.shape_cast %44 : vector<1x2x8x8x64xbf16> to vector<2x8x8x64xbf16>
    %46 = vector.shape_cast %45 : vector<2x8x8x64xbf16> to vector<128x64xbf16>
    %c2_50 = arith.constant 2 : index
    %c0_51 = arith.constant 0 : index
    %c0_52 = arith.constant 0 : index
    %c0_53 = arith.constant 0 : index
    %c0_54 = arith.constant 0 : index
    %47 = vector.load %arg10[%c2_50, %c0_51, %c0_52, %c0_53, %c0_54] : memref<4x2x9x9x64xbf16, #tpu.memory_space<vmem>>, vector<1x2x8x8x64xbf16>
    %48 = vector.shape_cast %47 : vector<1x2x8x8x64xbf16> to vector<2x8x8x64xbf16>
    %49 = vector.shape_cast %48 : vector<2x8x8x64xbf16> to vector<128x64xbf16>
    %c3_55 = arith.constant 3 : index
    %c0_56 = arith.constant 0 : index
    %c0_57 = arith.constant 0 : index
    %c0_58 = arith.constant 0 : index
    %c0_59 = arith.constant 0 : index
    %50 = vector.load %arg10[%c3_55, %c0_56, %c0_57, %c0_58, %c0_59] : memref<4x2x9x9x64xbf16, #tpu.memory_space<vmem>>, vector<1x2x8x8x64xbf16>
    %51 = vector.shape_cast %50 : vector<1x2x8x8x64xbf16> to vector<2x8x8x64xbf16>
    %52 = vector.shape_cast %51 : vector<2x8x8x64xbf16> to vector<128x64xbf16>
    %c2_60 = arith.constant 2 : index
    %c0_61 = arith.constant 0 : index
    %c0_62 = arith.constant 0 : index
    %c1_63 = arith.constant 1 : index
    %c0_64 = arith.constant 0 : index
    %53 = vector.load %arg10[%c2_60, %c0_61, %c0_62, %c1_63, %c0_64] : memref<4x2x9x9x64xbf16, #tpu.memory_space<vmem>>, vector<1x2x8x8x64xbf16>
    %54 = vector.shape_cast %53 : vector<1x2x8x8x64xbf16> to vector<2x8x8x64xbf16>
    %55 = vector.shape_cast %54 : vector<2x8x8x64xbf16> to vector<128x64xbf16>
    %c3_65 = arith.constant 3 : index
    %c0_66 = arith.constant 0 : index
    %c0_67 = arith.constant 0 : index
    %c1_68 = arith.constant 1 : index
    %c0_69 = arith.constant 0 : index
    %56 = vector.load %arg10[%c3_65, %c0_66, %c0_67, %c1_68, %c0_69] : memref<4x2x9x9x64xbf16, #tpu.memory_space<vmem>>, vector<1x2x8x8x64xbf16>
    %57 = vector.shape_cast %56 : vector<1x2x8x8x64xbf16> to vector<2x8x8x64xbf16>
    %58 = vector.shape_cast %57 : vector<2x8x8x64xbf16> to vector<128x64xbf16>
    %c0_70 = arith.constant 0 : index
    %c0_71 = arith.constant 0 : index
    %c1_72 = arith.constant 1 : index
    %c0_73 = arith.constant 0 : index
    %c0_74 = arith.constant 0 : index
    %59 = vector.load %arg10[%c0_70, %c0_71, %c1_72, %c0_73, %c0_74] : memref<4x2x9x9x64xbf16, #tpu.memory_space<vmem>>, vector<1x2x8x8x64xbf16>
    %60 = vector.shape_cast %59 : vector<1x2x8x8x64xbf16> to vector<2x8x8x64xbf16>
    %61 = vector.shape_cast %60 : vector<2x8x8x64xbf16> to vector<128x64xbf16>
    %c1_75 = arith.constant 1 : index
    %c0_76 = arith.constant 0 : index
    %c1_77 = arith.constant 1 : index
    %c0_78 = arith.constant 0 : index
    %c0_79 = arith.constant 0 : index
    %62 = vector.load %arg10[%c1_75, %c0_76, %c1_77, %c0_78, %c0_79] : memref<4x2x9x9x64xbf16, #tpu.memory_space<vmem>>, vector<1x2x8x8x64xbf16>
    %63 = vector.shape_cast %62 : vector<1x2x8x8x64xbf16> to vector<2x8x8x64xbf16>
    %64 = vector.shape_cast %63 : vector<2x8x8x64xbf16> to vector<128x64xbf16>
    %c0_80 = arith.constant 0 : index
    %c0_81 = arith.constant 0 : index
    %c1_82 = arith.constant 1 : index
    %c1_83 = arith.constant 1 : index
    %c0_84 = arith.constant 0 : index
    %65 = vector.load %arg10[%c0_80, %c0_81, %c1_82, %c1_83, %c0_84] : memref<4x2x9x9x64xbf16, #tpu.memory_space<vmem>>, vector<1x2x8x8x64xbf16>
    %66 = vector.shape_cast %65 : vector<1x2x8x8x64xbf16> to vector<2x8x8x64xbf16>
    %67 = vector.shape_cast %66 : vector<2x8x8x64xbf16> to vector<128x64xbf16>
    %c1_85 = arith.constant 1 : index
    %c0_86 = arith.constant 0 : index
    %c1_87 = arith.constant 1 : index
    %c1_88 = arith.constant 1 : index
    %c0_89 = arith.constant 0 : index
    %68 = vector.load %arg10[%c1_85, %c0_86, %c1_87, %c1_88, %c0_89] : memref<4x2x9x9x64xbf16, #tpu.memory_space<vmem>>, vector<1x2x8x8x64xbf16>
    %69 = vector.shape_cast %68 : vector<1x2x8x8x64xbf16> to vector<2x8x8x64xbf16>
    %70 = vector.shape_cast %69 : vector<2x8x8x64xbf16> to vector<128x64xbf16>
    %c2_90 = arith.constant 2 : index
    %c0_91 = arith.constant 0 : index
    %c1_92 = arith.constant 1 : index
    %c0_93 = arith.constant 0 : index
    %c0_94 = arith.constant 0 : index
    %71 = vector.load %arg10[%c2_90, %c0_91, %c1_92, %c0_93, %c0_94] : memref<4x2x9x9x64xbf16, #tpu.memory_space<vmem>>, vector<1x2x8x8x64xbf16>
    %72 = vector.shape_cast %71 : vector<1x2x8x8x64xbf16> to vector<2x8x8x64xbf16>
    %73 = vector.shape_cast %72 : vector<2x8x8x64xbf16> to vector<128x64xbf16>
    %c3_95 = arith.constant 3 : index
    %c0_96 = arith.constant 0 : index
    %c1_97 = arith.constant 1 : index
    %c0_98 = arith.constant 0 : index
    %c0_99 = arith.constant 0 : index
    %74 = vector.load %arg10[%c3_95, %c0_96, %c1_97, %c0_98, %c0_99] : memref<4x2x9x9x64xbf16, #tpu.memory_space<vmem>>, vector<1x2x8x8x64xbf16>
    %75 = vector.shape_cast %74 : vector<1x2x8x8x64xbf16> to vector<2x8x8x64xbf16>
    %76 = vector.shape_cast %75 : vector<2x8x8x64xbf16> to vector<128x64xbf16>
    %c2_100 = arith.constant 2 : index
    %c0_101 = arith.constant 0 : index
    %c1_102 = arith.constant 1 : index
    %c1_103 = arith.constant 1 : index
    %c0_104 = arith.constant 0 : index
    %77 = vector.load %arg10[%c2_100, %c0_101, %c1_102, %c1_103, %c0_104] : memref<4x2x9x9x64xbf16, #tpu.memory_space<vmem>>, vector<1x2x8x8x64xbf16>
    %78 = vector.shape_cast %77 : vector<1x2x8x8x64xbf16> to vector<2x8x8x64xbf16>
    %79 = vector.shape_cast %78 : vector<2x8x8x64xbf16> to vector<128x64xbf16>
    %c3_105 = arith.constant 3 : index
    %c0_106 = arith.constant 0 : index
    %c1_107 = arith.constant 1 : index
    %c1_108 = arith.constant 1 : index
    %c0_109 = arith.constant 0 : index
    %80 = vector.load %arg10[%c3_105, %c0_106, %c1_107, %c1_108, %c0_109] : memref<4x2x9x9x64xbf16, #tpu.memory_space<vmem>>, vector<1x2x8x8x64xbf16>
    %81 = vector.shape_cast %80 : vector<1x2x8x8x64xbf16> to vector<2x8x8x64xbf16>
    %82 = vector.shape_cast %81 : vector<2x8x8x64xbf16> to vector<128x64xbf16>
    %83 = tpu.concatenate %37, %40, %43, %46, %49, %52, %55, %58, %61, %64, %67, %70, %73, %76, %79, %82 in 1 : vector<128x64xbf16>, vector<128x64xbf16>, vector<128x64xbf16>, vector<128x64xbf16>, vector<128x64xbf16>, vector<128x64xbf16>, vector<128x64xbf16>, vector<128x64xbf16>, vector<128x64xbf16>, vector<128x64xbf16>, vector<128x64xbf16>, vector<128x64xbf16>, vector<128x64xbf16>, vector<128x64xbf16>, vector<128x64xbf16>, vector<128x64xbf16> -> vector<128x1024xbf16>
    %c0_110 = arith.constant 0 : index
    %c0_111 = arith.constant 0 : index
    %84 = vector.load %arg3[%c0_110, %c0_111] : memref<1024x128xbf16, #tpu.memory_space<vmem>>, vector<1024x128xbf16>
    %cst_112 = arith.constant dense<0.000000e+00> : vector<128x128xf32>
    %85 = tpu.matmul %83, %84, %cst_112 {dimension_numbers = #tpu.dot_dimension_numbers<[1], [0], [0], [1], [0, 0, 1, 1], [], []>} : vector<128x1024xbf16>, vector<1024x128xbf16>, vector<128x128xf32> -> vector<128x128xf32>
    %c0_113 = arith.constant 0 : index
    %c0_114 = arith.constant 0 : index
    %86 = vector.load %arg4[%c0_113, %c0_114] : memref<1x128xf32, #tpu.memory_space<vmem>>, vector<1x128xf32>
    %87 = vector.broadcast %86 : vector<1x128xf32> to vector<128x128xf32>
    %88 = arith.addf %85, %87 : vector<128x128xf32>
    %cst_115 = arith.constant 0.000000e+00 : f32
    %89 = vector.broadcast %cst_115 : f32 to vector<128x128xf32>
    %90 = arith.cmpf oge, %88, %89 : vector<128x128xf32>
    %cst_116 = arith.constant 2.000000e-01 : f32
    %91 = vector.broadcast %cst_116 : f32 to vector<128x128xf32>
    %92 = arith.mulf %91, %88 : vector<128x128xf32>
    %93 = arith.select %90, %88, %92 : vector<128x128xi1>, vector<128x128xf32>
    %cst_117 = arith.constant dense<0.000000e+00> : vector<128xf32>
    %94 = vector.multi_reduction <add>, %93, %cst_117 [0] : vector<128x128xf32> to vector<128xf32>
    %95 = vector.shape_cast %94 : vector<128xf32> to vector<1x128xf32>
    %96 = arith.mulf %93, %93 : vector<128x128xf32>
    %cst_118 = arith.constant dense<0.000000e+00> : vector<128xf32>
    %97 = vector.multi_reduction <add>, %96, %cst_118 [0] : vector<128x128xf32> to vector<128xf32>
    %98 = vector.shape_cast %97 : vector<128xf32> to vector<1x128xf32>
    %cst_119 = arith.constant 7.812500e-03 : f32
    %99 = vector.broadcast %cst_119 : f32 to vector<1x128xf32>
    %100 = arith.mulf %95, %99 : vector<1x128xf32>
    %cst_120 = arith.constant 7.812500e-03 : f32
    %101 = vector.broadcast %cst_120 : f32 to vector<1x128xf32>
    %102 = arith.mulf %98, %101 : vector<1x128xf32>
    %103 = arith.mulf %100, %100 : vector<1x128xf32>
    %104 = arith.subf %102, %103 : vector<1x128xf32>
    %cst_121 = arith.constant 0.000000e+00 : f32
    %105 = vector.broadcast %cst_121 : f32 to vector<1x128xf32>
    %106 = arith.maximumf %104, %105 : vector<1x128xf32>
    %c0_122 = arith.constant 0 : index
    %c0_123 = arith.constant 0 : index
    %107 = vector.load %arg5[%c0_122, %c0_123] : memref<1x128xf32, #tpu.memory_space<vmem>>, vector<1x128xf32>
    %cst_124 = arith.constant 9.99999974E-6 : f32
    %108 = vector.broadcast %cst_124 : f32 to vector<1x128xf32>
    %109 = arith.addf %106, %108 : vector<1x128xf32>
    %110 = math.rsqrt %109 : vector<1x128xf32>
    %111 = arith.mulf %107, %110 : vector<1x128xf32>
    %c0_125 = arith.constant 0 : index
    %c0_126 = arith.constant 0 : index
    %112 = vector.load %arg6[%c0_125, %c0_126] : memref<1x128xf32, #tpu.memory_space<vmem>>, vector<1x128xf32>
    %113 = arith.mulf %100, %111 : vector<1x128xf32>
    %114 = arith.subf %112, %113 : vector<1x128xf32>
    %c0_127 = arith.constant 0 : index
    %c0_128 = arith.constant 0 : index
    %115 = vector.load %arg7[%c0_127, %c0_128] : memref<64x128xf32, #tpu.memory_space<vmem>>, vector<64x128xf32>
    %116 = vector.broadcast %111 : vector<1x128xf32> to vector<64x128xf32>
    %117 = arith.mulf %115, %116 : vector<64x128xf32>
    %118 = vector.shape_cast %93 : vector<128x128xf32> to vector<2x64x128xf32>
    %119 = vector.shape_cast %117 : vector<64x128xf32> to vector<1x64x128xf32>
    %120 = vector.broadcast %119 : vector<1x64x128xf32> to vector<2x64x128xf32>
    %121 = arith.mulf %118, %120 : vector<2x64x128xf32>
    %cst_129 = arith.constant dense<0.000000e+00> : vector<2x128xf32>
    %122 = vector.multi_reduction <add>, %121, %cst_129 [1] : vector<2x64x128xf32> to vector<2x128xf32>
    %c0_130 = arith.constant 0 : index
    %c0_131 = arith.constant 0 : index
    %123 = vector.load %arg7[%c0_130, %c0_131] : memref<64x128xf32, #tpu.memory_space<vmem>>, vector<64x128xf32>
    %cst_132 = arith.constant dense<0.000000e+00> : vector<128xf32>
    %124 = vector.multi_reduction <add>, %123, %cst_132 [0] : vector<64x128xf32> to vector<128xf32>
    %125 = vector.shape_cast %124 : vector<128xf32> to vector<1x128xf32>
    %126 = arith.mulf %114, %125 : vector<1x128xf32>
    %127 = vector.broadcast %126 : vector<1x128xf32> to vector<2x128xf32>
    %128 = arith.addf %122, %127 : vector<2x128xf32>
    %cst_133 = arith.constant dense<0.000000e+00> : vector<2xf32>
    %129 = vector.multi_reduction <add>, %128, %cst_133 [1] : vector<2x128xf32> to vector<2xf32>
    %130 = vector.shape_cast %129 : vector<2xf32> to vector<2x1xf32>
    %c0_134 = arith.constant 0 : index
    %c0_135 = arith.constant 0 : index
    %131 = vector.load %arg8[%c0_134, %c0_135] : memref<1x1xf32, #tpu.memory_space<vmem>>, vector<1x1xf32>
    %132 = vector.broadcast %131 : vector<1x1xf32> to vector<2x1xf32>
    %133 = arith.addf %130, %132 : vector<2x1xf32>
    %134 = arith.negf %133 : vector<2x1xf32>
    %135 = math.exp %134 : vector<2x1xf32>
    %cst_136 = arith.constant 1.000000e+00 : f32
    %136 = vector.broadcast %cst_136 : f32 to vector<2x1xf32>
    %137 = arith.addf %136, %135 : vector<2x1xf32>
    %138 = arith.divf %136, %137 : vector<2x1xf32>
    %c0_137 = arith.constant 0 : index
    %c0_138 = arith.constant 0 : index
    %139 = vector.load %arg9[%c0_137, %c0_138] : memref<2x1xf32, #tpu.memory_space<vmem>>, vector<2x1xf32>
    tpu.vector_store %arg9[%c0_137, %c0_138], %138 {strides = array<i32>} : memref<2x1xf32, #tpu.memory_space<vmem>>, vector<2x1xf32>,
    return
  }
}

</mosaic_0001>

<bundles_post_ra>
// kernel: discriminator_forward.1
= control target key start
LH: loop header
LB: loop body
LE: loop exit
PB: predicated region body
PF: predicated region fallthrough
CT: control target
= control target key end

     0   :  { %vm274_vm0 = vcmask 130048   ;;  %vm1078_vm1 = vcmask 516096   ;;  %vm1079_vm2 = vsmask.f32 256  ;;  %v1093_v22 = vld [vmem:[#allocation2 + $0x1c] sm:$0x1]  ;;  %s9598_s1 = inlined_call_operand.vmem [shape: bf16[16,64], index: 1, kind: input, shape index: {}]   ;;  %s9599_s0 = inlined_call_operand.vmem [shape: bf16[512,16], index: 0, kind: input, shape index: {}]   ;;  %s9600_s2 = inlined_call_operand.vmem [shape: f32[1,64], index: 2, kind: input, shape index: {}]   ;;  %s9601_s3 = inlined_call_operand.vmem [shape: bf16[1024,128], index: 3, kind: input, shape index: {}]   ;;  %s9602_s4 = inlined_call_operand.vmem [shape: f32[1,128], index: 4, kind: input, shape index: {}]   ;;  %s9603_s8 = inlined_call_operand.<no memory space> [shape: f32[1,1], index: 8, kind: input, shape index: {}]   ;;  %s9604_s7 = inlined_call_operand.vmem [shape: f32[64,128], index: 7, kind: input, shape index: {}]   ;;  %s9605_s5 = inlined_call_operand.vmem [shape: f32[1,128], index: 5, kind: input, shape index: {}]   ;;  %s9606_s6 = inlined_call_operand.vmem [shape: f32[1,128], index: 6, kind: input, shape index: {}]   ;;  %s9607_s9 = inlined_call_operand.vmem [shape: f32[2,1], index: 9, kind: output, shape index: {}]  }
   0x1   :  { %v6773_v0 = vld [vmem:[%s9598_s1] sm:$0xff]   ;;  %v6775_v2 = vld [vmem:[%s9599_s0 + $0x8] sm:$0xff]   ;;  %v6776_v3 = vld [vmem:[%s9599_s0 + $0x10] sm:$0xff]   ;;  %vm1076_vm4 = vcmask 519168   ;;  %v6943_v25 = vmov 0   ;;  %s6944_s14 = smov 64  }
   0x2   :  { %v6774_v1 = vld [vmem:[%s9599_s0] sm:$0xff]   ;;  %6689 = vmatprep.subr.bf16.mxu0 %v6773_v0  ;;  %v6777_v4 = vld [vmem:[%s9599_s0 + $0x18] sm:$0xff]   ;;  %v6779_v6 = vld [vmem:[%s9599_s0 + $0x28] sm:$0xff]   ;;  %1092 = vst.msk [vmem:[#allocation2 + $0x18] sm:$0xf] %vm1076_vm4, %v6943_v25 }
   0x3   :  { %6690 = vmatpush3.bf16.msra.mxu0 %v6773_v0  ;;  %6691 = vmatprep.mubr.msk.bf16.mxu0 %vm274_vm0, %v6774_v1  ;;  %v6778_v5 = vld [vmem:[%s9599_s0 + $0x20] sm:$0xff]   ;;  %v6780_v7 = vld [vmem:[%s9599_s0 + $0x30] sm:$0xff]   ;;  %v6781_v8 = vld [vmem:[%s9599_s0 + $0x38] sm:$0xff]   ;;  %1077 = vst.msk [vmem:[#allocation2] sm:$0xf] %vm1076_vm4, %v6943_v25 }
   0x4   :  { %v6782_v9 = vld [vmem:[%s9599_s0 + $0x40] sm:$0xff]   ;;  %v6783_v10 = vld [vmem:[%s9599_s0 + $0x48] sm:$0xff]   ;;  %v6784_v11 = vld [vmem:[%s9599_s0 + $0x50] sm:$0xff]   ;;  %1084 = vst.msk [vmem:[#allocation2 + $0x8] sm:$0xf] %vm1076_vm4, %v6943_v25 }
   0x5   :  { %v6785_v12 = vld [vmem:[%s9599_s0 + $0x58] sm:$0xff]   ;;  %v6786_v13 = vld [vmem:[%s9599_s0 + $0x60] sm:$0xff]   ;;  %v6787_v14 = vld [vmem:[%s9599_s0 + $0x68] sm:$0xff]   ;;  %1088 = vst.msk [vmem:[#allocation2 + $0x10] sm:$0xf] %vm1076_vm4, %v6943_v25 }
   0x6   :  { %6692 = vmatmul.mubr.msk.bf16.vlgmr.msra.gmra.mxu0 %vm274_vm0, %v6775_v2  ;;  %v6788_v15 = vld [vmem:[%s9599_s0 + $0x70] sm:$0xff]   ;;  %v6789_v16 = vld [vmem:[%s9599_s0 + $0x78] sm:$0xff]   ;;  %v6790_v17 = vld [vmem:[%s9599_s0 + $0x80] sm:$0xff]   ;;  %1096 = vst.msk [vmem:[#allocation2 + $0x20] sm:$0xf] %vm1076_vm4, %v6943_v25 }
   0x7   :  { %6695 = vmatprep.mubr.msk.bf16.mxu0 %vm274_vm0, %v6776_v3  ;;  %v6791_v18 = vld [vmem:[%s9599_s0 + $0x88] sm:$0xff]   ;;  %v6792_v19 = vld [vmem:[%s9599_s0 + $0x90] sm:$0xff]   ;;  %v7077_v20 = vld [vmem:[%s9599_s0 + $0x98] sm:$0xff]   ;;  %1100 = vst.msk [vmem:[#allocation2 + $0x28] sm:$0xf] %vm1076_vm4, %v6943_v25 }
   0x8   :  { %vm7079_vm3 = vmand %vm1078_vm1, %vm1079_vm2  ;;  %v7086_v23 = vld [vmem:[%s9599_s0 + $0xa0] sm:$0xff]   ;;  %1104 = vst.msk [vmem:[#allocation2 + $0x30] sm:$0xf] %vm1076_vm4, %v6943_v25  ;;  %v1085_v26 = vld [vmem:[#allocation2 + $0xc] sm:$0x1] }
   0x9   :  { %v1094_v24 = vsel %vm7079_vm3, 0, %v1093_v22  ;;  %1108 = vst.msk [vmem:[#allocation2 + $0x38] sm:$0xf] %vm1076_vm4, %v6943_v25  ;;  %1112 = vst.msk [vmem:[#allocation2 + $0x40] sm:$0xf] %vm1076_vm4, %v6943_v25  ;;  %v1086_v27 = vsel %vm7079_vm3, 0, %v1085_v26 }
   0xa   :  { %1095 = vst [vmem:[#allocation2 + $0x1c] sm:$0x1] %v1094_v24  ;;  %1116 = vst.msk [vmem:[#allocation2 + $0x48] sm:$0xf] %vm1076_vm4, %v6943_v25  ;;  %v1097_v28 = vld [vmem:[#allocation2 + $0x24] sm:$0x1] }
   0xb   :  { %1120 = vst.msk [vmem:[#allocation2 + $0x50] sm:$0xf] %vm1076_vm4, %v6943_v25  ;;  %1124 = vst.msk [vmem:[#allocation2 + $0x58] sm:$0xf] %vm1076_vm4, %v6943_v25  ;;  %v1098_v29 = vsel %vm7079_vm3, 0, %v1097_v28  ;;  %v6795_v31 = vld [vmem:[%s9599_s0 + $0xa8] sm:$0xff]  }
   0xc   :  { %1128 = vst.msk [vmem:[#allocation2 + $0x60] sm:$0xf] %vm1076_vm4, %v6943_v25  ;;  %1132 = vst.msk [vmem:[#allocation2 + $0x68] sm:$0xf] %vm1076_vm4, %v6943_v25  ;;  %v1089_v30 = vld [vmem:[#allocation2 + $0x14] sm:$0x1] }
   0xd   :  { %1136 = vst.msk [vmem:[#allocation2 + $0x70] sm:$0xf] %vm1076_vm4, %v6943_v25  ;;  %1140 = vst.msk [vmem:[#allocation2 + $0x78] sm:$0xf] %vm1076_vm4, %v6943_v25  ;;  %v1090_v32 = vsel %vm7079_vm3, 0, %v1089_v30  ;;  %v6796_v33 = vld [vmem:[%s9599_s0 + $0xb0] sm:$0xff]  }
   0xe   :  { %6696 = vmatmul.mubr.msk.bf16.gmra.mxu0 %vm274_vm0, %v6777_v4  ;;  %1144 = vst.msk [vmem:[#allocation2 + $0x80] sm:$0xf] %vm1076_vm4, %v6943_v25  ;;  %1148 = vst.msk [vmem:[#allocation2 + $0x88] sm:$0xf] %vm1076_vm4, %v6943_v25  ;;  %v1109_v34 = vld [vmem:[#allocation2 + $0x3c] sm:$0x1] }
   0xf   :  { %6699 = vmatprep.mubr.msk.bf16.mxu0 %vm274_vm0, %v6778_v5  ;;  %1152 = vst.msk [vmem:[#allocation2 + $0x90] sm:$0xf] %vm1076_vm4, %v6943_v25  ;;  %1156 = vst.msk [vmem:[#allocation2 + $0x98] sm:$0xf] %vm1076_vm4, %v6943_v25  ;;  %v1110_v35 = vsel %vm7079_vm3, 0, %v1109_v34  ;;  %v6797_v38 = vld [vmem:[%s9599_s0 + $0xb8] sm:$0xff]  }
  0x10   :  { %1160 = vst.msk [vmem:[#allocation2 + $0xa0] sm:$0xf] %vm1076_vm4, %v6943_v25  ;;  %1164 = vst.msk [vmem:[#allocation2 + $0xa8] sm:$0xf] %vm1076_vm4, %v6943_v25  ;;  %v1101_v36 = vld [vmem:[#allocation2 + $0x2c] sm:$0x1] }
  0x11   :  { %1168 = vst.msk [vmem:[#allocation2 + $0xb0] sm:$0xf] %vm1076_vm4, %v6943_v25  ;;  %1172 = vst.msk [vmem:[#allocation2 + $0xb8] sm:$0xf] %vm1076_vm4, %v6943_v25  ;;  %v1102_v37 = vsel %vm7079_vm3, 0, %v1101_v36  ;;  %v6798_v40 = vld [vmem:[%s9599_s0 + $0xc0] sm:$0xff]  }
  0x12   :  { %1176 = vst.msk [vmem:[#allocation2 + $0xc0] sm:$0xf] %vm1076_vm4, %v6943_v25  ;;  %1180 = vst.msk [vmem:[#allocation2 + $0xc8] sm:$0xf] %vm1076_vm4, %v6943_v25  ;;  %v1113_v39 = vld [vmem:[#allocation2 + $0x44] sm:$0x1] }
  0x13   :  { %1184 = vst.msk [vmem:[#allocation2 + $0xd0] sm:$0xf] %vm1076_vm4, %v6943_v25  ;;  %1188 = vst.msk [vmem:[#allocation2 + $0xd8] sm:$0xf] %vm1076_vm4, %v6943_v25  ;;  %v1114_v41 = vsel %vm7079_vm3, 0, %v1113_v39  ;;  %v6799_v45 = vld [vmem:[%s9599_s0 + $0xc8] sm:$0xff]  }
  0x14   :  { %1192 = vst.msk [vmem:[#allocation2 + $0xe0] sm:$0xf] %vm1076_vm4, %v6943_v25  ;;  %1196 = vst.msk [vmem:[#allocation2 + $0xe8] sm:$0xf] %vm1076_vm4, %v6943_v25  ;;  %v1105_v42 = vld [vmem:[#allocation2 + $0x34] sm:$0x1] }
  0x15   :  { %1200 = vst.msk [vmem:[#allocation2 + $0xf0] sm:$0xf] %vm1076_vm4, %v6943_v25  ;;  %1204 = vst.msk [vmem:[#allocation2 + $0xf8] sm:$0xf] %vm1076_vm4, %v6943_v25  ;;  %v1106_v43 = vsel %vm7079_vm3, 0, %v1105_v42  ;;  %v6800_v47 = vld [vmem:[%s9599_s0 + $0xd0] sm:$0xff]  }
  0x16   :  { %6700 = vmatmul.mubr.msk.bf16.gmra.mxu0 %vm274_vm0, %v6779_v6  ;;  %1208 = vst.msk [vmem:[#allocation2 + $0x100] sm:$0xf] %vm1076_vm4, %v6943_v25  ;;  %1212 = vst.msk [vmem:[#allocation2 + $0x108] sm:$0xf] %vm1076_vm4, %v6943_v25  ;;  %v1129_v44 = vld [vmem:[#allocation2 + $0x64] sm:$0x1] }
  0x17   :  { %6703 = vmatprep.mubr.msk.bf16.mxu0 %vm274_vm0, %v6780_v7  ;;  %1216 = vst.msk [vmem:[#allocation2 + $0x110] sm:$0xf] %vm1076_vm4, %v6943_v25  ;;  %1220 = vst.msk [vmem:[#allocation2 + $0x118] sm:$0xf] %vm1076_vm4, %v6943_v25  ;;  %v1130_v46 = vsel %vm7079_vm3, 0, %v1129_v44  ;;  %v6801_v53 = vld [vmem:[%s9599_s0 + $0xd8] sm:$0xff]  }
  0x18   :  { %1224 = vst.msk [vmem:[#allocation2 + $0x120] sm:$0xf] %vm1076_vm4, %v6943_v25  ;;  %1228 = vst.msk [vmem:[#allocation2 + $0x128] sm:$0xf] %vm1076_vm4, %v6943_v25  ;;  %v1121_v48 = vld [vmem:[#allocation2 + $0x54] sm:$0x1] }
  0x19   :  { %1232 = vst.msk [vmem:[#allocation2 + $0x130] sm:$0xf] %vm1076_vm4, %v6943_v25  ;;  %1236 = vst.msk [vmem:[#allocation2 + $0x138] sm:$0xf] %vm1076_vm4, %v6943_v25  ;;  %v1122_v49 = vsel %vm7079_vm3, 0, %v1121_v48  ;;  %v6802_v55 = vld [vmem:[%s9599_s0 + $0xe0] sm:$0xff]  }
  0x1a   :  { %1240 = vst.msk [vmem:[#allocation2 + $0x140] sm:$0xf] %vm1076_vm4, %v6943_v25  ;;  %1244 = vst.msk [vmem:[#allocation2 + $0x148] sm:$0xf] %vm1076_vm4, %v6943_v25  ;;  %v1133_v50 = vld [vmem:[#allocation2 + $0x6c] sm:$0x1] }
  0x1b   :  { %1248 = vst.msk [vmem:[#allocation2 + $0x150] sm:$0xf] %vm1076_vm4, %v6943_v25  ;;  %1252 = vst.msk [vmem:[#allocation2 + $0x158] sm:$0xf] %vm1076_vm4, %v6943_v25  ;;  %v1134_v51 = vsel %vm7079_vm3, 0, %v1133_v50  ;;  %v6803_v60 = vld [vmem:[%s9599_s0 + $0xe8] sm:$0xff]  }
  0x1c   :  { %1256 = vst.msk [vmem:[#allocation2 + $0x160] sm:$0xf] %vm1076_vm4, %v6943_v25  ;;  %1260 = vst.msk [vmem:[#allocation2 + $0x168] sm:$0xf] %vm1076_vm4, %v6943_v25  ;;  %v1125_v52 = vld [vmem:[#allocation2 + $0x5c] sm:$0x1] }
  0x1d   :  { %1264 = vst.msk [vmem:[#allocation2 + $0x170] sm:$0xf] %vm1076_vm4, %v6943_v25  ;;  %1268 = vst.msk [vmem:[#allocation2 + $0x178] sm:$0xf] %vm1076_vm4, %v6943_v25  ;;  %v1126_v54 = vsel %vm7079_vm3, 0, %v1125_v52  ;;  %v6804_v61 = vld [vmem:[%s9599_s0 + $0xf0] sm:$0xff]  }
  0x1e   :  { %6704 = vmatmul.mubr.msk.bf16.gmra.mxu0 %vm274_vm0, %v6781_v8  ;;  %1272 = vst.msk [vmem:[#allocation2 + $0x180] sm:$0xf] %vm1076_vm4, %v6943_v25  ;;  %1276 = vst.msk [vmem:[#allocation2 + $0x188] sm:$0xf] %vm1076_vm4, %v6943_v25  ;;  %v1145_v56 = vld [vmem:[#allocation2 + $0x84] sm:$0x1] }
  0x1f   :  { %6707 = vmatprep.mubr.msk.bf16.mxu0 %vm274_vm0, %v6782_v9  ;;  %1280 = vst.msk [vmem:[#allocation2 + $0x190] sm:$0xf] %vm1076_vm4, %v6943_v25  ;;  %1284 = vst.msk [vmem:[#allocation2 + $0x198] sm:$0xf] %vm1076_vm4, %v6943_v25  ;;  %v1146_v57 = vsel %vm7079_vm3, 0, %v1145_v56  ;;  %v6805_v2 = vld [vmem:[%s9599_s0 + $0xf8] sm:$0xff]  }
  0x20   :  { %1288 = vst.msk [vmem:[#allocation2 + $0x1a0] sm:$0xf] %vm1076_vm4, %v6943_v25  ;;  %1292 = vst.msk [vmem:[#allocation2 + $0x1a8] sm:$0xf] %vm1076_vm4, %v6943_v25  ;;  %v1137_v58 = vld [vmem:[#allocation2 + $0x74] sm:$0x1] }
  0x21   :  { %1296 = vst.msk [vmem:[#allocation2 + $0x1b0] sm:$0xf] %vm1076_vm4, %v6943_v25  ;;  %1300 = vst.msk [vmem:[#allocation2 + $0x1b8] sm:$0xf] %vm1076_vm4, %v6943_v25  ;;  %v1138_v59 = vsel %vm7079_vm3, 0, %v1137_v58 }
  0x22   :  { %1304 = vst.msk [vmem:[#allocation2 + $0x1c0] sm:$0xf] %vm1076_vm4, %v6943_v25  ;;  %1308 = vst.msk [vmem:[#allocation2 + $0x1c8] sm:$0xf] %vm1076_vm4, %v6943_v25  ;;  %v1149_v62 = vld [vmem:[#allocation2 + $0x8c] sm:$0x1] }
  0x23   :  { %1312 = vst.msk [vmem:[#allocation2 + $0x1d0] sm:$0xf] %vm1076_vm4, %v6943_v25  ;;  %1316 = vst.msk [vmem:[#allocation2 + $0x1d8] sm:$0xf] %vm1076_vm4, %v6943_v25  ;;  %v1150_v63 = vsel %vm7079_vm3, 0, %v1149_v62 }
  0x24   :  { %1320 = vst.msk [vmem:[#allocation2 + $0x1e0] sm:$0xf] %vm1076_vm4, %v6943_v25  ;;  %1324 = vst.msk [vmem:[#allocation2 + $0x1e8] sm:$0xf] %vm1076_vm4, %v6943_v25  ;;  %v1141_v0 = vld [vmem:[#allocation2 + $0x7c] sm:$0x1] }
  0x25   :  { %1328 = vst.msk [vmem:[#allocation2 + $0x1f0] sm:$0xf] %vm1076_vm4, %v6943_v25  ;;  %1332 = vst.msk [vmem:[#allocation2 + $0x1f8] sm:$0xf] %vm1076_vm4, %v6943_v25  ;;  %v1142_v1 = vsel %vm7079_vm3, 0, %v1141_v0 }
  0x26   :  { %6708 = vmatmul.mubr.msk.bf16.gmra.mxu0 %vm274_vm0, %v6783_v10  ;;  %1336 = vst.msk [vmem:[#allocation2 + $0x200] sm:$0xf] %vm1076_vm4, %v6943_v25  ;;  %1340 = vst.msk [vmem:[#allocation2 + $0x208] sm:$0xf] %vm1076_vm4, %v6943_v25  ;;  %v1153_v3 = vld [vmem:[#allocation2 + $0x94] sm:$0x1] }
  0x27   :  { %6711 = vmatprep.mubr.msk.bf16.mxu0 %vm274_vm0, %v6784_v11  ;;  %1344 = vst.msk [vmem:[#allocation2 + $0x210] sm:$0xf] %vm1076_vm4, %v6943_v25  ;;  %1348 = vst.msk [vmem:[#allocation2 + $0x218] sm:$0xf] %vm1076_vm4, %v6943_v25  ;;  %v1157_v4 = vld [vmem:[#allocation2 + $0x9c] sm:$0x1] }
  0x28   :  { %1352 = vst.msk [vmem:[#allocation2 + $0x220] sm:$0xf] %vm1076_vm4, %v6943_v25  ;;  %1356 = vst.msk [vmem:[#allocation2 + $0x228] sm:$0xf] %vm1076_vm4, %v6943_v25  ;;  %v1165_v5 = vld [vmem:[#allocation2 + $0xac] sm:$0x1] }
  0x29   :  { %1360 = vst.msk [vmem:[#allocation2 + $0x230] sm:$0xf] %vm1076_vm4, %v6943_v25  ;;  %1364 = vst.msk [vmem:[#allocation2 + $0x238] sm:$0xf] %vm1076_vm4, %v6943_v25  ;;  %v1154_v6 = vsel %vm7079_vm3, 0, %v1153_v3  ;;  %v1158_v7 = vsel %vm7079_vm3, 0, %v1157_v4 }
  0x2a   :  { %1087 = vst [vmem:[#allocation2 + $0xc] sm:$0x1] %v1086_v27  ;;  %1099 = vst [vmem:[#allocation2 + $0x24] sm:$0x1] %v1098_v29  ;;  %v1166_v8 = vsel %vm7079_vm3, 0, %v1165_v5 }
  0x2b   :  { %1091 = vst [vmem:[#allocation2 + $0x14] sm:$0x1] %v1090_v32  ;;  %1111 = vst [vmem:[#allocation2 + $0x3c] sm:$0x1] %v1110_v35  ;;  %v1161_v9 = vld [vmem:[#allocation2 + $0xa4] sm:$0x1] }
  0x2c   :  { %1103 = vst [vmem:[#allocation2 + $0x2c] sm:$0x1] %v1102_v37  ;;  %1115 = vst [vmem:[#allocation2 + $0x44] sm:$0x1] %v1114_v41  ;;  %v1162_v10 = vsel %vm7079_vm3, 0, %v1161_v9 }
  0x2d   :  { %1107 = vst [vmem:[#allocation2 + $0x34] sm:$0x1] %v1106_v43  ;;  %1131 = vst [vmem:[#allocation2 + $0x64] sm:$0x1] %v1130_v46  ;;  %v1169_v11 = vld [vmem:[#allocation2 + $0xb4] sm:$0x1] }
  0x2e   :  { %6712 = vmatmul.mubr.msk.bf16.gmra.mxu0 %vm274_vm0, %v6785_v12  ;;  %1123 = vst [vmem:[#allocation2 + $0x54] sm:$0x1] %v1122_v49  ;;  %1135 = vst [vmem:[#allocation2 + $0x6c] sm:$0x1] %v1134_v51  ;;  %v1170_v12 = vsel %vm7079_vm3, 0, %v1169_v11 }
  0x2f   :  { %6715 = vmatprep.mubr.msk.bf16.mxu0 %vm274_vm0, %v6786_v13  ;;  %1127 = vst [vmem:[#allocation2 + $0x5c] sm:$0x1] %v1126_v54  ;;  %1147 = vst [vmem:[#allocation2 + $0x84] sm:$0x1] %v1146_v57  ;;  %v1233_v13 = vld [vmem:[#allocation2 + $0x134] sm:$0x1] }
  0x30   :  { %1139 = vst [vmem:[#allocation2 + $0x74] sm:$0x1] %v1138_v59  ;;  %1151 = vst [vmem:[#allocation2 + $0x8c] sm:$0x1] %v1150_v63  ;;  %v1237_v24 = vld [vmem:[#allocation2 + $0x13c] sm:$0x1] }
  0x31   :  { %1143 = vst [vmem:[#allocation2 + $0x7c] sm:$0x1] %v1142_v1  ;;  %1155 = vst [vmem:[#allocation2 + $0x94] sm:$0x1] %v1154_v6  ;;  %v1238_v25 = vsel %vm7079_vm3, 0, %v1237_v24 }
  0x32   :  { %1159 = vst [vmem:[#allocation2 + $0x9c] sm:$0x1] %v1158_v7  ;;  %1167 = vst [vmem:[#allocation2 + $0xac] sm:$0x1] %v1166_v8  ;;  %v1229_v26 = vld [vmem:[#allocation2 + $0x12c] sm:$0x1] }
  0x33   :  { %1163 = vst [vmem:[#allocation2 + $0xa4] sm:$0x1] %v1162_v10  ;;  %1171 = vst [vmem:[#allocation2 + $0xb4] sm:$0x1] %v1170_v12  ;;  %v1230_v27 = vsel %vm7079_vm3, 0, %v1229_v26 }
  0x34   :  { %1239 = vst [vmem:[#allocation2 + $0x13c] sm:$0x1] %v1238_v25  ;;  %1231 = vst [vmem:[#allocation2 + $0x12c] sm:$0x1] %v1230_v27  ;;  %v1189_v28 = vld [vmem:[#allocation2 + $0xdc] sm:$0x1] }
  0x35   :  { %v1193_v29 = vld [vmem:[#allocation2 + $0xe4] sm:$0x1]  ;;  %v1190_v30 = vsel %vm7079_vm3, 0, %v1189_v28  ;;  %v1201_v32 = vld [vmem:[#allocation2 + $0xf4] sm:$0x1] }
  0x36   :  { %6716 = vmatmul.mubr.msk.bf16.gmra.mxu0 %vm274_vm0, %v6787_v14  ;;  %v1234_v14 = vsel %vm7079_vm3, 0, %v1233_v13  ;;  %1191 = vst [vmem:[#allocation2 + $0xdc] sm:$0x1] %v1190_v30  ;;  %v1202_v34 = vsel %vm7079_vm3, 0, %v1201_v32  ;;  %v1197_v36 = vld [vmem:[#allocation2 + $0xec] sm:$0x1] }
  0x37   :  { %6719 = vmatprep.mubr.msk.bf16.mxu0 %vm274_vm0, %v6788_v15  ;;  %v1173_v15 = vld [vmem:[#allocation2 + $0xbc] sm:$0x1]  ;;  %1235 = vst [vmem:[#allocation2 + $0x134] sm:$0x1] %v1234_v14  ;;  %1203 = vst [vmem:[#allocation2 + $0xf4] sm:$0x1] %v1202_v34 }
  0x38   :  { %v1241_v37 = vld [vmem:[#allocation2 + $0x144] sm:$0x1]  ;;  %v1936_v39 = vld [vmem:[#allocation2 + $0x90] sm:$0xf]  ;;  %v1253_v41 = vld [vmem:[#allocation2 + $0x15c] sm:$0x1] }
  0x39   :  { %v2212_v42 = vshrl.u32 %v1936_v39, 16  ;;  %v2215_v43 = vshll.u32 %v1936_v39, 16  ;;  %v1254_v44 = vsel %vm7079_vm3, 0, %v1253_v41  ;;  %v1205_v46 = vld [vmem:[#allocation2 + $0xfc] sm:$0x1] }
  0x3a   :  { %1255 = vst [vmem:[#allocation2 + $0x15c] sm:$0x1] %v1254_v44  ;;  %v1245_v50 = vld [vmem:[#allocation2 + $0x14c] sm:$0x1]  ;;  %v2195_v51 = vld [vmem:[#allocation2 + $0x94] sm:$0x1] }
  0x3b   :  { %v2214_v48 = vrot.slane %v2212_v42, 4  ;;  %v2217_v49 = vrot.slane %v2215_v43, 5  ;;  %v1246_v54 = vsel %vm7079_vm3, 0, %v1245_v50  ;;  %vm1968_vm5 = vsmask.f32 3328 }
  0x3c   :  { %1247 = vst [vmem:[#allocation2 + $0x14c] sm:$0x1] %v1246_v54  ;;  %vm1969_vm6 = vsmask.f32 7440  ;;  %v2221_v57 = vshll.u32 %v2195_v51, 16 }
  0x3d   :  { %v2218_v56 = vor.u32 %v2217_v49, %v2214_v48  ;;  %v2198_v58 = vld [vmem:[#allocation2 + $0xac] sm:$0x1]  ;;  %v1209_v59 = vld [vmem:[#allocation2 + $0x104] sm:$0x1]  ;;  %v2199_v0 = vld [vmem:[#allocation2 + $0xb4] sm:$0x1] }
  0x3e   :  { %6720 = vmatmul.mubr.msk.bf16.gmra.mxu0 %vm274_vm0, %v6789_v16  ;;  %v1174_v16 = vsel %vm7079_vm3, 0, %v1173_v15  ;;  %v1210_v63 = vsel %vm7079_vm3, 0, %v1209_v59  ;;  %v2203_v1 = vld [vmem:[#allocation2 + $0xdc] sm:$0x1]  ;;  %v7360_v8 = vrot.slane %v2221_v57, 5  ;;  %v2263_v12 = vshll.u32 %v2198_v58, 16  ;;  %vm7371_vm7 = vmor %vm1968_vm5, %vm1969_vm6 }
  0x3f   :  { %6723 = vmatprep.mubr.msk.bf16.mxu0 %vm274_vm0, %v6790_v17  ;;  %v1181_v17 = vld [vmem:[#allocation2 + $0xcc] sm:$0x1]  ;;  %1175 = vst [vmem:[#allocation2 + $0xbc] sm:$0x1] %v1174_v16  ;;  %1211 = vst [vmem:[#allocation2 + $0x104] sm:$0x1] %v1210_v63 }
  0x40   :  { %v7358_v7 = vrot.slane %v2218_v56, 4  ;;  %v7365_v11 = vld [vmem:[%s9600_s2] ss:$0 sm:$0xff]  ;;  %v2333_v14 = vshll.u32 %v2203_v1, 16  ;;  %v1217_v15 = vld [vmem:[#allocation2 + $0x114] sm:$0x1] }
  0x41   :  { %v2277_v16 = vshll.u32 %v2199_v0, 16  ;;  %v2206_v25 = vld [vmem:[#allocation2 + $0xf4] sm:$0x1]  ;;  %v1261_v26 = vld [vmem:[#allocation2 + $0x16c] sm:$0x1] }
  0x42   :  { %v2224_v27 = vsel %vm7371_vm7, %v7358_v7, %v7360_v8  ;;  %v1262_v30 = vsel %vm7079_vm3, 0, %v1261_v26  ;;  %vm1547_vm8 = vsmask.f32 7938  ;;  %v1213_v51 = vld [vmem:[#allocation2 + $0x10c] sm:$0x1] }
  0x43   :  { %1263 = vst [vmem:[#allocation2 + $0x16c] sm:$0x1] %v1262_v30  ;;  %v1214_v56 = vsel %vm7079_vm3, 0, %v1213_v51  ;;  %vm7424_vm13 = vmand %vm1076_vm4, %vm1547_vm8 }
  0x44   :  { %1215 = vst [vmem:[#allocation2 + $0x10c] sm:$0x1] %v1214_v56 }
  0x46   :  { %6724 = vmatmul.mubr.msk.bf16.gmra.mxu0 %vm274_vm0, %v6791_v18  ;;  %v1182_v18 = vsel %vm7079_vm3, 0, %v1181_v17  ;;  %v2200_v4 = vld [vmem:[#allocation2 + $0xbc] sm:$0x1]  ;;  %v2208_v41 = vld [vmem:[#allocation2 + $0x104] sm:$0x1] }
  0x47   :  { %6727 = vmatprep.mubr.msk.bf16.mxu0 %vm274_vm0, %v6792_v19  ;;  %1183 = vst [vmem:[#allocation2 + $0xcc] sm:$0x1] %v1182_v18  ;;  %v1225_v19 = vld [vmem:[#allocation2 + $0x124] sm:$0x1]  ;;  %v2291_v17 = vshll.u32 %v2200_v4, 16 }
  0x48   :  { %v1226_v22 = vsel %vm7079_vm3, 0, %v1225_v19 }
  0x49   :  { %1227 = vst [vmem:[#allocation2 + $0x124] sm:$0x1] %v1226_v22  ;;  %v7394_v39 = vrot.slane %v2291_v17, 5 }
  0x4e   :  { %6728 = vmatmul.mubr.msk.bf16.gmra.mxu0 %vm274_vm0, %v7077_v20  ;;  %v1177_v20 = vld [vmem:[#allocation2 + $0xc4] sm:$0x1]  ;;  %v2202_v10 = vld [vmem:[#allocation2 + $0xcc] sm:$0x1] }
  0x4f   :  { %6731 = vmatprep.mubr.msk.bf16.mxu0 %vm274_vm0, %v7086_v23  ;;  %v1178_v23 = vsel %vm7079_vm3, 0, %v1177_v20  ;;  %v1218_v20 = vsel %vm7079_vm3, 0, %v1217_v15  ;;  %v2319_v24 = vshll.u32 %v2202_v10, 16 }
  0x50   :  { %1179 = vst [vmem:[#allocation2 + $0xc4] sm:$0x1] %v1178_v23  ;;  %1219 = vst [vmem:[#allocation2 + $0x114] sm:$0x1] %v1218_v20 }
  0x51   :  { %v7398_v43 = vrot.slane %v2319_v24, 5 }
  0x56   :  { %6732 = vmatmul.mubr.msk.bf16.gmra.mxu0 %vm274_vm0, %v6795_v31  ;;  %v1194_v31 = vsel %vm7079_vm3, 0, %v1193_v29 }
  0x57   :  { %6735 = vmatprep.mubr.msk.bf16.mxu0 %vm274_vm0, %v6796_v33  ;;  %v1249_v33 = vld [vmem:[#allocation2 + $0x154] sm:$0x1]  ;;  %1195 = vst [vmem:[#allocation2 + $0xe4] sm:$0x1] %v1194_v31  ;;  %v2201_v5 = vld [vmem:[#allocation2 + $0xc4] sm:$0x1] }
  0x58   :  { %v1250_v35 = vsel %vm7079_vm3, 0, %v1249_v33  ;;  %v2305_v18 = vshll.u32 %v2201_v5, 16  ;;  %v7385_v33 = vrot.slane %v2263_v12, 5 }
  0x59   :  { %1251 = vst [vmem:[#allocation2 + $0x154] sm:$0x1] %v1250_v35  ;;  %v7389_v35 = vrot.slane %v2333_v14, 5 }
  0x5e   :  { %6736 = vmatmul.mubr.msk.bf16.gmra.mxu0 %vm274_vm0, %v6797_v38  ;;  %v1198_v38 = vsel %vm7079_vm3, 0, %v1197_v36  ;;  %v2204_v19 = vld [vmem:[#allocation2 + $0xe4] sm:$0x1] }
  0x5f   :  { %6739 = vmatprep.mubr.msk.bf16.mxu0 %vm274_vm0, %v6798_v40  ;;  %v1242_v40 = vsel %vm7079_vm3, 0, %v1241_v37  ;;  %1199 = vst [vmem:[#allocation2 + $0xec] sm:$0x1] %v1198_v38  ;;  %v2347_v36 = vshll.u32 %v2204_v19, 16  ;;  %v7392_v38 = vrot.slane %v2277_v16, 5 }
  0x60   :  { %1243 = vst [vmem:[#allocation2 + $0x144] sm:$0x1] %v1242_v40  ;;  %v7396_v40 = vrot.slane %v2305_v18, 5  ;;  %v1835_v16 = vld [vmem:[#allocation2 + $0x18] sm:$0xf] }
  0x61   :  { %v7407_v54 = vrot.slane %v2347_v36, 5 }
  0x66   :  { %6740 = vmatmul.mubr.msk.bf16.gmra.mxu0 %vm274_vm0, %v6799_v45  ;;  %v1944_v45 = vld [vmem:[#allocation2 + $0xd8] sm:$0xf]  ;;  %v2205_v29 = vld [vmem:[#allocation2 + $0xec] sm:$0x1] }
  0x67   :  { %6743 = vmatprep.mubr.msk.bf16.mxu0 %vm274_vm0, %v6800_v47  ;;  %v1206_v47 = vsel %vm7079_vm3, 0, %v1205_v46  ;;  %v2324_v52 = vshrl.u32 %v1944_v45, 16  ;;  %v2361_v44 = vshll.u32 %v2205_v29, 16  ;;  %v1273_v46 = vld [vmem:[#allocation2 + $0x184] sm:$0x1] }
  0x68   :  { %1207 = vst [vmem:[#allocation2 + $0xfc] sm:$0x1] %v1206_v47  ;;  %v1274_v50 = vsel %vm7079_vm3, 0, %v1273_v46 }
  0x69   :  { %1275 = vst [vmem:[#allocation2 + $0x184] sm:$0x1] %v1274_v50 }
  0x6e   :  { %6744 = vmatmul.mubr.msk.bf16.gmra.mxu0 %vm274_vm0, %v6801_v53  ;;  %v2327_v53 = vshll.u32 %v1944_v45, 16  ;;  %v2375_v45 = vshll.u32 %v2206_v25, 16  ;;  %v1838_v25 = vld [vmem:[#allocation2 + $0x1c] sm:$0x1] }
  0x6f   :  { %6747 = vmatprep.mubr.msk.bf16.mxu0 %vm274_vm0, %v6802_v55  ;;  %v2196_v55 = vld [vmem:[#allocation2 + $0x9c] sm:$0x1] }
  0x70   :  { %v2329_v62 = vrot.slane %v2327_v53, 5  ;;  %v2235_v3 = vshll.u32 %v2196_v55, 16  ;;  %v2207_v31 = vld [vmem:[#allocation2 + $0xfc] sm:$0x1]  ;;  %v2403_v55 = vshll.u32 %v2208_v41, 16  ;;  %v7414_v63 = vrot.slane %v2375_v45, 5 }
  0x71   :  { %v2389_v47 = vshll.u32 %v2207_v31, 16 }
  0x72   :  { %v7375_v23 = vrot.slane %v2235_v3, 5  ;;  %v7419_v10 = vrot.slane %v2403_v55, 5 }
  0x73   :  { %v7416_v0 = vrot.slane %v2389_v47, 5 }
  0x76   :  { %6748 = vmatmul.mubr.msk.bf16.gmra.mxu0 %vm274_vm0, %v6803_v60  ;;  %v2197_v60 = vld [vmem:[#allocation2 + $0xa4] sm:$0x1] }
  0x77   :  { %6751 = vmatprep.mubr.msk.bf16.mxu0 %vm274_vm0, %v6804_v61  ;;  %v2326_v61 = vrot.slane %v2324_v52, 4  ;;  %v2249_v9 = vshll.u32 %v2197_v60, 16 }
  0x79   :  { %v2330_v13 = vor.u32 %v2329_v62, %v2326_v61  ;;  %v7381_v28 = vrot.slane %v2249_v9, 5  ;;  %v7412_v62 = vrot.slane %v2361_v44, 5  ;;  %v1826_v44 = vld [vmem:[#allocation2 + $0xc] sm:$0x1] }
  0x7b   :  { %v7387_v34 = vrot.slane %v2330_v13, 4 }
  0x7d   :  { %v2336_v53 = vsel %vm7371_vm7, %v7387_v34, %v7389_v35  ;;  %v1579_v34 = vld [vmem:[#allocation2 + $0x148] sm:$0xf]  ;;  %v1582_v35 = vld [vmem:[#allocation2 + $0x14c] sm:$0x1] }
  0x7e   :  { %6752 = vmatmul.mubr.msk.bf16.gmra.mxu0 %vm274_vm0, %v6805_v2  ;;  %v1269_v2 = vld [vmem:[#allocation2 + $0x17c] sm:$0x1] }
  0x7f   :  { %v1270_v6 = vsel %vm7079_vm3, 0, %v1269_v2 }
  0x80   :  { %1271 = vst [vmem:[#allocation2 + $0x17c] sm:$0x1] %v1270_v6 }
  0xc6   :  { %v6693_v32 = vpop.f32.mrf.mxu0 }
  0xc7   :  { %v414_v37 = vadd.f32 %v6693_v32, %v7365_v11 }
  0xc8   :  { %v405_v42 = vpop.f32.mrf.mxu0 }
  0xc9   :  { %vm662_vm9 = vcmp.ge.f32.partialorder %v414_v37, 0.0  ;;  %v726_v48 = vmul.f32 0.2, %v414_v37  ;;  %v406_v49 = vadd.f32 %v7365_v11, %v405_v42  ;;  %v1823_v42 = vld [vmem:[#allocation2 + $0x8] sm:$0xf] }
  0xca   :  { %v6694_v52 = vpop.f32.mrf.mxu0 }
  0xcb   :  { %v790_v57 = vsel %vm662_vm9, %v414_v37, %v726_v48  ;;  %vm660_vm10 = vcmp.ge.f32.partialorder %v406_v49, 0.0  ;;  %v724_v58 = vmul.f32 0.2, %v406_v49  ;;  %v417_v59 = vadd.f32 %v6694_v52, %v7365_v11 }
  0xcc   :  { %v6338_v60 = vpack.c.bf16 %v790_v57, %v790_v57  ;;  %v408_v61 = vpop.f32.mrf.mxu0 }
  0xcd   :  { %v788_v1 = vsel %vm660_vm10, %v406_v49, %v724_v58  ;;  %vm663_vm11 = vcmp.ge.f32.partialorder %v417_v59, 0.0  ;;  %v727_v2 = vmul.f32 0.2, %v417_v59  ;;  %v409_v3 = vadd.f32 %v7365_v11, %v408_v61  ;;  %v1841_v61 = vld [vmem:[#allocation2 + $0x20] sm:$0xf] }
  0xce   :  { %v1679_v4 = vshrl.u32 %v6338_v60, 16  ;;  %v1682_v5 = vshll.u32 %v6338_v60, 16  ;;  %v6336_v6 = vpack.c.bf16 %v788_v1, %v788_v1  ;;  %v6697_v9 = vpop.f32.mrf.mxu0  ;;  %v1844_v1 = vld [vmem:[#allocation2 + $0x24] sm:$0x1] }
  0xcf   :  { %v791_v12 = vsel %vm663_vm11, %v417_v59, %v727_v2  ;;  %vm661_vm12 = vcmp.ge.f32.partialorder %v409_v3, 0.0  ;;  %v725_v13 = vmul.f32 0.2, %v409_v3  ;;  %v430_v14 = vadd.f32 %v6697_v9, %v7365_v11 }
  0xd0   :  { %v1681_v15 = vrot.slane %v1679_v4, 7  ;;  %v1663_v17 = vshrl.u32 %v6336_v6, 16  ;;  %v1666_v18 = vshll.u32 %v6336_v6, 16  ;;  %v6339_v19 = vpack.c.bf16 %v791_v12, %v791_v12  ;;  %v421_v20 = vpop.f32.mrf.mxu0  ;;  %v1829_v12 = vld [vmem:[#allocation2 + $0x10] sm:$0xf] }
  0xd1   :  { %v789_v26 = vsel %vm661_vm12, %v409_v3, %v725_v13  ;;  %vm666_vm14 = vcmp.ge.f32.partialorder %v430_v14, 0.0  ;;  %v730_v29 = vmul.f32 0.2, %v430_v14  ;;  %v422_v30 = vadd.f32 %v7365_v11, %v421_v20 }
  0xd2   :  { %v1684_v31 = vor.u32 %v1682_v5, %v1681_v15  ;;  %v1685_v32 = vrot.slane %v1681_v15, 4  ;;  %v1665_v36 = vrot.slane %v1663_v17, 7  ;;  %v1687_v37 = vshrl.u32 %v6339_v19, 16  ;;  %v6698_v41 = vpop.f32.mrf.mxu0 }
  0xd3   :  { %v1690_v45 = vshll.u32 %v6339_v19, 16  ;;  %v6337_v46 = vpack.c.bf16 %v789_v26, %v789_v26  ;;  %v794_v47 = vsel %vm666_vm14, %v430_v14, %v730_v29  ;;  %vm664_vm15 = vcmp.ge.f32.partialorder %v422_v30, 0.0  ;;  %v1832_v14 = vld [vmem:[#allocation2 + $0x14] sm:$0x1] }
  0xd4   :  { %v1836_v48 = vsel %vm7424_vm13, %v1684_v31, %v1835_v16  ;;  %v1839_v49 = vsel %vm7079_vm3, %v1685_v32, %v1838_v25  ;;  %v1668_v50 = vor.u32 %v1666_v18, %v1665_v36  ;;  %v1669_v51 = vrot.slane %v1665_v36, 4  ;;  %v424_v52 = vpop.f32.mrf.mxu0 }
  0xd5   :  { %1837 = vst [vmem:[#allocation2 + $0x18] sm:$0xf] %v1836_v48  ;;  %1840 = vst [vmem:[#allocation2 + $0x1c] sm:$0x1] %v1839_v49  ;;  %v1689_v55 = vrot.slane %v1687_v37, 7  ;;  %v1671_v56 = vshrl.u32 %v6337_v46, 16  ;;  %v6342_v58 = vpack.c.bf16 %v794_v47, %v794_v47  ;;  %v433_v3 = vadd.f32 %v6698_v41, %v7365_v11 }
  0xd6   :  { %v1674_v57 = vshll.u32 %v6337_v46, 16  ;;  %v1824_v59 = vsel %vm7424_vm13, %v1668_v50, %v1823_v42  ;;  %v1827_v60 = vsel %vm7079_vm3, %v1669_v51, %v1826_v44  ;;  %v728_v2 = vmul.f32 0.2, %v422_v30  ;;  %v6701_v4 = vpop.f32.mrf.mxu0  ;;  %v1859_v42 = vld [vmem:[#allocation2 + $0x38] sm:$0xf] }
  0xd7   :  { %1825 = vst [vmem:[#allocation2 + $0x8] sm:$0xf] %v1824_v59  ;;  %1828 = vst [vmem:[#allocation2 + $0xc] sm:$0x1] %v1827_v60  ;;  %v1692_v5 = vor.u32 %v1690_v45, %v1689_v55  ;;  %v1693_v6 = vrot.slane %v1689_v55, 4  ;;  %v1673_v9 = vrot.slane %v1671_v56, 7  ;;  %v425_v36 = vadd.f32 %v7365_v11, %v424_v52 }
  0xd8   :  { %v1711_v13 = vshrl.u32 %v6342_v58, 16  ;;  %v1714_v15 = vshll.u32 %v6342_v58, 16  ;;  %v792_v16 = vsel %vm664_vm15, %v422_v30, %v728_v2  ;;  %vm667_vm0 = vcmp.ge.f32.partialorder %v433_v3, 0.0  ;;  %v437_v18 = vpop.f32.mrf.mxu0  ;;  %v1862_v44 = vld [vmem:[#allocation2 + $0x3c] sm:$0x1] }
  0xd9   :  { %v731_v17 = vmul.f32 0.2, %v433_v3  ;;  %v1842_v19 = vsel %vm7424_vm13, %v1692_v5, %v1841_v61  ;;  %v1845_v20 = vsel %vm7079_vm3, %v1693_v6, %v1844_v1  ;;  %v1676_v25 = vor.u32 %v1674_v57, %v1673_v9  ;;  %v1847_v60 = vld [vmem:[#allocation2 + $0x28] sm:$0xf]  ;;  %v1850_v1 = vld [vmem:[#allocation2 + $0x2c] sm:$0x1] }
  0xda   :  { %v1677_v26 = vrot.slane %v1673_v9, 4  ;;  %1843 = vst [vmem:[#allocation2 + $0x20] sm:$0xf] %v1842_v19  ;;  %1846 = vst [vmem:[#allocation2 + $0x24] sm:$0x1] %v1845_v20  ;;  %v1713_v29 = vrot.slane %v1711_v13, 7  ;;  %v6340_v31 = vpack.c.bf16 %v792_v16, %v792_v16  ;;  %v6702_v37 = vpop.f32.mrf.mxu0  ;;  %v446_v46 = vadd.f32 %v6701_v4, %v7365_v11 }
  0xdb   :  { %v795_v32 = vsel %vm667_vm0, %v433_v3, %v731_v17  ;;  %v1830_v30 = vsel %vm7424_vm13, %v1676_v25, %v1829_v12  ;;  %vm665_vm1 = vcmp.ge.f32.partialorder %v425_v36, 0.0  ;;  %v729_v56 = vmul.f32 0.2, %v425_v36  ;;  %v1865_v12 = vld [vmem:[#allocation2 + $0x40] sm:$0xf] }
  0xdc   :  { %v1833_v41 = vsel %vm7079_vm3, %v1677_v26, %v1832_v14  ;;  %v6343_v45 = vpack.c.bf16 %v795_v32, %v795_v32  ;;  %1831 = vst [vmem:[#allocation2 + $0x10] sm:$0xf] %v1830_v30  ;;  %v1716_v47 = vor.u32 %v1714_v15, %v1713_v29  ;;  %v1717_v48 = vrot.slane %v1713_v29, 4  ;;  %v440_v51 = vpop.f32.mrf.mxu0  ;;  %v1868_v13 = vld [vmem:[#allocation2 + $0x44] sm:$0x1] }
  0xdd   :  { %1834 = vst [vmem:[#allocation2 + $0x14] sm:$0x1] %v1833_v41  ;;  %v1695_v49 = vshrl.u32 %v6340_v31, 16  ;;  %v1698_v50 = vshll.u32 %v6340_v31, 16  ;;  %vm670_vm2 = vcmp.ge.f32.partialorder %v446_v46, 0.0  ;;  %v793_v3 = vsel %vm665_vm1, %v425_v36, %v729_v56 }
  0xde   :  { %v1719_v52 = vshrl.u32 %v6343_v45, 16  ;;  %v1722_v55 = vshll.u32 %v6343_v45, 16  ;;  %v1860_v57 = vsel %vm7424_vm13, %v1716_v47, %v1859_v42  ;;  %v1863_v58 = vsel %vm7079_vm3, %v1717_v48, %v1862_v44  ;;  %v6705_v61 = vpop.f32.mrf.mxu0  ;;  %v1856_v47 = vld [vmem:[#allocation2 + $0x34] sm:$0x1] }
  0xdf   :  { %v1697_v59 = vrot.slane %v1695_v49, 7  ;;  %1861 = vst [vmem:[#allocation2 + $0x38] sm:$0xf] %v1860_v57  ;;  %1864 = vst [vmem:[#allocation2 + $0x3c] sm:$0x1] %v1863_v58  ;;  %v438_v5 = vadd.f32 %v7365_v11, %v437_v18  ;;  %v6341_v14 = vpack.c.bf16 %v793_v3, %v793_v3  ;;  %v449_v15 = vadd.f32 %v6702_v37, %v7365_v11 }
  0xe0   :  { %v1721_v2 = vrot.slane %v1719_v52, 7  ;;  %v734_v4 = vmul.f32 0.2, %v446_v46  ;;  %v7455_v16 = vpop.f32.mrf.mxu0  ;;  %v441_v44 = vadd.f32 %v7365_v11, %v440_v51  ;;  %v462_v52 = vadd.f32 %v6705_v61, %v7365_v11 }
  0xe1   :  { %v1700_v6 = vor.u32 %v1698_v50, %v1697_v59  ;;  %v1701_v9 = vrot.slane %v1697_v59, 4  ;;  %vm668_vm5 = vcmp.ge.f32.partialorder %v438_v5, 0.0  ;;  %v1703_v26 = vshrl.u32 %v6341_v14, 16 }
  0xe2   :  { %v1724_v17 = vor.u32 %v1722_v55, %v1721_v2  ;;  %v1725_v19 = vrot.slane %v1721_v2, 4  ;;  %v798_v20 = vsel %vm670_vm2, %v446_v46, %v734_v4  ;;  %v1706_v29 = vshll.u32 %v6341_v14, 16  ;;  %v7462_v31 = vpop.f32.mrf.mxu0  ;;  %v1853_v46 = vld [vmem:[#allocation2 + $0x30] sm:$0xf]  ;;  %v1883_v4 = vld [vmem:[#allocation2 + $0x60] sm:$0xf] }
  0xe3   :  { %v1848_v25 = vsel %vm7424_vm13, %v1700_v6, %v1847_v60  ;;  %v1851_v18 = vsel %vm7079_vm3, %v1701_v9, %v1850_v1  ;;  %v6346_v37 = vpack.c.bf16 %v798_v20, %v798_v20  ;;  %v732_v30 = vmul.f32 0.2, %v438_v5 }
  0xe4   :  { %1849 = vst [vmem:[#allocation2 + $0x28] sm:$0xf] %v1848_v25  ;;  %1852 = vst [vmem:[#allocation2 + $0x2c] sm:$0x1] %v1851_v18  ;;  %v1866_v32 = vsel %vm7424_vm13, %v1724_v17, %v1865_v12  ;;  %v1869_v36 = vsel %vm7079_vm3, %v1725_v19, %v1868_v13  ;;  %v1705_v41 = vrot.slane %v1703_v26, 7  ;;  %vm671_vm6 = vcmp.ge.f32.partialorder %v449_v15, 0.0  ;;  %v7469_v45 = vpop.f32.mrf.mxu0 }
  0xe5   :  { %1867 = vst [vmem:[#allocation2 + $0x40] sm:$0xf] %v1866_v32  ;;  %1870 = vst [vmem:[#allocation2 + $0x44] sm:$0x1] %v1869_v36  ;;  %v735_v42 = vmul.f32 0.2, %v449_v15  ;;  %v796_v50 = vsel %vm668_vm5, %v438_v5, %v732_v30 }
  0xe6   :  { %v1743_v48 = vshrl.u32 %v6346_v37, 16  ;;  %v1746_v49 = vshll.u32 %v6346_v37, 16  ;;  %v1708_v55 = vor.u32 %v1706_v29, %v1705_v41  ;;  %v1709_v56 = vrot.slane %v1705_v41, 4  ;;  %v7473_v59 = vpop.f32.mrf.mxu0  ;;  %v1886_v5 = vld [vmem:[#allocation2 + $0x64] sm:$0x1] }
  0xe7   :  { %v6344_v57 = vpack.c.bf16 %v796_v50, %v796_v50  ;;  %v799_v58 = vsel %vm671_vm6, %v449_v15, %v735_v42  ;;  %vm669_vm8 = vcmp.ge.f32.partialorder %v441_v44, 0.0  ;;  %v733_v51 = vmul.f32 0.2, %v441_v44  ;;  %v1871_v29 = vld [vmem:[#allocation2 + $0x50] sm:$0xf] }
  0xe8   :  { %v1745_v60 = vrot.slane %v1743_v48, 7  ;;  %v6347_v1 = vpack.c.bf16 %v799_v58, %v799_v58  ;;  %v1854_v2 = vsel %vm7424_vm13, %v1708_v55, %v1853_v46  ;;  %v1857_v3 = vsel %vm7079_vm3, %v1709_v56, %v1856_v47  ;;  %v7479_v9 = vpop.f32.mrf.mxu0  ;;  %v1874_v32 = vld [vmem:[#allocation2 + $0x54] sm:$0x1]  ;;  %v1889_v42 = vld [vmem:[#allocation2 + $0x68] sm:$0xf] }
  0xe9   :  { %v1727_v6 = vshrl.u32 %v6344_v57, 16  ;;  %v1730_v61 = vshll.u32 %v6344_v57, 16  ;;  %1855 = vst [vmem:[#allocation2 + $0x30] sm:$0xf] %v1854_v2  ;;  %1858 = vst [vmem:[#allocation2 + $0x34] sm:$0x1] %v1857_v3  ;;  %v797_v19 = vsel %vm669_vm8, %v441_v44, %v733_v51  ;;  %v454_v47 = vadd.f32 %v7365_v11, %v7455_v16 }
  0xea   :  { %v1748_v12 = vor.u32 %v1746_v49, %v1745_v60  ;;  %v1749_v13 = vrot.slane %v1745_v60, 4  ;;  %v1751_v14 = vshrl.u32 %v6347_v1, 16  ;;  %v1754_v15 = vshll.u32 %v6347_v1, 16  ;;  %v7482_v25 = vpop.f32.mrf.mxu0  ;;  %v1892_v44 = vld [vmem:[#allocation2 + $0x6c] sm:$0x1] }
  0xeb   :  { %v1729_v17 = vrot.slane %v1727_v6, 7  ;;  %vm674_vm9 = vcmp.ge.f32.partialorder %v462_v52, 0.0  ;;  %v738_v20 = vmul.f32 0.2, %v462_v52  ;;  %v6345_v37 = vpack.c.bf16 %v797_v19, %v797_v19  ;;  %v1877_v3 = vld [vmem:[#allocation2 + $0x58] sm:$0xf] }
  0xec   :  { %v1884_v18 = vsel %vm7424_vm13, %v1748_v12, %v1883_v4  ;;  %v1887_v26 = vsel %vm7079_vm3, %v1749_v13, %v1886_v5  ;;  %v1753_v36 = vrot.slane %v1751_v14, 7  ;;  %v7490_v48 = vpop.f32.mrf.mxu0  ;;  %vm672_vm10 = vcmp.ge.f32.partialorder %v454_v47, 0.0  ;;  %v1880_v4 = vld [vmem:[#allocation2 + $0x5c] sm:$0x1] }
  0xed   :  { %1885 = vst [vmem:[#allocation2 + $0x60] sm:$0xf] %v1884_v18  ;;  %1888 = vst [vmem:[#allocation2 + $0x64] sm:$0x1] %v1887_v26  ;;  %v1732_v30 = vor.u32 %v1730_v61, %v1729_v17  ;;  %v1733_v41 = vrot.slane %v1729_v17, 4  ;;  %v802_v46 = vsel %vm674_vm9, %v462_v52, %v738_v20  ;;  %v1735_v55 = vshrl.u32 %v6345_v37, 16 }
  0xee   :  { %v1756_v49 = vor.u32 %v1754_v15, %v1753_v36  ;;  %v1757_v50 = vrot.slane %v1753_v36, 4  ;;  %v1738_v56 = vshll.u32 %v6345_v37, 16  ;;  %v6350_v60 = vpack.c.bf16 %v802_v46, %v802_v46  ;;  %v7496_v1 = vpop.f32.mrf.mxu0  ;;  %v1907_v18 = vld [vmem:[#allocation2 + $0x80] sm:$0xf]  ;;  %v1910_v36 = vld [vmem:[#allocation2 + $0x84] sm:$0x1] }
  0xef   :  { %v1872_v57 = vsel %vm7424_vm13, %v1732_v30, %v1871_v29  ;;  %v1875_v58 = vsel %vm7079_vm3, %v1733_v41, %v1874_v32  ;;  %v1737_v51 = vrot.slane %v1735_v55, 7  ;;  %v736_v2 = vmul.f32 0.2, %v454_v47 }
  0xf0   :  { %1873 = vst [vmem:[#allocation2 + $0x50] sm:$0xf] %v1872_v57  ;;  %1876 = vst [vmem:[#allocation2 + $0x54] sm:$0x1] %v1875_v58  ;;  %v1890_v16 = vsel %vm7424_vm13, %v1756_v49, %v1889_v42  ;;  %v1893_v52 = vsel %vm7079_vm3, %v1757_v50, %v1892_v44  ;;  %v1775_v5 = vshrl.u32 %v6350_v60, 16  ;;  %v1778_v6 = vshll.u32 %v6350_v60, 16  ;;  %v7506_v13 = vpop.f32.mrf.mxu0 }
  0xf1   :  { %1891 = vst [vmem:[#allocation2 + $0x68] sm:$0xf] %v1890_v16  ;;  %1894 = vst [vmem:[#allocation2 + $0x6c] sm:$0x1] %v1893_v52  ;;  %v465_v61 = vadd.f32 %v7462_v31, %v7365_v11  ;;  %v457_v12 = vadd.f32 %v7365_v11, %v7469_v45  ;;  %v1740_v14 = vor.u32 %v1738_v56, %v1737_v51  ;;  %v1741_v15 = vrot.slane %v1737_v51, 4 }
  0xf2   :  { %v800_v17 = vsel %vm672_vm10, %v454_v47, %v736_v2  ;;  %v478_v19 = vadd.f32 %v7473_v59, %v7365_v11  ;;  %v1777_v20 = vrot.slane %v1775_v5, 7  ;;  %v7511_v32 = vpop.f32.mrf.mxu0  ;;  %v1895_v60 = vld [vmem:[#allocation2 + $0x70] sm:$0xf]  ;;  %v1898_v16 = vld [vmem:[#allocation2 + $0x74] sm:$0x1]  ;;  %v470_v2 = vadd.f32 %v7365_v11, %v7479_v9 }
  0xf3   :  { %v6348_v26 = vpack.c.bf16 %v800_v17, %v800_v17  ;;  %vm675_vm11 = vcmp.ge.f32.partialorder %v465_v61, 0.0  ;;  %v739_v29 = vmul.f32 0.2, %v465_v61  ;;  %v1878_v31 = vsel %vm7424_vm13, %v1740_v14, %v1877_v3  ;;  %v1913_v9 = vld [vmem:[#allocation2 + $0x88] sm:$0xf] }
  0xf4   :  { %v1881_v45 = vsel %vm7079_vm3, %v1741_v15, %v1880_v4  ;;  %vm673_vm12 = vcmp.ge.f32.partialorder %v457_v12, 0.0  ;;  %v737_v37 = vmul.f32 0.2, %v457_v12  ;;  %1879 = vst [vmem:[#allocation2 + $0x58] sm:$0xf] %v1878_v31  ;;  %v1780_v30 = vor.u32 %v1778_v6, %v1777_v20  ;;  %v7517_v44 = vpop.f32.mrf.mxu0 }
  0xf5   :  { %1882 = vst [vmem:[#allocation2 + $0x5c] sm:$0x1] %v1881_v45  ;;  %v1781_v59 = vrot.slane %v1777_v20, 4  ;;  %v1759_v41 = vshrl.u32 %v6348_v26, 16  ;;  %v1762_v42 = vshll.u32 %v6348_v26, 16  ;;  %v803_v46 = vsel %vm675_vm11, %v465_v61, %v739_v29 }
  0xf6   :  { %v801_v47 = vsel %vm673_vm12, %v457_v12, %v737_v37  ;;  %vm678_vm14 = vcmp.ge.f32.partialorder %v478_v19, 0.0  ;;  %v742_v49 = vmul.f32 0.2, %v478_v19  ;;  %v1908_v50 = vsel %vm7424_vm13, %v1780_v30, %v1907_v18  ;;  %v7523_v58 = vpop.f32.mrf.mxu0 }
  0xf7   :  { %v1911_v55 = vsel %vm7079_vm3, %v1781_v59, %v1910_v36  ;;  %v1761_v56 = vrot.slane %v1759_v41, 7  ;;  %v6351_v57 = vpack.c.bf16 %v803_v46, %v803_v46  ;;  %1909 = vst [vmem:[#allocation2 + $0x80] sm:$0xf] %v1908_v50  ;;  %v6349_v52 = vpack.c.bf16 %v801_v47, %v801_v47  ;;  %v1901_v59 = vld [vmem:[#allocation2 + $0x78] sm:$0xf] }
  0xf8   :  { %1912 = vst [vmem:[#allocation2 + $0x84] sm:$0x1] %v1911_v55  ;;  %v806_v51 = vsel %vm678_vm14, %v478_v19, %v742_v49  ;;  %v481_v3 = vadd.f32 %v7482_v25, %v7365_v11  ;;  %v501_v12 = vpop.f32.mrf.mxu0  ;;  %vm676_vm15 = vcmp.ge.f32.partialorder %v470_v2, 0.0  ;;  %v740_v26 = vmul.f32 0.2, %v470_v2 }
  0xf9   :  { %v1764_v4 = vor.u32 %v1762_v42, %v1761_v56  ;;  %v1765_v5 = vrot.slane %v1761_v56, 4  ;;  %v1783_v6 = vshrl.u32 %v6351_v57, 16  ;;  %v1786_v61 = vshll.u32 %v6351_v57, 16  ;;  %v1916_v25 = vld [vmem:[#allocation2 + $0x8c] sm:$0x1] }
  0xfa   :  { %v1767_v14 = vshrl.u32 %v6349_v52, 16  ;;  %v1770_v15 = vshll.u32 %v6349_v52, 16  ;;  %v6354_v17 = vpack.c.bf16 %v806_v51, %v806_v51  ;;  %v6718_v29 = vpop.f32.mrf.mxu0  ;;  %vm679_vm0 = vcmp.ge.f32.partialorder %v481_v3, 0.0  ;;  %v1904_v41 = vld [vmem:[#allocation2 + $0x7c] sm:$0x1] }
  0xfb   :  { %v1896_v20 = vsel %vm7424_vm13, %v1764_v4, %v1895_v60  ;;  %v1899_v19 = vsel %vm7079_vm3, %v1765_v5, %v1898_v16  ;;  %v1785_v18 = vrot.slane %v1783_v6, 7  ;;  %v743_v45 = vmul.f32 0.2, %v481_v3 }
  0xfc   :  { %1897 = vst [vmem:[#allocation2 + $0x70] sm:$0xf] %v1896_v20  ;;  %1900 = vst [vmem:[#allocation2 + $0x74] sm:$0x1] %v1899_v19  ;;  %v1769_v31 = vrot.slane %v1767_v14, 7  ;;  %v473_v36 = vadd.f32 %v7365_v11, %v7490_v48  ;;  %v804_v42 = vsel %vm676_vm15, %v470_v2, %v740_v26  ;;  %v494_v46 = vadd.f32 %v7496_v1, %v7365_v11  ;;  %v504_v47 = vpop.f32.mrf.mxu0 }
  0xfd   :  { %1648 = vst.msk [vmem:[#allocation2 + $0xa8] sm:$0xf] %vm1076_vm4, %v6354_v17  ;;  %v1788_v37 = vor.u32 %v1786_v61, %v1785_v18  ;;  %v1789_v30 = vrot.slane %v1785_v18, 4  ;;  %v6352_v55 = vpack.c.bf16 %v804_v42, %v804_v42  ;;  %v807_v56 = vsel %vm679_vm0, %v481_v3, %v743_v45 }
  0xfe   :  { %v1772_v49 = vor.u32 %v1770_v15, %v1769_v31  ;;  %v1773_v50 = vrot.slane %v1769_v31, 4  ;;  %v6355_v60 = vpack.c.bf16 %v807_v56, %v807_v56  ;;  %vm677_vm1 = vcmp.ge.f32.partialorder %v473_v36, 0.0  ;;  %v6721_v16 = vpop.f32.mrf.mxu0 }
  0xff   :  { %v1914_v57 = vsel %vm7424_vm13, %v1788_v37, %v1913_v9  ;;  %v1917_v48 = vsel %vm7079_vm3, %v1789_v30, %v1916_v25  ;;  %1646 = vst.msk [vmem:[#allocation2 + $0x98] sm:$0xf] %vm1076_vm4, %v6352_v55  ;;  %v741_v51 = vmul.f32 0.2, %v473_v36  ;;  %vm682_vm2 = vcmp.ge.f32.partialorder %v494_v46, 0.0 }
 0x100   :  { %1915 = vst [vmem:[#allocation2 + $0x88] sm:$0xf] %v1914_v57  ;;  %1918 = vst [vmem:[#allocation2 + $0x8c] sm:$0x1] %v1917_v48  ;;  %v1902_v52 = vsel %vm7424_vm13, %v1772_v49, %v1901_v59  ;;  %v1905_v1 = vsel %vm7079_vm3, %v1773_v50, %v1904_v41  ;;  %v746_v2 = vmul.f32 0.2, %v494_v46  ;;  %v486_v3 = vadd.f32 %v7365_v11, %v7506_v13  ;;  %v517_v6 = vpop.f32.mrf.mxu0 }
 0x101   :  { %1903 = vst [vmem:[#allocation2 + $0x78] sm:$0xf] %v1902_v52  ;;  %1906 = vst [vmem:[#allocation2 + $0x7c] sm:$0x1] %v1905_v1  ;;  %v497_v4 = vadd.f32 %v7511_v32, %v7365_v11  ;;  %v489_v5 = vadd.f32 %v7365_v11, %v7517_v44  ;;  %v805_v61 = vsel %vm677_vm1, %v473_v36, %v741_v51 }
 0x102   :  { %1649 = vst.msk [vmem:[#allocation2 + $0xb0] sm:$0xf] %vm1076_vm4, %v6355_v60  ;;  %v510_v14 = vadd.f32 %v7523_v58, %v7365_v11  ;;  %v502_v15 = vadd.f32 %v7365_v11, %v501_v12  ;;  %v513_v17 = vadd.f32 %v6718_v29, %v7365_v11  ;;  %v6353_v20 = vpack.c.bf16 %v805_v61, %v805_v61  ;;  %v6722_v18 = vpop.f32.mrf.mxu0 }
 0x103   :  { %v810_v19 = vsel %vm682_vm2, %v494_v46, %v746_v2  ;;  %vm680_vm5 = vcmp.ge.f32.partialorder %v486_v3, 0.0  ;;  %v744_v13 = vmul.f32 0.2, %v486_v3  ;;  %vm683_vm6 = vcmp.ge.f32.partialorder %v497_v4, 0.0 }
 0x104   :  { %v6358_v9 = vpack.c.bf16 %v810_v19, %v810_v19  ;;  %v747_v32 = vmul.f32 0.2, %v497_v4  ;;  %vm681_vm8 = vcmp.ge.f32.partialorder %v489_v5, 0.0  ;;  %1647 = vst.msk [vmem:[#allocation2 + $0xa0] sm:$0xf] %vm1076_vm4, %v6353_v20  ;;  %vm686_vm9 = vcmp.ge.f32.partialorder %v510_v14, 0.0  ;;  %v520_v58 = vpop.f32.mrf.mxu0 }
 0x105   :  { %v808_v44 = vsel %vm680_vm5, %v486_v3, %v744_v13  ;;  %v745_v26 = vmul.f32 0.2, %v489_v5  ;;  %v750_v25 = vmul.f32 0.2, %v510_v14  ;;  %vm684_vm10 = vcmp.ge.f32.partialorder %v502_v15, 0.0 }
 0x106   :  { %1652 = vst.msk [vmem:[#allocation2 + $0xc8] sm:$0xf] %vm1076_vm4, %v6358_v9  ;;  %v6356_v12 = vpack.c.bf16 %v808_v44, %v808_v44  ;;  %v811_v29 = vsel %vm683_vm6, %v497_v4, %v747_v32  ;;  %v748_v31 = vmul.f32 0.2, %v502_v15  ;;  %vm687_vm11 = vcmp.ge.f32.partialorder %v513_v17, 0.0  ;;  %v6725_v59 = vpop.f32.mrf.mxu0 }
 0x107   :  { %v6359_v45 = vpack.c.bf16 %v811_v29, %v811_v29  ;;  %v809_v36 = vsel %vm681_vm8, %v489_v5, %v745_v26  ;;  %v814_v37 = vsel %vm686_vm9, %v510_v14, %v750_v25  ;;  %v7562_v30 = vld [vmem:[#allocation2 + $0x98] sm:$0xf]  ;;  %v751_v49 = vmul.f32 0.2, %v513_v17  ;;  %v7584_v9 = vld [vmem:[#allocation2 + $0xa8] sm:$0xf] }
 0x108   :  { %1650 = vst.msk [vmem:[#allocation2 + $0xb8] sm:$0xf] %vm1076_vm4, %v6356_v12  ;;  %v6357_v41 = vpack.c.bf16 %v809_v36, %v809_v36  ;;  %v6362_v42 = vpack.c.bf16 %v814_v37, %v814_v37  ;;  %v812_v46 = vsel %vm684_vm10, %v502_v15, %v748_v31  ;;  %v505_v55 = vadd.f32 %v7365_v11, %v504_v47  ;;  %v7569_v48 = vpop.f32.mrf.mxu0  ;;  %v6818_v29 = vld [vmem:[%s9601_s3 + $0x178] sm:$0xff]  }
 0x109   :  { %1653 = vst.msk [vmem:[#allocation2 + $0xd0] sm:$0xf] %vm1076_vm4, %v6359_v45  ;;  %v6360_v50 = vpack.c.bf16 %v812_v46, %v812_v46  ;;  %v526_v56 = vadd.f32 %v6721_v16, %v7365_v11  ;;  %v518_v57 = vadd.f32 %v7365_v11, %v517_v6  ;;  %v815_v60 = vsel %vm687_vm11, %v513_v17, %v751_v49  ;;  %v6819_v36 = vld [vmem:[%s9601_s3 + $0x138] sm:$0xff]  }
 0x10a   :  { %1651 = vst.msk [vmem:[#allocation2 + $0xc0] sm:$0xf] %vm1076_vm4, %v6357_v41  ;;  %1656 = vst.msk [vmem:[#allocation2 + $0xf0] sm:$0xf] %vm1076_vm4, %v6362_v42  ;;  %v529_v52 = vadd.f32 %v6722_v18, %v7365_v11  ;;  %v2226_v1 = vshrl.u32 %v7562_v30, 16  ;;  %v2229_v51 = vshll.u32 %v7562_v30, 16  ;;  %v6363_v47 = vpack.c.bf16 %v815_v60, %v815_v60  ;;  %v6726_v2 = vpop.f32.mrf.mxu0  ;;  %6561 = vmatprep.subr.bf16.mxu0 %v6818_v29 }
 0x10b   :  { %1654 = vst.msk [vmem:[#allocation2 + $0xe0] sm:$0xf] %vm1076_vm4, %v6360_v50  ;;  %vm685_vm12 = vcmp.ge.f32.partialorder %v505_v55, 0.0  ;;  %v749_v16 = vmul.f32 0.2, %v505_v55  ;;  %vm690_vm14 = vcmp.ge.f32.partialorder %v526_v56, 0.0  ;;  %v521_v13 = vadd.f32 %v7365_v11, %v520_v58  ;;  %6562 = vmatpush3.bf16.msra.mxu0 %v6819_v36 }
 0x10c   :  { %v754_v3 = vmul.f32 0.2, %v526_v56  ;;  %vm688_vm15 = vcmp.ge.f32.partialorder %v518_v57, 0.0  ;;  %v752_v4 = vmul.f32 0.2, %v518_v57  ;;  %vm691_vm0 = vcmp.ge.f32.partialorder %v529_v52, 0.0  ;;  %v7579_v15 = vpop.f32.mrf.mxu0 }
 0x10d   :  { %1657 = vst.msk [vmem:[#allocation2 + $0xf8] sm:$0xf] %vm1076_vm4, %v6363_v47  ;;  %v813_v5 = vsel %vm685_vm12, %v505_v55, %v749_v16  ;;  %v755_v6 = vmul.f32 0.2, %v529_v52  ;;  %v2228_v61 = vrot.slane %v2226_v1, 4  ;;  %v2231_v14 = vrot.slane %v2229_v51, 5 }
 0x10e   :  { %v6361_v17 = vpack.c.bf16 %v813_v5, %v813_v5  ;;  %v818_v20 = vsel %vm690_vm14, %v526_v56, %v754_v3  ;;  %v816_v19 = vsel %vm688_vm15, %v518_v57, %v752_v4  ;;  %v7582_v18 = vld [vmem:[#allocation2 + $0xa0] sm:$0xf]  ;;  %v7586_v12 = vpop.f32.mrf.mxu0  ;;  %vm689_vm1 = vcmp.ge.f32.partialorder %v521_v13, 0.0  ;;  %v7608_v1 = vld [vmem:[#allocation2 + $0xb0] sm:$0xf] }
 0x10f   :  { %v6366_v32 = vpack.c.bf16 %v818_v20, %v818_v20  ;;  %v6364_v44 = vpack.c.bf16 %v816_v19, %v816_v19  ;;  %v819_v26 = vsel %vm691_vm0, %v529_v52, %v755_v6  ;;  %v2232_v25 = vor.u32 %v2231_v14, %v2228_v61  ;;  %v6939_v6 = vld [vmem:[#allocation2 + $0x90] sm:$0xf]  ;;  %v1564_v29 = vld [vmem:[#allocation2 + $0x134] sm:$0x1] }
 0x110   :  { %1655 = vst.msk [vmem:[#allocation2 + $0xe8] sm:$0xf] %vm1076_vm4, %v6361_v17  ;;  %v6367_v31 = vpack.c.bf16 %v819_v26, %v819_v26  ;;  %v753_v45 = vmul.f32 0.2, %v521_v13  ;;  %v542_v58 = vadd.f32 %v6725_v59, %v7365_v11  ;;  %v2240_v41 = vshrl.u32 %v7582_v18, 16  ;;  %v7601_v49 = vpop.f32.mrf.mxu0 }
 0x111   :  { %1660 = vst.msk [vmem:[#allocation2 + $0x110] sm:$0xf] %vm1076_vm4, %v6366_v32  ;;  %1658 = vst.msk [vmem:[#allocation2 + $0x100] sm:$0xf] %vm1076_vm4, %v6364_v44  ;;  %v2233_v37 = vrot.slane %v2232_v25, 4  ;;  %v2243_v42 = vshll.u32 %v7582_v18, 16  ;;  %v534_v61 = vadd.f32 %v7365_v11, %v7569_v48  ;;  %v545_v8 = vadd.f32 %v6726_v2, %v7365_v11 }
 0x112   :  { %v2254_v46 = vshrl.u32 %v7584_v9, 16  ;;  %1661 = vst.msk [vmem:[#allocation2 + $0x118] sm:$0xf] %vm1076_vm4, %v6367_v31  ;;  %v817_v59 = vsel %vm689_vm1, %v521_v13, %v753_v45  ;;  %vm694_vm2 = vcmp.ge.f32.partialorder %v542_v58, 0.0  ;;  %v758_v50 = vmul.f32 0.2, %v542_v58  ;;  %v7619_v14 = vpop.f32.mrf.mxu0 }
 0x113   :  { %v2257_v55 = vshll.u32 %v7584_v9, 16  ;;  %v2238_v56 = vsel %vm7371_vm7, %v2233_v37, %v7375_v23  ;;  %v6365_v57 = vpack.c.bf16 %v817_v59, %v817_v59  ;;  %v2242_v60 = vrot.slane %v2240_v41, 4  ;;  %v1561_v25 = vld [vmem:[#allocation2 + $0x130] sm:$0xf] }
 0x114   :  { %v2245_v52 = vrot.slane %v2243_v42, 5  ;;  %v6165_v51 = vcombine.low %v2224_v27, %v2238_v56  ;;  %v822_v47 = vsel %vm694_vm2, %v542_v58, %v758_v50  ;;  %v2256_v16 = vrot.slane %v2254_v46, 4  ;;  %v7640_v56 = vld [vmem:[#allocation2 + $0xc0] sm:$0xf] }
 0x115   :  { %v2259_v3 = vrot.slane %v2257_v55, 5  ;;  %1659 = vst.msk [vmem:[#allocation2 + $0x108] sm:$0xf] %vm1076_vm4, %v6365_v57  ;;  %v6370_v4 = vpack.c.bf16 %v822_v47, %v822_v47  ;;  %v6149_v23 = vcombine.low %v6939_v6, %v7562_v30  ;;  %v6150_v27 = vcombine.low %v7582_v18, %v7584_v9  ;;  %v7626_v30 = vld [vmem:[#allocation2 + $0xb8] sm:$0xf]  ;;  %v7632_v9 = vpop.f32.mrf.mxu0 }
 0x116   :  { %v2246_v5 = vor.u32 %v2245_v52, %v2242_v60  ;;  %4117 = vrot.lane.b32.xlu0 %v6165_v51, %s6944_s14  ;;  %v2268_v17 = vshrl.u32 %v7608_v1, 16  ;;  %vm692_vm5 = vcmp.ge.f32.partialorder %v534_v61, 0.0  ;;  %v756_v32 = vmul.f32 0.2, %v534_v61  ;;  %v1549_v47 = vld [vmem:[#allocation2 + $0x120] sm:$0xf] }
 0x117   :  { %v2260_v7 = vor.u32 %v2259_v3, %v2256_v16  ;;  %v1402_v20 = vshrl.u32 %v6370_v4, 16  ;;  %v1405_v19 = vshll.u32 %v6370_v4, 16  ;;  %vm695_vm6 = vcmp.ge.f32.partialorder %v545_v8, 0.0  ;;  %v7647_v51 = vpop.f32.mrf.mxu0  ;;  %v1552_v16 = vld [vmem:[#allocation2 + $0x124] sm:$0x1] }
 0x118   :  { %v2247_v13 = vrot.slane %v2246_v5, 4  ;;  %v759_v44 = vmul.f32 0.2, %v545_v8  ;;  %v2270_v2 = vrot.slane %v2268_v17, 4  ;;  %v2271_v18 = vshll.u32 %v7608_v1, 16 }
 0x119   :  { %v2261_v48 = vrot.slane %v2260_v7, 4  ;;  %v1404_v26 = vrot.slane %v1402_v20, 7  ;;  %v820_v45 = vsel %vm692_vm5, %v534_v61, %v756_v32  ;;  %v2282_v36 = vshrl.u32 %v7626_v30, 16  ;;  %v1567_v61 = vld [vmem:[#allocation2 + $0x138] sm:$0xf] }
 0x11a   :  { %v2252_v11 = vsel %vm7371_vm7, %v2247_v13, %v7381_v28  ;;  %4053 = vrot.lane.b32.xlu0 %v6149_v23, %s6944_s14  ;;  %v823_v58 = vsel %vm695_vm6, %v545_v8, %v759_v44  ;;  %v6368_v42 = vpack.c.bf16 %v820_v45, %v820_v45  ;;  %v2273_v59 = vrot.slane %v2271_v18, 5  ;;  %v1570_v7 = vld [vmem:[#allocation2 + $0x13c] sm:$0x1]  ;;  %v7652_v8 = vld [vmem:[%s9600_s2] ss:$0 sm:$0xff]  ;;  %v7665_v18 = vpop.f32.mrf.mxu0 }
 0x11b   :  { %v2266_v31 = vsel %vm7371_vm7, %v2261_v48, %v7385_v33  ;;  %v1407_v37 = vor.u32 %v1405_v19, %v1404_v26  ;;  %v1408_v41 = vrot.slane %v1404_v26, 4  ;;  %v6371_v46 = vpack.c.bf16 %v823_v58, %v823_v58  ;;  %v6823_v13 = vld [vmem:[%s9601_s3 + $0x78] sm:$0xff]  }
 0x11c   :  { %v6166_v28 = vcombine.low %v2252_v11, %v2266_v31  ;;  %v2284_v50 = vrot.slane %v2282_v36, 4  ;;  %v2285_v55 = vshll.u32 %v7626_v30, 16  ;;  %v1386_v60 = vshrl.u32 %v6368_v42, 16  ;;  %6433 = vmatprep.subr.bf16.mxu1 %v6823_v13  ;;  %v6824_v58 = vld [vmem:[%s9601_s3 + $0x38] sm:$0xff]   ;;  %v6826_v36 = vld [vmem:[%s9601_s3 + $0x70] sm:$0xff]  }
 0x11d   :  { %v1562_v33 = vsel %vm7424_vm13, %v1407_v37, %v1561_v25  ;;  %v1565_v57 = vsel %vm7079_vm3, %v1408_v41, %v1564_v29  ;;  %v1389_v52 = vshll.u32 %v6368_v42, 16  ;;  %v1410_v3 = vshrl.u32 %v6371_v46, 16  ;;  %v7670_v29 = vld [vmem:[#allocation2 + $0xc8] sm:$0xf]  ;;  %6434 = vmatpush3.bf16.msra.mxu1 %v6824_v58 }
 0x11e   :  { %4119 = vrot.lane.b32.xlu1 %v6166_v28, %s6944_s14  ;;  %1563 = vst [vmem:[#allocation2 + $0x130] sm:$0xf] %v1562_v33  ;;  %1566 = vst [vmem:[#allocation2 + $0x134] sm:$0x1] %v1565_v57  ;;  %v1413_v4 = vshll.u32 %v6371_v46, 16  ;;  %v2274_v5 = vor.u32 %v2273_v59, %v2270_v2  ;;  %v2287_v6 = vrot.slane %v2285_v55, 5  ;;  %v537_v17 = vadd.f32 %v7652_v8, %v7579_v15  ;;  %v7694_v33 = vpop.f32.mrf.mxu0 }
 0x11f   :  { %v1388_v23 = vrot.slane %v1386_v60, 7  ;;  %v558_v20 = vadd.f32 %v7652_v8, %v7586_v12  ;;  %v6151_v19 = vcombine.low %v7608_v1, %v7626_v30  ;;  %v1412_v48 = vrot.slane %v1410_v3, 7  ;;  %6435 = vmatprep.subr.bf16.mxu1 %v6826_v36  ;;  %v6834_v36 = vld [vmem:[%s9601_s3 + $0x60] sm:$0xff]  }
 0x120   :  { %v2275_v32 = vrot.slane %v2274_v5, 4  ;;  %v2288_v44 = vor.u32 %v2287_v6, %v2284_v50  ;;  %v2296_v26 = vshrl.u32 %v7640_v56, 16  ;;  %vm693_vm8 = vcmp.ge.f32.partialorder %v537_v17, 0.0  ;;  %v6828_v5 = vld [vmem:[%s9601_s3 + $0x30] sm:$0xff]  }
 0x121   :  { %v1391_v11 = vor.u32 %v1389_v52, %v1388_v23  ;;  %v1392_v2 = vrot.slane %v1388_v23, 4  ;;  %v757_v15 = vmul.f32 0.2, %v537_v17  ;;  %v1415_v12 = vor.u32 %v1413_v4, %v1412_v48  ;;  %v6829_v6 = vld [vmem:[%s9601_s3 + $0x130] sm:$0xff]   ;;  %v6831_v23 = vld [vmem:[%s9601_s3 + $0x68] sm:$0xff]   ;;  %6436 = vmatpush3.bf16.msra.mxu1 %v6828_v5 }
 0x122   :  { %4055 = vrot.lane.b32.xlu1 %v6150_v27, %s6944_s14  ;;  %v1416_v1 = vrot.slane %v1412_v48, 4  ;;  %v2280_v30 = vsel %vm7371_vm7, %v2275_v32, %v7392_v38  ;;  %v2289_v25 = vrot.slane %v2288_v44, 4  ;;  %vm698_vm9 = vcmp.ge.f32.partialorder %v558_v20, 0.0  ;;  %v6827_v38 = vld [vmem:[%s9601_s3 + $0x170] sm:$0xff]   ;;  %v7713_v48 = vpop.f32.mrf.mxu0  ;;  %6437 = vmatprep.subr.bf16.mxu1 %v6831_v23 }
 0x123   :  { %v1550_v31 = vsel %vm7424_vm13, %v1391_v11, %v1549_v47  ;;  %v1553_v27 = vsel %vm7079_vm3, %v1392_v2, %v1552_v16  ;;  %v821_v45 = vsel %vm693_vm8, %v537_v17, %v757_v15  ;;  %v1568_v37 = vsel %vm7424_vm13, %v1415_v12, %v1567_v61  ;;  %6563 = vmatprep.subr.bf16.mxu0 %v6827_v38  ;;  %v7715_v2 = vld [vmem:[#allocation2 + $0xe0] sm:$0xf]  ;;  %v1585_v38 = vld [vmem:[#allocation2 + $0x150] sm:$0xf] }
 0x124   :  { %1551 = vst [vmem:[#allocation2 + $0x120] sm:$0xf] %v1550_v31  ;;  %1554 = vst [vmem:[#allocation2 + $0x124] sm:$0x1] %v1553_v27  ;;  %v1571_v41 = vsel %vm7079_vm3, %v1416_v1, %v1570_v7  ;;  %v2294_v28 = vsel %vm7371_vm7, %v2289_v25, %v7394_v39  ;;  %v6369_v42 = vpack.c.bf16 %v821_v45, %v821_v45  ;;  %v762_v59 = vmul.f32 0.2, %v558_v20 }
 0x125   :  { %1569 = vst [vmem:[#allocation2 + $0x138] sm:$0xf] %v1568_v37  ;;  %1572 = vst [vmem:[#allocation2 + $0x13c] sm:$0x1] %v1571_v41  ;;  %v6167_v46 = vcombine.low %v2280_v30, %v2294_v28  ;;  %v2298_v50 = vrot.slane %v2296_v26, 4  ;;  %v2299_v55 = vshll.u32 %v7640_v56, 16  ;;  %v550_v3 = vadd.f32 %v7652_v8, %v7601_v49  ;;  %6564 = vmatpush3.bf16.msra.mxu0 %v6829_v6 }
 0x126   :  { %4057 = vrot.lane.b32.xlu1 %v6151_v19, %s6944_s14  ;;  %v1394_v57 = vshrl.u32 %v6369_v42, 16  ;;  %v1397_v60 = vshll.u32 %v6369_v42, 16  ;;  %v2310_v52 = vshrl.u32 %v7670_v29, 16  ;;  %v2313_v47 = vshll.u32 %v7670_v29, 16  ;;  %v1555_v7 = vld [vmem:[#allocation2 + $0x128] sm:$0xf] }
 0x127   :  { %4121 = vrot.lane.b32.xlu0 %v6167_v46, %s6944_s14  ;;  %v826_v39 = vsel %vm698_vm9, %v558_v20, %v762_v59  ;;  %v2301_v16 = vrot.slane %v2299_v55, 5  ;;  %v561_v4 = vadd.f32 %v7652_v8, %v7619_v14  ;;  %v1558_v19 = vld [vmem:[#allocation2 + $0x12c] sm:$0x1]  ;;  %vm696_vm10 = vcmp.ge.f32.partialorder %v550_v3, 0.0  ;;  %v1588_v37 = vld [vmem:[#allocation2 + $0x154] sm:$0x1]  ;;  %v7733_v59 = vpop.f32.mrf.mxu0 }
 0x128   :  { %v1396_v61 = vrot.slane %v1394_v57, 7  ;;  %v6374_v17 = vpack.c.bf16 %v826_v39, %v826_v39  ;;  %v2312_v20 = vrot.slane %v2310_v52, 4  ;;  %v2315_v49 = vrot.slane %v2313_v47, 5  ;;  %v6832_v25 = vld [vmem:[%s9601_s3 + $0x28] sm:$0xff]   ;;  %v1573_v47 = vld [vmem:[#allocation2 + $0x140] sm:$0xf] }
 0x129   :  { %v2302_v13 = vor.u32 %v2301_v16, %v2298_v50  ;;  %v760_v14 = vmul.f32 0.2, %v550_v3  ;;  %vm699_vm11 = vcmp.ge.f32.partialorder %v561_v4, 0.0  ;;  %v763_v30 = vmul.f32 0.2, %v561_v4  ;;  %6438 = vmatpush3.bf16.msra.mxu1 %v6832_v25 }
 0x12a   :  { %v1399_v32 = vor.u32 %v1397_v60, %v1396_v61  ;;  %v1400_v44 = vrot.slane %v1396_v61, 4  ;;  %v1434_v26 = vshrl.u32 %v6374_v17, 16  ;;  %v1437_v11 = vshll.u32 %v6374_v17, 16  ;;  %6439 = vmatprep.subr.bf16.mxu1 %v6834_v36  ;;  %v7745_v6 = vld [vmem:[#allocation2 + $0xe8] sm:$0xf]  ;;  %v7747_v17 = vpop.f32.mrf.mxu0 }
 0x12b   :  { %v2303_v15 = vrot.slane %v2302_v13, 4  ;;  %v2316_v12 = vor.u32 %v2315_v49, %v2312_v20  ;;  %v824_v1 = vsel %vm696_vm10, %v550_v3, %v760_v14  ;;  %v827_v42 = vsel %vm699_vm11, %v561_v4, %v763_v30  ;;  %v1594_v13 = vld [vmem:[#allocation2 + $0x15c] sm:$0x1]  ;;  %v6835_v30 = vld [vmem:[%s9601_s3 + $0x20] sm:$0xff]  }
 0x12c   :  { %v1556_v31 = vsel %vm7424_vm13, %v1399_v32, %v1555_v7  ;;  %v1559_v27 = vsel %vm7079_vm3, %v1400_v44, %v1558_v19  ;;  %v1436_v45 = vrot.slane %v1434_v26, 7  ;;  %v6372_v58 = vpack.c.bf16 %v824_v1, %v824_v1  ;;  %v1591_v19 = vld [vmem:[#allocation2 + $0x158] sm:$0xf] }
 0x12d   :  { %1557 = vst [vmem:[#allocation2 + $0x128] sm:$0xf] %v1556_v31  ;;  %1560 = vst [vmem:[#allocation2 + $0x12c] sm:$0x1] %v1559_v27  ;;  %v2308_v41 = vsel %vm7371_vm7, %v2303_v15, %v7396_v40  ;;  %v2317_v28 = vrot.slane %v2316_v12, 4  ;;  %v6152_v46 = vcombine.low %v7640_v56, %v7670_v29  ;;  %v6375_v39 = vpack.c.bf16 %v827_v42, %v827_v42 }
 0x12e   :  { %v1439_v50 = vor.u32 %v1437_v11, %v1436_v45  ;;  %v1440_v55 = vrot.slane %v1436_v45, 4  ;;  %v1418_v57 = vshrl.u32 %v6372_v58, 16  ;;  %v1421_v60 = vshll.u32 %v6372_v58, 16  ;;  %v1576_v40 = vld [vmem:[#allocation2 + $0x144] sm:$0x1]  ;;  %v7769_v58 = vpop.f32.mrf.mxu0  ;;  %6440 = vmatpush3.bf16.msra.mxu1 %v6835_v30 }
 0x12f   :  { %v2322_v52 = vsel %vm7371_vm7, %v2317_v28, %v7398_v43  ;;  %4059 = vrot.lane.b32.xlu1 %v6152_v46, %s6944_s14  ;;  %v2338_v16 = vshrl.u32 %v7715_v2, 16  ;;  %v2341_v56 = vshll.u32 %v7715_v2, 16  ;;  %v1442_v43 = vshrl.u32 %v6375_v39, 16  ;;  %v6941_v11 = vld [vmem:[#allocation2 + $0xd8] sm:$0xf] }
 0x130   :  { %v1586_v29 = vsel %vm7424_vm13, %v1439_v50, %v1585_v38  ;;  %v1589_v3 = vsel %vm7079_vm3, %v1440_v55, %v1588_v37  ;;  %v6168_v4 = vcombine.low %v2308_v41, %v2322_v52  ;;  %v1420_v5 = vrot.slane %v1418_v57, 7  ;;  %v7755_v12 = vld [vmem:[#allocation2 + $0xf0] sm:$0xf]  ;;  %v6838_v55 = vld [vmem:[%s9601_s3 + $0x18] sm:$0xff]  }
 0x131   :  { %1587 = vst [vmem:[#allocation2 + $0x150] sm:$0xf] %v1586_v29  ;;  %1590 = vst [vmem:[#allocation2 + $0x154] sm:$0x1] %v1589_v3  ;;  %v1445_v23 = vshll.u32 %v6375_v39, 16  ;;  %v2340_v61 = vrot.slane %v2338_v16, 4  ;;  %v553_v14 = vadd.f32 %v7652_v8, %v7632_v9  ;;  %v574_v32 = vadd.f32 %v7652_v8, %v7647_v51  ;;  %v7796_v3 = vpop.f32.mrf.mxu0 }
 0x132   :  { %v2343_v7 = vrot.slane %v2341_v56, 5  ;;  %4123 = vrot.lane.b32.xlu0 %v6168_v4, %s6944_s14  ;;  %v1423_v20 = vor.u32 %v1421_v60, %v1420_v5  ;;  %v1424_v49 = vrot.slane %v1420_v5, 4  ;;  %v1444_v44 = vrot.slane %v1442_v43, 7  ;;  %v6837_v9 = vld [vmem:[%s9601_s3 + $0x58] sm:$0xff]   ;;  %v6840_v57 = vld [vmem:[%s9601_s3 + $0x50] sm:$0xff]  }
 0x133   :  { %v6153_v15 = vcombine.low %v6941_v11, %v7715_v2  ;;  %v2352_v1 = vshrl.u32 %v7745_v6, 16  ;;  %vm697_vm12 = vcmp.ge.f32.partialorder %v553_v14, 0.0  ;;  %v761_v2 = vmul.f32 0.2, %v553_v14  ;;  %6441 = vmatprep.subr.bf16.mxu1 %v6837_v9  ;;  %v7805_v11 = vpop.f32.mrf.mxu0 }
 0x134   :  { %v2344_v26 = vor.u32 %v2343_v7, %v2340_v61  ;;  %v1574_v51 = vsel %vm7424_vm13, %v1423_v20, %v1573_v47  ;;  %v1577_v25 = vsel %vm7079_vm3, %v1424_v49, %v1576_v40  ;;  %v1447_v31 = vor.u32 %v1445_v23, %v1444_v44  ;;  %v6841_v40 = vld [vmem:[%s9601_s3 + $0x168] sm:$0xff]   ;;  %6442 = vmatpush3.bf16.msra.mxu1 %v6838_v55  ;;  %v7803_v49 = vld [vmem:[#allocation2 + $0xf8] sm:$0xf] }
 0x135   :  { %1575 = vst [vmem:[#allocation2 + $0x140] sm:$0xf] %v1574_v51  ;;  %1578 = vst [vmem:[#allocation2 + $0x144] sm:$0x1] %v1577_v25  ;;  %v1448_v27 = vrot.slane %v1444_v44, 4  ;;  %vm702_vm14 = vcmp.ge.f32.partialorder %v574_v32, 0.0  ;;  %4061 = vrot.lane.b32.xlu1 %v6153_v15, %s6944_s14  ;;  %v825_v36 = vsel %vm697_vm12, %v553_v14, %v761_v2  ;;  %v566_v5 = vadd.f32 %v7652_v8, %v7665_v18  ;;  %v7835_v55 = vpop.f32.mrf.mxu0 }
 0x136   :  { %v2345_v45 = vrot.slane %v2344_v26, 4  ;;  %v766_v38 = vmul.f32 0.2, %v574_v32  ;;  %v2354_v37 = vrot.slane %v2352_v1, 4  ;;  %v2355_v41 = vshll.u32 %v7745_v6, 16  ;;  %6443 = vmatprep.subr.bf16.mxu1 %v6840_v57  ;;  %6565 = vmatprep.subr.bf16.mxu0 %v6841_v40  ;;  %v6843_v15 = vld [vmem:[%s9601_s3 + $0x128] sm:$0xff]  }
 0x137   :  { %v1592_v28 = vsel %vm7424_vm13, %v1447_v31, %v1591_v19  ;;  %v1595_v42 = vsel %vm7079_vm3, %v1448_v27, %v1594_v13  ;;  %v6373_v50 = vpack.c.bf16 %v825_v36, %v825_v36  ;;  %v2366_v47 = vshrl.u32 %v7755_v12, 16  ;;  %v1609_v19 = vld [vmem:[#allocation2 + $0x178] sm:$0xf]  ;;  %v1612_v1 = vld [vmem:[#allocation2 + $0x17c] sm:$0x1]  ;;  %6566 = vmatpush3.bf16.msra.mxu0 %v6843_v15  ;;  %v6845_v36 = vld [vmem:[%s9601_s3 + $0x48] sm:$0xff]  }
 0x138   :  { %v2350_v46 = vsel %vm7371_vm7, %v2345_v45, %v7407_v54  ;;  %1593 = vst [vmem:[#allocation2 + $0x158] sm:$0xf] %v1592_v28  ;;  %1596 = vst [vmem:[#allocation2 + $0x15c] sm:$0x1] %v1595_v42  ;;  %v830_v52 = vsel %vm702_vm14, %v574_v32, %v766_v38  ;;  %v2357_v54 = vrot.slane %v2355_v41, 5  ;;  %v2369_v29 = vshll.u32 %v7755_v12, 16 }
 0x139   :  { %v6169_v60 = vcombine.low %v2336_v53, %v2350_v46  ;;  %v1426_v39 = vshrl.u32 %v6373_v50, 16  ;;  %v1429_v16 = vshll.u32 %v6373_v50, 16  ;;  %v6378_v56 = vpack.c.bf16 %v830_v52, %v830_v52  ;;  %v7832_v46 = vld [vmem:[#allocation2 + $0x100] sm:$0xf]  ;;  %v6846_v57 = vld [vmem:[%s9601_s3 + $0x8] sm:$0xff]  }
 0x13a   :  { %v2358_v53 = vor.u32 %v2357_v54, %v2354_v37  ;;  %v2368_v4 = vrot.slane %v2366_v47, 4  ;;  %v577_v43 = vadd.f32 %v7652_v8, %v7694_v33  ;;  %v2371_v20 = vrot.slane %v2369_v29, 5  ;;  %v6842_v33 = vld [vmem:[%s9601_s3 + $0x10] sm:$0xff]   ;;  %v6848_v40 = vld [vmem:[%s9601_s3 + $0x40] sm:$0xff]  }
 0x13b   :  { %4125 = vrot.lane.b32.xlu0 %v6169_v60, %s6944_s14  ;;  %v1428_v23 = vrot.slane %v1426_v39, 7  ;;  %v1466_v61 = vshrl.u32 %v6378_v56, 16  ;;  %v1469_v7 = vshll.u32 %v6378_v56, 16  ;;  %vm700_vm15 = vcmp.ge.f32.partialorder %v566_v5, 0.0  ;;  %6444 = vmatpush3.bf16.msra.mxu1 %v6842_v33  ;;  %v1265_v37 = vld [vmem:[#allocation2 + $0x174] sm:$0x1] }
 0x13c   :  { %v2359_v13 = vrot.slane %v2358_v53, 4  ;;  %v764_v14 = vmul.f32 0.2, %v566_v5  ;;  %vm703_vm0 = vcmp.ge.f32.partialorder %v577_v43, 0.0  ;;  %v2372_v18 = vor.u32 %v2371_v20, %v2368_v4  ;;  %6445 = vmatprep.subr.bf16.mxu1 %v6845_v36  ;;  %v1615_v53 = vld [vmem:[#allocation2 + $0x180] sm:$0xf] }
 0x13d   :  { %v1431_v32 = vor.u32 %v1429_v16, %v1428_v23  ;;  %v1432_v44 = vrot.slane %v1428_v23, 4  ;;  %v1468_v26 = vrot.slane %v1466_v61, 7  ;;  %v767_v51 = vmul.f32 0.2, %v577_v43  ;;  %v1597_v16 = vld [vmem:[#allocation2 + $0x168] sm:$0xf] }
 0x13e   :  { %v2364_v30 = vsel %vm7371_vm7, %v2359_v13, %v7412_v62  ;;  %v828_v9 = vsel %vm700_vm15, %v566_v5, %v764_v14  ;;  %v6154_v25 = vcombine.low %v7745_v6, %v7755_v12  ;;  %v2373_v62 = vrot.slane %v2372_v18, 4  ;;  %v1618_v61 = vld [vmem:[#allocation2 + $0x184] sm:$0x1]  ;;  %v7855_v13 = vpop.f32.mrf.mxu0 }
 0x13f   :  { %v1580_v2 = vsel %vm7424_vm13, %v1431_v32, %v1579_v34  ;;  %v1583_v31 = vsel %vm7079_vm3, %v1432_v44, %v1582_v35  ;;  %v1471_v27 = vor.u32 %v1469_v7, %v1468_v26  ;;  %v1472_v45 = vrot.slane %v1468_v26, 4  ;;  %6446 = vmatpush3.bf16.msra.mxu1 %v6846_v57 }
 0x140   :  { %1581 = vst [vmem:[#allocation2 + $0x148] sm:$0xf] %v1580_v2  ;;  %1584 = vst [vmem:[#allocation2 + $0x14c] sm:$0x1] %v1583_v31  ;;  %v6376_v38 = vpack.c.bf16 %v828_v9, %v828_v9  ;;  %v831_v6 = vsel %vm703_vm0, %v577_v43, %v767_v51  ;;  %4063 = vrot.lane.b32.xlu1 %v6154_v25, %s6944_s14  ;;  %v2380_v12 = vshrl.u32 %v7803_v49, 16  ;;  %v2383_v50 = vshll.u32 %v7803_v49, 16  ;;  %v7872_v36 = vpop.f32.mrf.mxu0 }
 0x141   :  { %v1610_v41 = vsel %vm7424_vm13, %v1471_v27, %v1609_v19  ;;  %v1613_v28 = vsel %vm7079_vm3, %v1472_v45, %v1612_v1  ;;  %v6379_v42 = vpack.c.bf16 %v831_v6, %v831_v6  ;;  %v2378_v60 = vsel %vm7371_vm7, %v2373_v62, %v7414_v63  ;;  %6447 = vmatprep.subr.bf16.mxu1 %v6848_v40  ;;  %v1600_v43 = vld [vmem:[#allocation2 + $0x16c] sm:$0x1]  ;;  %v7857_v1 = vld [vmem:[#allocation2 + $0x110] sm:$0xf]  ;;  %v7863_v2 = vld [vmem:[#allocation2 + $0x108] sm:$0xf] }
 0x142   :  { %1611 = vst [vmem:[#allocation2 + $0x178] sm:$0xf] %v1610_v41  ;;  %1614 = vst [vmem:[#allocation2 + $0x17c] sm:$0x1] %v1613_v28  ;;  %v1450_v52 = vshrl.u32 %v6376_v38, 16  ;;  %v1453_v54 = vshll.u32 %v6376_v38, 16  ;;  %v6170_v39 = vcombine.low %v2364_v30, %v2378_v60  ;;  %v569_v63 = vadd.f32 %v7652_v8, %v7713_v48 }
 0x143   :  { %v2382_v47 = vrot.slane %v2380_v12, 4  ;;  %v1474_v56 = vshrl.u32 %v6379_v42, 16  ;;  %v1477_v29 = vshll.u32 %v6379_v42, 16  ;;  %v2385_v34 = vrot.slane %v2383_v50, 5  ;;  %v1285_v48 = vld [vmem:[#allocation2 + $0x19c] sm:$0x1] }
 0x144   :  { %v1452_v35 = vrot.slane %v1450_v52, 7  ;;  %v2394_v4 = vshrl.u32 %v7832_v46, 16  ;;  %v2397_v5 = vshll.u32 %v7832_v46, 16  ;;  %4127 = vrot.lane.b32.xlu0 %v6170_v39, %s6944_s14  ;;  %v1266_v20 = vsel %vm7079_vm3, 0, %v1265_v37  ;;  %v2209_v30 = vld [vmem:[#allocation2 + $0x10c] sm:$0x1] }
 0x145   :  { %v1476_v23 = vrot.slane %v1474_v56, 7  ;;  %v2386_v7 = vor.u32 %v2385_v34, %v2382_v47  ;;  %v590_v19 = vadd.f32 %v7652_v8, %v7733_v59  ;;  %1267 = vst [vmem:[#allocation2 + $0x174] sm:$0x1] %v1266_v20  ;;  %vm701_vm1 = vcmp.ge.f32.partialorder %v569_v63, 0.0  ;;  %v6849_v37 = vld [vmem:[%s9601_s3] sm:$0xff]   ;;  %v7893_v56 = vpop.f32.mrf.mxu0 }
 0x146   :  { %v1455_v14 = vor.u32 %v1453_v54, %v1452_v35  ;;  %v1456_v32 = vrot.slane %v1452_v35, 4  ;;  %v2396_v44 = vrot.slane %v2394_v4, 4  ;;  %v2399_v26 = vrot.slane %v2397_v5, 5  ;;  %6448 = vmatpush3.bf16.msra.mxu1 %v6849_v37  ;;  %v1603_v4 = vld [vmem:[#allocation2 + $0x170] sm:$0xf] }
 0x147   :  { %v1479_v18 = vor.u32 %v1477_v29, %v1476_v23  ;;  %v1480_v33 = vrot.slane %v1476_v23, 4  ;;  %v2387_v15 = vrot.slane %v2386_v7, 4  ;;  %v765_v25 = vmul.f32 0.2, %v569_v63 }
 0x148   :  { %v1598_v9 = vsel %vm7424_vm13, %v1455_v14, %v1597_v16  ;;  %v1601_v59 = vsel %vm7079_vm3, %v1456_v32, %v1600_v43  ;;  %v2400_v51 = vor.u32 %v2399_v26, %v2396_v44  ;;  %vm706_vm2 = vcmp.ge.f32.partialorder %v590_v19, 0.0  ;;  %v1289_v32 = vld [vmem:[#allocation2 + $0x1a4] sm:$0x1] }
 0x149   :  { %1599 = vst [vmem:[#allocation2 + $0x168] sm:$0xf] %v1598_v9  ;;  %1602 = vst [vmem:[#allocation2 + $0x16c] sm:$0x1] %v1601_v59  ;;  %v1616_v31 = vsel %vm7424_vm13, %v1479_v18, %v1615_v53  ;;  %v1619_v27 = vsel %vm7079_vm3, %v1480_v33, %v1618_v61  ;;  %v2392_v45 = vsel %vm7371_vm7, %v2387_v15, %v7416_v0  ;;  %v770_v6 = vmul.f32 0.2, %v590_v19  ;;  %v7903_v33 = vpop.f32.mrf.mxu0 }
 0x14a   :  { %1617 = vst [vmem:[#allocation2 + $0x180] sm:$0xf] %v1616_v31  ;;  %1620 = vst [vmem:[#allocation2 + $0x184] sm:$0x1] %v1619_v27  ;;  %v2401_v62 = vrot.slane %v2400_v51, 4  ;;  %v829_v38 = vsel %vm701_vm1, %v569_v63, %v765_v25  ;;  %v1286_v12 = vsel %vm7079_vm3, 0, %v1285_v48  ;;  %v6155_v28 = vcombine.low %v7803_v49, %v7832_v46 }
 0x14b   :  { %v6851_v0 = vld [vmem:[%s9601_s3 + $0xf8] sm:$0xff]   ;;  %v6377_v41 = vpack.c.bf16 %v829_v38, %v829_v38  ;;  %1287 = vst [vmem:[#allocation2 + $0x19c] sm:$0x1] %v1286_v12  ;;  %v2408_v42 = vshrl.u32 %v7863_v2, 16  ;;  %v2411_v50 = vshll.u32 %v7863_v2, 16  ;;  %v834_v60 = vsel %vm706_vm2, %v590_v19, %v770_v6 }
 0x14c   :  { %v2406_v57 = vsel %vm7371_vm7, %v2401_v62, %v7419_v10  ;;  %v2417_v52 = vshll.u32 %v2209_v30, 16  ;;  %v2422_v54 = vshrl.u32 %v7857_v1, 16  ;;  %v6382_v16 = vpack.c.bf16 %v834_v60, %v834_v60  ;;  %4065 = vrot.lane.b32.xlu1 %v6155_v28, %s6944_s14  ;;  %v2210_v49 = vld [vmem:[#allocation2 + $0x114] sm:$0x1]  ;;  %v1277_v46 = vld [vmem:[#allocation2 + $0x18c] sm:$0x1]  ;;  %6497 = vmatprep.subr.bf16.mxu1 %v6851_v0  ;;  %v7920_v0 = vpop.f32.mrf.mxu0 }
 0x14d   :  { %v6171_v47 = vcombine.low %v2392_v45, %v2406_v57  ;;  %v1458_v40 = vshrl.u32 %v6377_v41, 16  ;;  %v1461_v39 = vshll.u32 %v6377_v41, 16  ;;  %v2410_v29 = vrot.slane %v2408_v42, 4  ;;  %v1606_v23 = vld [vmem:[#allocation2 + $0x174] sm:$0x1]  ;;  %v6855_v41 = vld [vmem:[%s9601_s3 + $0x160] sm:$0xff]  }
 0x14e   :  { %v2413_v34 = vrot.slane %v2411_v50, 5  ;;  %v7895_v10 = vrot.slane %v2417_v52, 5  ;;  %v2424_v35 = vrot.slane %v2422_v54, 4  ;;  %v1498_v5 = vshrl.u32 %v6382_v16, 16  ;;  %v1633_v61 = vld [vmem:[#allocation2 + $0x198] sm:$0xf]  ;;  %6567 = vmatprep.subr.bf16.mxu0 %v6855_v41 }
 0x14f   :  { %4129 = vrot.lane.b32.xlu0 %v6171_v47, %s6944_s14  ;;  %v1460_v53 = vrot.slane %v1458_v40, 7  ;;  %v1501_v63 = vshll.u32 %v6382_v16, 16  ;;  %v2425_v43 = vshll.u32 %v7857_v1, 16  ;;  %v2431_v20 = vshll.u32 %v2210_v49, 16  ;;  %v1281_v51 = vld [vmem:[#allocation2 + $0x194] sm:$0x1] }
 0x150   :  { %v2414_v7 = vor.u32 %v2413_v34, %v2410_v29  ;;  %v582_v19 = vadd.f32 %v7652_v8, %v7747_v17  ;;  %v1278_v14 = vsel %vm7079_vm3, 0, %v1277_v46  ;;  %v1500_v48 = vrot.slane %v1498_v5, 7  ;;  %v6856_v60 = vld [vmem:[%s9601_s3 + $0x120] sm:$0xff]   ;;  %v616_v46 = vpop.f32.mrf.mxu0 }
 0x151   :  { %v1463_v44 = vor.u32 %v1461_v39, %v1460_v53  ;;  %v1464_v26 = vrot.slane %v1460_v53, 4  ;;  %v2427_v18 = vrot.slane %v2425_v43, 5  ;;  %1279 = vst [vmem:[#allocation2 + $0x18c] sm:$0x1] %v1278_v14  ;;  %v2433_v9 = vrot.slane %v2431_v20, 5  ;;  %6568 = vmatpush3.bf16.msra.mxu0 %v6856_v60 }
 0x152   :  { %v1636_v15 = vld [vmem:[#allocation2 + $0x19c] sm:$0x1]  ;;  %v2415_v30 = vrot.slane %v2414_v7, 4  ;;  %vm704_vm5 = vcmp.ge.f32.partialorder %v582_v19, 0.0  ;;  %v593_v59 = vadd.f32 %v7652_v8, %v7769_v58  ;;  %v1503_v31 = vor.u32 %v1501_v63, %v1500_v48  ;;  %v1621_v53 = vld [vmem:[#allocation2 + $0x188] sm:$0xf]  ;;  %v6749_v43 = vpop.f32.mrf.mxu0 }
 0x153   :  { %v1604_v17 = vsel %vm7424_vm13, %v1463_v44, %v1603_v4  ;;  %v1607_v25 = vsel %vm7079_vm3, %v1464_v26, %v1606_v23  ;;  %v1504_v27 = vrot.slane %v1500_v48, 4  ;;  %v2428_v62 = vor.u32 %v2427_v18, %v2424_v35  ;;  %v1639_v7 = vld [vmem:[#allocation2 + $0x1a0] sm:$0xf] }
 0x154   :  { %1605 = vst [vmem:[#allocation2 + $0x170] sm:$0xf] %v1604_v17  ;;  %1608 = vst [vmem:[#allocation2 + $0x174] sm:$0x1] %v1607_v25  ;;  %v2420_v45 = vsel %vm7371_vm7, %v2415_v30, %v7895_v10  ;;  %v768_v38 = vmul.f32 0.2, %v582_v19  ;;  %v1634_v58 = vsel %vm7424_vm13, %v1503_v31, %v1633_v61  ;;  %v6156_v50 = vcombine.low %v7863_v2, %v7857_v1 }
 0x155   :  { %vm707_vm6 = vcmp.ge.f32.partialorder %v593_v59, 0.0  ;;  %v1637_v6 = vsel %vm7079_vm3, %v1504_v27, %v1636_v15  ;;  %v771_v12 = vmul.f32 0.2, %v593_v59  ;;  %v1290_v37 = vsel %vm7079_vm3, 0, %v1289_v32  ;;  %1635 = vst [vmem:[#allocation2 + $0x198] sm:$0xf] %v1634_v58 }
 0x156   :  { %1638 = vst [vmem:[#allocation2 + $0x19c] sm:$0x1] %v1637_v6  ;;  %v2429_v28 = vrot.slane %v2428_v62, 4  ;;  %v832_v42 = vsel %vm704_vm5, %v582_v19, %v768_v38  ;;  %1291 = vst [vmem:[#allocation2 + $0x1a4] sm:$0x1] %v1290_v37  ;;  %v585_v57 = vadd.f32 %v7652_v8, %v7796_v3  ;;  %v1282_v47 = vsel %vm7079_vm3, 0, %v1281_v51  ;;  %4067 = vrot.lane.b32.xlu1 %v6156_v50, %s6944_s14 }
 0x157   :  { %v6380_v52 = vpack.c.bf16 %v832_v42, %v832_v42  ;;  %v835_v54 = vsel %vm707_vm6, %v593_v59, %v771_v12  ;;  %v606_v40 = vadd.f32 %v7652_v8, %v7805_v11  ;;  %1283 = vst [vmem:[#allocation2 + $0x194] sm:$0x1] %v1282_v47  ;;  %v598_v5 = vadd.f32 %v7652_v8, %v7835_v55 }
 0x158   :  { %v2434_v1 = vsel %vm7371_vm7, %v2429_v28, %v2433_v9  ;;  %v6383_v2 = vpack.c.bf16 %v835_v54, %v835_v54  ;;  %vm705_vm8 = vcmp.ge.f32.partialorder %v585_v57, 0.0  ;;  %v769_v3 = vmul.f32 0.2, %v585_v57  ;;  %v1624_v23 = vld [vmem:[#allocation2 + $0x18c] sm:$0x1] }
 0x159   :  { %v6172_v39 = vcombine.low %v2420_v45, %v2434_v1  ;;  %v1482_v16 = vshrl.u32 %v6380_v52, 16  ;;  %v1485_v49 = vshll.u32 %v6380_v52, 16  ;;  %vm710_vm9 = vcmp.ge.f32.partialorder %v606_v40, 0.0 }
 0x15a   :  { %v1506_v29 = vshrl.u32 %v6383_v2, 16  ;;  %v1509_v34 = vshll.u32 %v6383_v2, 16  ;;  %v833_v10 = vsel %vm705_vm8, %v585_v57, %v769_v3  ;;  %v774_v11 = vmul.f32 0.2, %v606_v40 }
 0x15b   :  { %4131 = vrot.lane.b32.xlu0 %v6172_v39, %s6944_s14  ;;  %v1484_v35 = vrot.slane %v1482_v16, 7  ;;  %v6381_v4 = vpack.c.bf16 %v833_v10, %v833_v10  ;;  %v609_v63 = vadd.f32 %v7652_v8, %v7855_v13  ;;  %v601_v19 = vadd.f32 %v7652_v8, %v7872_v36  ;;  %v1627_v13 = vld [vmem:[#allocation2 + $0x190] sm:$0xf] }
 0x15c   :  { %v1508_v61 = vrot.slane %v1506_v29, 7  ;;  %v838_v20 = vsel %vm710_vm9, %v606_v40, %v774_v11  ;;  %v622_v14 = vadd.f32 %v7652_v8, %v7893_v56  ;;  %vm708_vm10 = vcmp.ge.f32.partialorder %v598_v5, 0.0  ;;  %v629_v56 = vpop.f32.mrf.mxu0 }
 0x15d   :  { %v1487_v32 = vor.u32 %v1485_v49, %v1484_v35  ;;  %v1488_v44 = vrot.slane %v1484_v35, 4  ;;  %v1642_v26 = vld [vmem:[#allocation2 + $0x1a4] sm:$0x1]  ;;  %v1490_v48 = vshrl.u32 %v6381_v4, 16  ;;  %v1493_v55 = vshll.u32 %v6381_v4, 16 }
 0x15e   :  { %v1511_v18 = vor.u32 %v1509_v34, %v1508_v61  ;;  %v1512_v15 = vrot.slane %v1508_v61, 4  ;;  %v6386_v30 = vpack.c.bf16 %v838_v20, %v838_v20  ;;  %v1630_v51 = vld [vmem:[#allocation2 + $0x194] sm:$0x1]  ;;  %v772_v17 = vmul.f32 0.2, %v598_v5  ;;  %v6750_v50 = vpop.f32.mrf.mxu0 }
 0x15f   :  { %v1622_v9 = vsel %vm7424_vm13, %v1487_v32, %v1621_v53  ;;  %v1625_v59 = vsel %vm7079_vm3, %v1488_v44, %v1624_v23  ;;  %v1492_v36 = vrot.slane %v1490_v48, 7  ;;  %vm711_vm11 = vcmp.ge.f32.partialorder %v609_v63, 0.0 }
 0x160   :  { %1623 = vst [vmem:[#allocation2 + $0x188] sm:$0xf] %v1622_v9  ;;  %1626 = vst [vmem:[#allocation2 + $0x18c] sm:$0x1] %v1625_v59  ;;  %v1640_v25 = vsel %vm7424_vm13, %v1511_v18, %v1639_v7  ;;  %v1643_v31 = vsel %vm7079_vm3, %v1512_v15, %v1642_v26  ;;  %v775_v27 = vmul.f32 0.2, %v609_v63  ;;  %v836_v38 = vsel %vm708_vm10, %v598_v5, %v772_v17 }
 0x161   :  { %1371 = vst.msk [vmem:[#allocation2 + $0x1c0] sm:$0xf] %vm1076_vm4, %v6386_v30  ;;  %1641 = vst [vmem:[#allocation2 + $0x1a0] sm:$0xf] %v1640_v25  ;;  %v1495_v45 = vor.u32 %v1493_v55, %v1492_v36  ;;  %v1496_v62 = vrot.slane %v1492_v36, 4  ;;  %vm709_vm12 = vcmp.ge.f32.partialorder %v601_v19, 0.0  ;;  %v6384_v58 = vpack.c.bf16 %v836_v38, %v836_v38 }
 0x162   :  { %1644 = vst [vmem:[#allocation2 + $0x1a4] sm:$0x1] %v1643_v31  ;;  %v839_v6 = vsel %vm711_vm11, %v609_v63, %v775_v27  ;;  %v773_v12 = vmul.f32 0.2, %v601_v19  ;;  %vm714_vm14 = vcmp.ge.f32.partialorder %v622_v14, 0.0  ;;  %v614_v60 = vadd.f32 %v7652_v8, %v7903_v33 }
 0x163   :  { %v1628_v37 = vsel %vm7424_vm13, %v1495_v45, %v1627_v13  ;;  %v1631_v41 = vsel %vm7079_vm3, %v1496_v62, %v1630_v51  ;;  %v6387_v28 = vpack.c.bf16 %v839_v6, %v839_v6  ;;  %v778_v42 = vmul.f32 0.2, %v622_v14  ;;  %1369 = vst.msk [vmem:[#allocation2 + $0x1b0] sm:$0xf] %vm1076_vm4, %v6384_v58 }
 0x164   :  { %1629 = vst [vmem:[#allocation2 + $0x190] sm:$0xf] %v1628_v37  ;;  %1632 = vst [vmem:[#allocation2 + $0x194] sm:$0x1] %v1631_v41  ;;  %v837_v57 = vsel %vm709_vm12, %v601_v19, %v773_v12  ;;  %v625_v52 = vadd.f32 %v7652_v8, %v7920_v0  ;;  %v617_v24 = vadd.f32 %v7652_v8, %v616_v46  ;;  %vm712_vm13 = vcmp.ge.f32.partialorder %v614_v60, 0.0  ;;  %v632_v0 = vpop.f32.mrf.mxu0 }
 0x165   :  { %1372 = vst.msk [vmem:[#allocation2 + $0x1c8] sm:$0xf] %vm1076_vm4, %v6387_v28  ;;  %v6385_v54 = vpack.c.bf16 %v837_v57, %v837_v57  ;;  %v842_v47 = vsel %vm714_vm14, %v622_v14, %v778_v42  ;;  %v638_v40 = vadd.f32 %v7652_v8, %v6749_v43  ;;  %v630_v1 = vadd.f32 %v7652_v8, %v629_v56  ;;  %v1297_v12 = vld [vmem:[#allocation2 + $0x1b4] sm:$0x1]  ;;  %v1301_v57 = vld [vmem:[#allocation2 + $0x1bc] sm:$0x1] }
 0x166   :  { %v6390_v2 = vpack.c.bf16 %v842_v47, %v842_v47  ;;  %v776_v3 = vmul.f32 0.2, %v614_v60  ;;  %vm715_vm15 = vcmp.ge.f32.partialorder %v625_v52, 0.0  ;;  %v779_v33 = vmul.f32 0.2, %v625_v52  ;;  %v6753_v20 = vpop.f32.mrf.mxu0 }
 0x167   :  { %1370 = vst.msk [vmem:[#allocation2 + $0x1b8] sm:$0xf] %vm1076_vm4, %v6385_v54  ;;  %vm713_vm0 = vcmp.ge.f32.partialorder %v617_v24, 0.0  ;;  %v777_v39 = vmul.f32 0.2, %v617_v24  ;;  %vm718_vm1 = vcmp.ge.f32.partialorder %v638_v40, 0.0  ;;  %v641_v11 = vadd.f32 %v7652_v8, %v6750_v50 }
 0x168   :  { %1375 = vst.msk [vmem:[#allocation2 + $0x1e0] sm:$0xf] %vm1076_vm4, %v6390_v2  ;;  %v840_v16 = vsel %vm712_vm13, %v614_v60, %v776_v3  ;;  %v782_v49 = vmul.f32 0.2, %v638_v40  ;;  %vm716_vm2 = vcmp.ge.f32.partialorder %v630_v1, 0.0  ;;  %v843_v34 = vsel %vm715_vm15, %v625_v52, %v779_v33  ;;  %v645_v45 = vpop.f32.mrf.mxu0 }
 0x169   :  { %v780_v46 = vmul.f32 0.2, %v630_v1  ;;  %v6388_v29 = vpack.c.bf16 %v840_v16, %v840_v16  ;;  %v841_v10 = vsel %vm713_vm0, %v617_v24, %v777_v39  ;;  %v6391_v35 = vpack.c.bf16 %v843_v34, %v843_v34  ;;  %v2453_v63 = vld [vmem:[#allocation2 + $0x1c0] sm:$0xf] }
 0x16a   :  { %v6389_v53 = vpack.c.bf16 %v841_v10, %v841_v10  ;;  %v846_v4 = vsel %vm718_vm1, %v638_v40, %v782_v49  ;;  %vm719_vm5 = vcmp.ge.f32.partialorder %v641_v11, 0.0  ;;  %v783_v61 = vmul.f32 0.2, %v641_v11  ;;  %v2451_v7 = vld [vmem:[#allocation2 + $0x1b0] sm:$0xf] }
 0x16b   :  { %v844_v5 = vsel %vm716_vm2, %v630_v1, %v780_v46  ;;  %1373 = vst.msk [vmem:[#allocation2 + $0x1d0] sm:$0xf] %vm1076_vm4, %v6388_v29  ;;  %v6394_v43 = vpack.c.bf16 %v846_v4, %v846_v4  ;;  %1376 = vst.msk [vmem:[#allocation2 + $0x1e8] sm:$0xf] %vm1076_vm4, %v6391_v35  ;;  %v2724_v19 = vshrl.u32 %v2451_v7, 16  ;;  %v2727_v14 = vshll.u32 %v2451_v7, 16 }
 0x16c   :  { %v6392_v23 = vpack.c.bf16 %v844_v5, %v844_v5  ;;  %1374 = vst.msk [vmem:[#allocation2 + $0x1d8] sm:$0xf] %vm1076_vm4, %v6389_v53  ;;  %v7983_v8 = vld [vmem:[%s9600_s2] ss:$0 sm:$0xff]  ;;  %v2454_v26 = vld [vmem:[#allocation2 + $0x1c8] sm:$0xf]  ;;  %v847_v48 = vsel %vm719_vm5, %v641_v11, %v783_v61 }
 0x16d   :  { %v633_v32 = vadd.f32 %v7983_v8, %v632_v0  ;;  %v654_v44 = vadd.f32 %v7983_v8, %v6753_v20  ;;  %1379 = vst.msk [vmem:[#allocation2 + $0x208] sm:$0xf] %vm1076_vm4, %v6394_v43  ;;  %v2752_v55 = vshrl.u32 %v2453_v63, 16  ;;  %v2755_v18 = vshll.u32 %v2453_v63, 16  ;;  %v2963_v40 = vld [vmem:[#allocation2 + $0x98] sm:$0xf] }
 0x16e   :  { %1377 = vst.msk [vmem:[#allocation2 + $0x1f8] sm:$0xf] %vm1076_vm4, %v6392_v23  ;;  %v2766_v15 = vshrl.u32 %v2454_v26, 16  ;;  %v6395_v13 = vpack.c.bf16 %v847_v48, %v847_v48  ;;  %v2452_v30 = vld [vmem:[#allocation2 + $0x1b8] sm:$0xf]  ;;  %v7989_v9 = vrot.slane %v2724_v19, 4  ;;  %v6182_v42 = vcombine.low %v2453_v63, %v2454_v26 }
 0x16f   :  { %v2729_v59 = vrot.slane %v2727_v14, 5  ;;  %vm717_vm6 = vcmp.ge.f32.partialorder %v633_v32, 0.0  ;;  %v2738_v36 = vshrl.u32 %v2452_v30, 16  ;;  %v2741_v51 = vshll.u32 %v2452_v30, 16  ;;  %v2964_v39 = vld [vmem:[#allocation2 + $0xa0] sm:$0xf] }
 0x170   :  { %v6181_v17 = vcombine.low %v2451_v7, %v2452_v30  ;;  %v781_v56 = vmul.f32 0.2, %v633_v32  ;;  %1380 = vst.msk [vmem:[#allocation2 + $0x210] sm:$0xf] %vm1076_vm4, %v6395_v13  ;;  %vm722_vm8 = vcmp.ge.f32.partialorder %v654_v44, 0.0  ;;  %v7992_v31 = vrot.slane %v2752_v55, 4 }
 0x171   :  { %v786_v25 = vmul.f32 0.2, %v654_v44  ;;  %v7994_v27 = vrot.slane %v2755_v18, 5  ;;  %v2740_v62 = vrot.slane %v2738_v36, 4  ;;  %v2743_v38 = vrot.slane %v2741_v51, 5  ;;  %v6867_v46 = vld [vmem:[%s9601_s3 + $0x158] sm:$0xff]  }
 0x172   :  { %4213 = vrot.lane.b32.xlu1 %v6181_v17, %s6944_s14  ;;  %v845_v58 = vsel %vm717_vm6, %v633_v32, %v781_v56  ;;  %v7997_v6 = vrot.slane %v2766_v15, 4  ;;  %v2769_v28 = vshll.u32 %v2454_v26, 16  ;;  %v2455_v50 = vld [vmem:[#allocation2 + $0x1d0] sm:$0xf]  ;;  %v646_v52 = vadd.f32 %v7983_v8, %v645_v45  ;;  %v1305_v63 = vld [vmem:[#allocation2 + $0x1c4] sm:$0x1]  ;;  %6569 = vmatprep.subr.bf16.mxu0 %v6867_v46 }
 0x173   :  { %v6393_v37 = vpack.c.bf16 %v845_v58, %v845_v58  ;;  %v850_v41 = vsel %vm722_vm8, %v654_v44, %v786_v25  ;;  %v2456_v24 = vld [vmem:[#allocation2 + $0x1d8] sm:$0xf]  ;;  %v2780_v54 = vshrl.u32 %v2455_v50, 16  ;;  %v2783_v47 = vshll.u32 %v2455_v50, 16  ;;  %v1309_v43 = vld [vmem:[#allocation2 + $0x1cc] sm:$0x1] }
 0x174   :  { %v6398_v60 = vpack.c.bf16 %v850_v41, %v850_v41  ;;  %v2771_v1 = vrot.slane %v2769_v28, 5  ;;  %v2794_v2 = vshrl.u32 %v2456_v24, 16  ;;  %v2797_v3 = vshll.u32 %v2456_v24, 16  ;;  %v2457_v19 = vld [vmem:[#allocation2 + $0x1e0] sm:$0xf]  ;;  %v6868_v58 = vld [vmem:[%s9601_s3 + $0x118] sm:$0xff]  }
 0x175   :  { %1378 = vst.msk [vmem:[#allocation2 + $0x200] sm:$0xf] %vm1076_vm4, %v6393_v37  ;;  %v6183_v33 = vcombine.low %v2455_v50, %v2456_v24  ;;  %vm720_vm9 = vcmp.ge.f32.partialorder %v646_v52, 0.0  ;;  %v784_v0 = vmul.f32 0.2, %v646_v52  ;;  %v8003_v16 = vrot.slane %v2780_v54, 4  ;;  %6570 = vmatpush3.bf16.msra.mxu0 %v6868_v58 }
 0x176   :  { %1383 = vst.msk [vmem:[#allocation2 + $0x228] sm:$0xf] %vm1076_vm4, %v6398_v60  ;;  %4215 = vrot.lane.b32.xlu1 %v6182_v42, %s6944_s14  ;;  %v8005_v49 = vrot.slane %v2783_v47, 5  ;;  %v8010_v29 = vrot.slane %v2794_v2, 4  ;;  %v8012_v34 = vrot.slane %v2797_v3, 5  ;;  %v1298_v10 = vsel %vm7079_vm3, 0, %v1297_v12 }
 0x177   :  { %v1302_v11 = vsel %vm7079_vm3, 0, %v1301_v57  ;;  %v848_v35 = vsel %vm720_vm9, %v646_v52, %v784_v0  ;;  %1299 = vst [vmem:[#allocation2 + $0x1b4] sm:$0x1] %v1298_v10  ;;  %v2730_v53 = vor.u32 %v2729_v59, %v7989_v9  ;;  %v2744_v4 = vor.u32 %v2743_v38, %v2740_v62  ;;  %v2458_v48 = vld [vmem:[#allocation2 + $0x1e8] sm:$0xf] }
 0x178   :  { %1303 = vst [vmem:[#allocation2 + $0x1bc] sm:$0x1] %v1302_v11  ;;  %v3250_v5 = vshrl.u32 %v2964_v39, 16  ;;  %v6396_v23 = vpack.c.bf16 %v848_v35, %v848_v35  ;;  %v3253_v61 = vshll.u32 %v2964_v39, 16  ;;  %v6213_v7 = vcombine.low %v2963_v40, %v2964_v39  ;;  %v1313_v30 = vld [vmem:[#allocation2 + $0x1d4] sm:$0x1] }
 0x179   :  { %v3236_v20 = vshrl.u32 %v2963_v40, 16  ;;  %v8020_v14 = vrot.slane %v2730_v53, 4  ;;  %v8022_v32 = vrot.slane %v2744_v4, 4  ;;  %v3239_v26 = vshll.u32 %v2963_v40, 16  ;;  %v2965_v17 = vld [vmem:[#allocation2 + $0xa8] sm:$0xf]  ;;  %v6754_v40 = vpop.f32.mrf.mxu0 }
 0x17a   :  { %4217 = vrot.lane.b32.xlu1 %v6183_v33, %s6944_s14  ;;  %v8024_v44 = vrot.slane %v3250_v5, 4  ;;  %1381 = vst.msk [vmem:[#allocation2 + $0x218] sm:$0xf] %vm1076_vm4, %v6396_v23  ;;  %v8027_v55 = vrot.slane %v3253_v61, 5  ;;  %v1306_v15 = vsel %vm7079_vm3, 0, %v1305_v63  ;;  %v1310_v13 = vsel %vm7079_vm3, 0, %v1309_v43 }
 0x17b   :  { %v8029_v18 = vrot.slane %v3236_v20, 4  ;;  %v3241_v9 = vrot.slane %v3239_v26, 5  ;;  %1307 = vst [vmem:[#allocation2 + $0x1c4] sm:$0x1] %v1306_v15  ;;  %1311 = vst [vmem:[#allocation2 + $0x1cc] sm:$0x1] %v1310_v13  ;;  %v2758_v59 = vor.u32 %v7994_v27, %v7992_v31  ;;  %v2772_v36 = vor.u32 %v2771_v1, %v7997_v6 }
 0x17c   :  { %v2808_v51 = vshrl.u32 %v2457_v19, 16  ;;  %v2811_v56 = vshll.u32 %v2457_v19, 16  ;;  %v2822_v25 = vshrl.u32 %v2458_v48, 16  ;;  %v2825_v45 = vshll.u32 %v2458_v48, 16  ;;  %v1317_v38 = vld [vmem:[#allocation2 + $0x1dc] sm:$0x1] }
 0x17d   :  { %v6184_v62 = vcombine.low %v2457_v19, %v2458_v48  ;;  %v8042_v12 = vrot.slane %v2758_v59, 4  ;;  %v2773_v37 = vrot.slane %v2772_v36, 4  ;;  %v1314_v31 = vsel %vm7079_vm3, 0, %v1313_v30  ;;  %v2966_v27 = vld [vmem:[#allocation2 + $0xb0] sm:$0xf] }
 0x17e   :  { %4373 = vrot.lane.b32.xlu1 %v6213_v7, %s6944_s14  ;;  %v8044_v41 = vrot.slane %v2808_v51, 4  ;;  %v2707_v6 = vld [vmem:[#allocation2 + $0x1b4] sm:$0x1]  ;;  %v8048_v42 = vrot.slane %v2811_v56, 5  ;;  %v8050_v50 = vrot.slane %v2822_v25, 4  ;;  %v2786_v57 = vor.u32 %v8005_v49, %v8003_v16 }
 0x17f   :  { %v2708_v28 = vld [vmem:[#allocation2 + $0x1bc] sm:$0x1]  ;;  %1315 = vst [vmem:[#allocation2 + $0x1d4] sm:$0x1] %v1314_v31  ;;  %v2800_v60 = vor.u32 %v8012_v34, %v8010_v29  ;;  %v2733_v52 = vshll.u32 %v2707_v6, 16  ;;  %v8056_v54 = vrot.slane %v2825_v45, 5  ;;  %v657_v3 = vadd.f32 %v7983_v8, %v6754_v40 }
 0x180   :  { %v2747_v24 = vshll.u32 %v2708_v28, 16  ;;  %v1318_v47 = vsel %vm7079_vm3, 0, %v1317_v38  ;;  %v8060_v1 = vrot.slane %v2786_v57, 4  ;;  %v3264_v33 = vshrl.u32 %v2965_v17, 16  ;;  %v3219_v63 = vld [vmem:[#allocation2 + $0x9c] sm:$0x1] }
 0x181   :  { %1319 = vst [vmem:[#allocation2 + $0x1dc] sm:$0x1] %v1318_v47  ;;  %v8062_v2 = vrot.slane %v2800_v60, 4  ;;  %v2735_v39 = vrot.slane %v2733_v52, 5  ;;  %v3267_v16 = vshll.u32 %v2965_v17, 16  ;;  %v3278_v49 = vshrl.u32 %v2966_v27, 16 }
 0x182   :  { %v2749_v0 = vrot.slane %v2747_v24, 5  ;;  %4219 = vrot.lane.b32.xlu1 %v6184_v62, %s6944_s14  ;;  %v2709_v46 = vld [vmem:[#allocation2 + $0x1c4] sm:$0x1]  ;;  %v2710_v29 = vld [vmem:[#allocation2 + $0x1cc] sm:$0x1]  ;;  %vm723_vm10 = vcmp.ge.f32.partialorder %v657_v3, 0.0  ;;  %v6214_v10 = vcombine.low %v2965_v17, %v2966_v27  ;;  %v3242_v11 = vor.u32 %v3241_v9, %v8029_v18  ;;  %v648_v9 = vpop.f32.mrf.mxu0 }
 0x183   :  { %v8066_v34 = vrot.slane %v3264_v33, 4  ;;  %v2736_v35 = vsel %vm7371_vm7, %v8020_v14, %v2735_v39  ;;  %v2761_v4 = vshll.u32 %v2709_v46, 16  ;;  %v2775_v5 = vshll.u32 %v2710_v29, 16  ;;  %v3220_v15 = vld [vmem:[#allocation2 + $0xa4] sm:$0x1] }
 0x184   :  { %v2750_v53 = vsel %vm7371_vm7, %v8022_v32, %v2749_v0  ;;  %v787_v23 = vmul.f32 0.2, %v657_v3  ;;  %v8075_v61 = vrot.slane %v3267_v16, 5  ;;  %v8077_v7 = vrot.slane %v3278_v49, 4  ;;  %v2459_v59 = vld [vmem:[#allocation2 + $0x1f8] sm:$0xf] }
 0x185   :  { %v6197_v43 = vcombine.low %v2736_v35, %v2750_v53  ;;  %v2763_v20 = vrot.slane %v2761_v4, 5  ;;  %v2777_v19 = vrot.slane %v2775_v5, 5  ;;  %v3281_v48 = vshll.u32 %v2966_v27, 16  ;;  %v2460_v27 = vld [vmem:[#allocation2 + $0x200] sm:$0xf] }
 0x186   :  { %v2711_v26 = vld [vmem:[#allocation2 + $0x1d4] sm:$0x1]  ;;  %4375 = vrot.lane.b32.xlu1 %v6214_v10, %s6944_s14  ;;  %v3243_v14 = vrot.slane %v3242_v11, 4  ;;  %v851_v32 = vsel %vm723_vm10, %v657_v3, %v787_v23  ;;  %v3245_v13 = vshll.u32 %v3219_v63, 16  ;;  %v3256_v30 = vor.u32 %v8027_v55, %v8024_v44  ;;  %v1321_v60 = vld [vmem:[#allocation2 + $0x1e4] sm:$0x1] }
 0x187   :  { %4277 = vrot.lane.b32.xlu0 %v6197_v43, %s6944_s14  ;;  %v2789_v18 = vshll.u32 %v2711_v26, 16  ;;  %v2764_v36 = vsel %vm7371_vm7, %v8042_v12, %v2763_v20  ;;  %v2778_v51 = vsel %vm7371_vm7, %v2773_v37, %v2777_v19  ;;  %v6399_v56 = vpack.c.bf16 %v851_v32, %v851_v32  ;;  %v1325_v52 = vld [vmem:[#allocation2 + $0x1ec] sm:$0x1]  ;;  %v2967_v46 = vld [vmem:[#allocation2 + $0xb8] sm:$0xf] }
 0x188   :  { %v2712_v17 = vld [vmem:[#allocation2 + $0x1dc] sm:$0x1]  ;;  %v8089_v25 = vrot.slane %v3281_v48, 5  ;;  %v6198_v45 = vcombine.low %v2764_v36, %v2778_v51  ;;  %v3247_v58 = vrot.slane %v3245_v13, 5  ;;  %v3257_v44 = vrot.slane %v3256_v30, 4 }
 0x189   :  { %v2791_v62 = vrot.slane %v2789_v18, 5  ;;  %v2803_v38 = vshll.u32 %v2712_v17, 16  ;;  %1384 = vst.msk [vmem:[#allocation2 + $0x230] sm:$0xf] %vm1076_vm4, %v6399_v56  ;;  %v3259_v55 = vshll.u32 %v3220_v15, 16  ;;  %v649_v31 = vadd.f32 %v7983_v8, %v648_v9 }
 0x18a   :  { %v2836_v6 = vshrl.u32 %v2459_v59, 16  ;;  %v3248_v28 = vsel %vm7371_vm7, %v3243_v14, %v3247_v58  ;;  %v2839_v57 = vshll.u32 %v2459_v59, 16  ;;  %v2850_v33 = vshrl.u32 %v2460_v27, 16  ;;  %v2968_v29 = vld [vmem:[#allocation2 + $0xc0] sm:$0xf] }
 0x18b   :  { %4279 = vrot.lane.b32.xlu0 %v6198_v45, %s6944_s14  ;;  %v2792_v12 = vsel %vm7371_vm7, %v8060_v1, %v2791_v62  ;;  %v2805_v37 = vrot.slane %v2803_v38, 5  ;;  %v3261_v24 = vrot.slane %v3259_v55, 5  ;;  %vm721_vm11 = vcmp.ge.f32.partialorder %v649_v31, 0.0  ;;  %v3221_v43 = vld [vmem:[#allocation2 + $0xac] sm:$0x1] }
 0x18c   :  { %v785_v47 = vmul.f32 0.2, %v649_v31  ;;  %v8099_v40 = vrot.slane %v2836_v6, 4  ;;  %v8104_v3 = vrot.slane %v2839_v57, 5  ;;  %v2853_v1 = vshll.u32 %v2460_v27, 16  ;;  %v6878_v6 = vld [vmem:[%s9601_s3 + $0x150] sm:$0xff]  }
 0x18d   :  { %v2806_v8 = vsel %vm7371_vm7, %v8062_v2, %v2805_v37  ;;  %v3262_v0 = vsel %vm7371_vm7, %v3257_v44, %v3261_v24  ;;  %v6185_v49 = vcombine.low %v2459_v59, %v2460_v27  ;;  %v8108_v35 = vrot.slane %v2850_v33, 4  ;;  %v3222_v48 = vld [vmem:[#allocation2 + $0xb4] sm:$0x1]  ;;  %v1333_v9 = vld [vmem:[#allocation2 + $0x1fc] sm:$0x1]  ;;  %6571 = vmatprep.subr.bf16.mxu0 %v6878_v6 }
 0x18e   :  { %v6199_v39 = vcombine.low %v2792_v12, %v2806_v8  ;;  %v849_v16 = vsel %vm721_vm11, %v649_v31, %v785_v47  ;;  %v6229_v10 = vcombine.low %v3248_v28, %v3262_v0  ;;  %v8110_v53 = vrot.slane %v2853_v1, 5  ;;  %v1337_v59 = vld [vmem:[#allocation2 + $0x204] sm:$0x1]  ;;  %v2969_v38 = vld [vmem:[#allocation2 + $0xc8] sm:$0xf] }
 0x18f   :  { %v6397_v11 = vpack.c.bf16 %v849_v16, %v849_v16  ;;  %4221 = vrot.lane.b32.xlu1 %v6185_v49, %s6944_s14  ;;  %v1322_v2 = vsel %vm7079_vm3, 0, %v1321_v60  ;;  %v1326_v4 = vsel %vm7079_vm3, 0, %v1325_v52  ;;  %v2814_v5 = vor.u32 %v8048_v42, %v8044_v41  ;;  %v2461_v42 = vld [vmem:[#allocation2 + $0x208] sm:$0xf]  ;;  %v2970_v58 = vld [vmem:[#allocation2 + $0xd0] sm:$0xf] }
 0x190   :  { %4281 = vrot.lane.b32.xlu0 %v6199_v39, %s6944_s14  ;;  %v2828_v63 = vor.u32 %v8056_v54, %v8050_v50  ;;  %1323 = vst [vmem:[#allocation2 + $0x1e4] sm:$0x1] %v1322_v2  ;;  %1327 = vst [vmem:[#allocation2 + $0x1ec] sm:$0x1] %v1326_v4  ;;  %v3292_v23 = vshrl.u32 %v2967_v46, 16  ;;  %v3295_v20 = vshll.u32 %v2967_v46, 16  ;;  %v6215_v32 = vcombine.low %v2967_v46, %v2968_v29 }
 0x191   :  { %1382 = vst.msk [vmem:[#allocation2 + $0x220] sm:$0xf] %vm1076_vm4, %v6397_v11  ;;  %v3306_v19 = vshrl.u32 %v2968_v29, 16  ;;  %v3309_v26 = vshll.u32 %v2968_v29, 16  ;;  %v8123_v14 = vrot.slane %v2814_v5, 4  ;;  %v3270_v41 = vor.u32 %v8075_v61, %v8066_v34  ;;  %v6879_v2 = vld [vmem:[%s9601_s3 + $0x110] sm:$0xff]  }
 0x192   :  { %v8125_v18 = vrot.slane %v2828_v63, 4  ;;  %v2462_v50 = vld [vmem:[#allocation2 + $0x210] sm:$0xf]  ;;  %v8129_v54 = vrot.slane %v3292_v23, 4  ;;  %v8131_v15 = vrot.slane %v3295_v20, 5  ;;  %v3273_v51 = vshll.u32 %v3221_v43, 16  ;;  %6572 = vmatpush3.bf16.msra.mxu0 %v6879_v2 }
 0x193   :  { %v8133_v13 = vrot.slane %v3306_v19, 4  ;;  %v8135_v30 = vrot.slane %v3309_v26, 5  ;;  %4377 = vrot.lane.b32.xlu1 %v6215_v32, %s6944_s14  ;;  %v3271_v36 = vrot.slane %v3270_v41, 4  ;;  %v3284_v34 = vor.u32 %v8089_v25, %v8077_v7  ;;  %v3223_v0 = vld [vmem:[#allocation2 + $0xbc] sm:$0x1] }
 0x194   :  { %4437 = vrot.lane.b32.xlu0 %v6229_v10, %s6944_s14  ;;  %v3287_v61 = vshll.u32 %v3222_v48, 16  ;;  %v2864_v17 = vshrl.u32 %v2461_v42, 16  ;;  %v2867_v56 = vshll.u32 %v2461_v42, 16  ;;  %v2878_v45 = vshrl.u32 %v2462_v50, 16  ;;  %v3224_v10 = vld [vmem:[#allocation2 + $0xc4] sm:$0x1] }
 0x195   :  { %v2881_v62 = vshll.u32 %v2462_v50, 16  ;;  %v3275_v44 = vrot.slane %v3273_v51, 5  ;;  %v3285_v55 = vrot.slane %v3284_v34, 4  ;;  %v6186_v27 = vcombine.low %v2461_v42, %v2462_v50  ;;  %v2463_v11 = vld [vmem:[#allocation2 + $0x218] sm:$0xf] }
 0x196   :  { %v3289_v31 = vrot.slane %v3287_v61, 5  ;;  %v8144_v12 = vrot.slane %v2864_v17, 4  ;;  %v8146_v37 = vrot.slane %v2867_v56, 5  ;;  %v8148_v7 = vrot.slane %v2878_v45, 4  ;;  %v1341_v51 = vld [vmem:[#allocation2 + $0x20c] sm:$0x1] }
 0x197   :  { %v8150_v25 = vrot.slane %v2881_v62, 5  ;;  %v2713_v28 = vld [vmem:[#allocation2 + $0x1e4] sm:$0x1]  ;;  %v2714_v57 = vld [vmem:[#allocation2 + $0x1ec] sm:$0x1]  ;;  %v3276_v60 = vsel %vm7371_vm7, %v3271_v36, %v3275_v44  ;;  %4223 = vrot.lane.b32.xlu1 %v6186_v27, %s6944_s14  ;;  %v1334_v24 = vsel %vm7079_vm3, 0, %v1333_v9  ;;  %v2842_v39 = vor.u32 %v8104_v3, %v8099_v40 }
 0x198   :  { %v3290_v52 = vsel %vm7371_vm7, %v3285_v55, %v3289_v31  ;;  %v1338_v47 = vsel %vm7079_vm3, 0, %v1337_v59  ;;  %v2817_v8 = vshll.u32 %v2713_v28, 16  ;;  %v2831_v33 = vshll.u32 %v2714_v57, 16  ;;  %1335 = vst [vmem:[#allocation2 + $0x1fc] sm:$0x1] %v1334_v24 }
 0x199   :  { %v6230_v1 = vcombine.low %v3276_v60, %v3290_v52  ;;  %1339 = vst [vmem:[#allocation2 + $0x204] sm:$0x1] %v1338_v47  ;;  %v2856_v16 = vor.u32 %v8110_v53, %v8108_v35  ;;  %v3320_v49 = vshrl.u32 %v2969_v38, 16  ;;  %v3323_v46 = vshll.u32 %v2969_v38, 16  ;;  %v2464_v23 = vld [vmem:[#allocation2 + $0x220] sm:$0xf] }
 0x19a   :  { %v3334_v29 = vshrl.u32 %v2970_v58, 16  ;;  %v2819_v4 = vrot.slane %v2817_v8, 5  ;;  %v2833_v5 = vrot.slane %v2831_v33, 5  ;;  %v2843_v63 = vrot.slane %v2842_v39, 4  ;;  %v1345_v34 = vld [vmem:[#allocation2 + $0x214] sm:$0x1] }
 0x19b   :  { %v3337_v43 = vshll.u32 %v2970_v58, 16  ;;  %v2857_v20 = vrot.slane %v2856_v16, 4  ;;  %v8168_v40 = vrot.slane %v3320_v49, 4  ;;  %v8170_v3 = vrot.slane %v3323_v46, 5  ;;  %v2972_v27 = vld [vmem:[#allocation2 + $0xe8] sm:$0xf] }
 0x19c   :  { %v8172_v35 = vrot.slane %v3334_v29, 4  ;;  %v2820_v53 = vsel %vm7371_vm7, %v8123_v14, %v2819_v4  ;;  %v2834_v19 = vsel %vm7371_vm7, %v8125_v18, %v2833_v5  ;;  %v6216_v48 = vcombine.low %v2969_v38, %v2970_v58  ;;  %v2971_v38 = vld [vmem:[#allocation2 + $0xe0] sm:$0xf]  ;;  %v1185_v57 = vld [vmem:[#allocation2 + $0xd4] sm:$0x1]  ;;  %v6886_v39 = vld [vmem:[%s9601_s3 + $0x148] sm:$0xff]  }
 0x19d   :  { %v8180_v26 = vrot.slane %v3337_v43, 5  ;;  %v6200_v32 = vcombine.low %v2820_v53, %v2834_v19  ;;  %v3298_v41 = vor.u32 %v8131_v15, %v8129_v54  ;;  %v3301_v42 = vshll.u32 %v3223_v0, 16  ;;  %v3225_v8 = vld [vmem:[#allocation2 + $0xcc] sm:$0x1]  ;;  %v2465_v33 = vld [vmem:[#allocation2 + $0x228] sm:$0xf]  ;;  %6573 = vmatprep.subr.bf16.mxu0 %v6886_v39 }
 0x19e   :  { %v3312_v50 = vor.u32 %v8135_v30, %v8133_v13  ;;  %4379 = vrot.lane.b32.xlu1 %v6216_v48, %s6944_s14  ;;  %v3315_v9 = vshll.u32 %v3224_v10, 16  ;;  %v2892_v59 = vshrl.u32 %v2463_v11, 16  ;;  %v2895_v14 = vshll.u32 %v2463_v11, 16  ;;  %v6887_v46 = vld [vmem:[%s9601_s3 + $0x108] sm:$0xff]  }
 0x19f   :  { %v2906_v36 = vshrl.u32 %v2464_v23, 16  ;;  %4283 = vrot.lane.b32.xlu0 %v6200_v32, %s6944_s14  ;;  %v2715_v18 = vld [vmem:[#allocation2 + $0x1fc] sm:$0x1]  ;;  %v3299_v17 = vrot.slane %v3298_v41, 4  ;;  %v3303_v56 = vrot.slane %v3301_v42, 5  ;;  %v6187_v45 = vcombine.low %v2463_v11, %v2464_v23  ;;  %6574 = vmatpush3.bf16.msra.mxu0 %v6887_v46 }
 0x1a0   :  { %v2716_v61 = vld [vmem:[#allocation2 + $0x204] sm:$0x1]  ;;  %v2870_v54 = vor.u32 %v8146_v37, %v8144_v12  ;;  %v2845_v15 = vshll.u32 %v2715_v18, 16  ;;  %v3313_v30 = vrot.slane %v3312_v50, 4  ;;  %v3317_v62 = vrot.slane %v3315_v9, 5 }
 0x1a1   :  { %v2859_v13 = vshll.u32 %v2716_v61, 16  ;;  %v3304_v58 = vsel %vm7371_vm7, %v3299_v17, %v3303_v56  ;;  %v8192_v44 = vrot.slane %v2892_v59, 4  ;;  %v8194_v55 = vrot.slane %v2895_v14, 5  ;;  %v1349_v42 = vld [vmem:[#allocation2 + $0x21c] sm:$0x1] }
 0x1a2   :  { %v8196_v31 = vrot.slane %v2906_v36, 4  ;;  %v2847_v6 = vrot.slane %v2845_v15, 5  ;;  %v3318_v12 = vsel %vm7371_vm7, %v3313_v30, %v3317_v62  ;;  %v2909_v37 = vshll.u32 %v2464_v23, 16  ;;  %4225 = vrot.lane.b32.xlu1 %v6187_v45, %s6944_s14  ;;  %v2466_v23 = vld [vmem:[#allocation2 + $0x230] sm:$0xf] }
 0x1a3   :  { %v2861_v28 = vrot.slane %v2859_v13, 5  ;;  %4439 = vrot.lane.b32.xlu0 %v6230_v1, %s6944_s14  ;;  %v6231_v60 = vcombine.low %v3304_v58, %v3318_v12  ;;  %v1342_v52 = vsel %vm7079_vm3, 0, %v1341_v51  ;;  %v1346_v24 = vsel %vm7079_vm3, 0, %v1345_v34  ;;  %v1353_v50 = vld [vmem:[#allocation2 + $0x224] sm:$0x1] }
 0x1a4   :  { %v8206_v47 = vrot.slane %v2870_v54, 4  ;;  %v2848_v0 = vsel %vm7371_vm7, %v2843_v63, %v2847_v6  ;;  %v8215_v16 = vrot.slane %v2909_v37, 5  ;;  %1343 = vst [vmem:[#allocation2 + $0x20c] sm:$0x1] %v1342_v52  ;;  %1347 = vst [vmem:[#allocation2 + $0x214] sm:$0x1] %v1346_v24  ;;  %v2884_v49 = vor.u32 %v8150_v25, %v8148_v7 }
 0x1a5   :  { %v2862_v1 = vsel %vm7371_vm7, %v2857_v20, %v2861_v28  ;;  %v3348_v10 = vshrl.u32 %v2971_v38, 16  ;;  %v3351_v11 = vshll.u32 %v2971_v38, 16  ;;  %v3362_v2 = vshrl.u32 %v2972_v27, 16  ;;  %v2973_v51 = vld [vmem:[#allocation2 + $0xf0] sm:$0xf] }
 0x1a6   :  { %v6201_v29 = vcombine.low %v2848_v0, %v2862_v1  ;;  %v8222_v4 = vrot.slane %v2884_v49, 4  ;;  %v3365_v5 = vshll.u32 %v2972_v27, 16  ;;  %v6217_v63 = vcombine.low %v2971_v38, %v2972_v27  ;;  %v2974_v30 = vld [vmem:[#allocation2 + $0xf8] sm:$0xf]  ;;  %v3228_v27 = vld [vmem:[#allocation2 + $0xec] sm:$0x1] }
 0x1a7   :  { %v1186_v43 = vsel %vm7079_vm3, 0, %v1185_v57  ;;  %v8227_v7 = vrot.slane %v3348_v10, 4  ;;  %v8229_v25 = vrot.slane %v3351_v11, 5  ;;  %v8231_v20 = vrot.slane %v3362_v2, 4  ;;  %v3479_v57 = vld [vmem:[#allocation2 + $0x1c8] sm:$0xf] }
 0x1a8   :  { %4285 = vrot.lane.b32.xlu0 %v6201_v29, %s6944_s14  ;;  %1187 = vst [vmem:[#allocation2 + $0xd4] sm:$0x1] %v1186_v43  ;;  %v3326_v53 = vor.u32 %v8170_v3, %v8168_v40  ;;  %v8235_v19 = vrot.slane %v3365_v5, 5  ;;  %4381 = vrot.lane.b32.xlu1 %v6217_v63, %s6944_s14  ;;  %v3329_v48 = vshll.u32 %v3225_v8, 16  ;;  %v3340_v32 = vor.u32 %v8180_v26, %v8172_v35  ;;  %v1357_v63 = vld [vmem:[#allocation2 + $0x22c] sm:$0x1] }
 0x1a9   :  { %v2920_v41 = vshrl.u32 %v2465_v33, 16  ;;  %v2923_v59 = vshll.u32 %v2465_v33, 16  ;;  %v2934_v14 = vshrl.u32 %v2466_v23, 16  ;;  %v2937_v36 = vshll.u32 %v2466_v23, 16 }
 0x1aa   :  { %v8240_v9 = vrot.slane %v3326_v53, 4  ;;  %v8242_v34 = vrot.slane %v3329_v48, 5  ;;  %v8244_v40 = vrot.slane %v3340_v32, 4  ;;  %v6188_v18 = vcombine.low %v2465_v33, %v2466_v23  ;;  %v3480_v33 = vld [vmem:[#allocation2 + $0x1d0] sm:$0xf] }
 0x1ab   :  { %v8246_v3 = vrot.slane %v2920_v41, 4  ;;  %v2717_v61 = vld [vmem:[#allocation2 + $0x20c] sm:$0x1]  ;;  %v2718_v35 = vld [vmem:[#allocation2 + $0x214] sm:$0x1]  ;;  %v8249_v26 = vrot.slane %v2923_v59, 5  ;;  %v2898_v56 = vor.u32 %v8194_v55, %v8192_v44  ;;  %v2912_v13 = vor.u32 %v8215_v16, %v8196_v31 }
 0x1ac   :  { %4441 = vrot.lane.b32.xlu0 %v6231_v60, %s6944_s14  ;;  %v8251_v17 = vrot.slane %v2934_v14, 4  ;;  %v2873_v45 = vshll.u32 %v2717_v61, 16  ;;  %v2887_v54 = vshll.u32 %v2718_v35, 16  ;;  %v3332_v15 = vsel %vm7371_vm7, %v8240_v9, %v8242_v34  ;;  %4227 = vrot.lane.b32.xlu1 %v6188_v18, %s6944_s14  ;;  %v3227_v55 = vld [vmem:[#allocation2 + $0xe4] sm:$0x1] }
 0x1ad   :  { %v8262_v62 = vrot.slane %v2937_v36, 5  ;;  %v1350_v38 = vsel %vm7079_vm3, 0, %v1349_v42  ;;  %v1354_v58 = vsel %vm7079_vm3, 0, %v1353_v50  ;;  %v8268_v44 = vrot.slane %v2898_v56, 4  ;;  %v1361_v32 = vld [vmem:[#allocation2 + $0x234] sm:$0x1] }
 0x1ae   :  { %v2875_v6 = vrot.slane %v2873_v45, 5  ;;  %v2889_v28 = vrot.slane %v2887_v54, 5  ;;  %1351 = vst [vmem:[#allocation2 + $0x21c] sm:$0x1] %v1350_v38  ;;  %1355 = vst [vmem:[#allocation2 + $0x224] sm:$0x1] %v1354_v58  ;;  %v6218_v8 = vcombine.low %v2973_v51, %v2974_v30  ;;  %v3354_v11 = vor.u32 %v8229_v25, %v8227_v7 }
 0x1af   :  { %v3226_v12 = vld [vmem:[#allocation2 + $0xd4] sm:$0x1]  ;;  %v3376_v37 = vshrl.u32 %v2973_v51, 16  ;;  %v3379_v31 = vshll.u32 %v2973_v51, 16  ;;  %v3390_v52 = vshrl.u32 %v2974_v30, 16  ;;  %v3393_v24 = vshll.u32 %v2974_v30, 16 }
 0x1b0   :  { %v3343_v60 = vshll.u32 %v3226_v12, 16  ;;  %v2876_v39 = vsel %vm7371_vm7, %v8206_v47, %v2875_v6  ;;  %v2890_v0 = vsel %vm7371_vm7, %v8222_v4, %v2889_v28  ;;  %v8276_v1 = vrot.slane %v2912_v13, 4  ;;  %4383 = vrot.lane.b32.xlu1 %v6218_v8, %s6944_s14  ;;  %v6895_v47 = vld [vmem:[%s9601_s3 + $0x140] sm:$0xff]   ;;  %v8301_v7 = vld [vmem:[%s9601_s3 + $0x1f8] sm:$0xff]   ;;  %v8323_v30 = vld [vmem:[#allocation2 + $0x8] sm:$0xf] }
 0x1b1   :  { %v8278_v16 = vrot.slane %v3376_v37, 4  ;;  %v6202_v49 = vcombine.low %v2876_v39, %v2890_v0  ;;  %v8280_v29 = vrot.slane %v3379_v31, 5  ;;  %v8282_v10 = vrot.slane %v3390_v52, 4  ;;  %6575 = vmatprep.subr.bf16.mxu0 %v6895_v47  ;;  %v6896_v25 = vld [vmem:[%s9601_s3 + $0x100] sm:$0xff]   ;;  %v1953_v12 = vld [vmem:[#allocation2 + $0xc] sm:$0x1] }
 0x1b2   :  { %v3345_v46 = vrot.slane %v3343_v60, 5  ;;  %v3357_v2 = vshll.u32 %v3227_v55, 16  ;;  %v3368_v4 = vor.u32 %v8235_v19, %v8231_v20  ;;  %v3371_v5 = vshll.u32 %v3228_v27, 16  ;;  %6576 = vmatpush3.bf16.msra.mxu0 %v6896_v25  ;;  %v1081_v35 = vld [vmem:[#allocation2 + $0x4] sm:$0x1] }
 0x1b3   :  { %4287 = vrot.lane.b32.xlu0 %v6202_v49, %s6944_s14  ;;  %v8296_v23 = vrot.slane %v3393_v24, 5  ;;  %v3778_v53 = vshrl.u32 %v3479_v57, 16  ;;  %v3781_v48 = vshll.u32 %v3479_v57, 16  ;;  %v3355_v20 = vrot.slane %v3354_v11, 4  ;;  %v8312_v56 = vld [vmem:[#allocation2] sm:$0xf]  ;;  %6625 = vmatprep.subr.bf16.mxu0 %v8301_v7 }
 0x1b4   :  { %v3346_v43 = vsel %vm7371_vm7, %v8244_v40, %v3345_v46  ;;  %v3359_v19 = vrot.slane %v3357_v2, 5  ;;  %v3369_v41 = vrot.slane %v3368_v4, 4  ;;  %v3792_v42 = vshrl.u32 %v3480_v33, 16  ;;  %v2975_v52 = vld [vmem:[#allocation2 + $0x100] sm:$0xf]  ;;  %v8346_v2 = vpop.permute.xlu0 %4117 }
 0x1b5   :  { %v6232_v50 = vcombine.low %v3332_v15, %v3346_v43  ;;  %v2719_v9 = vld [vmem:[#allocation2 + $0x21c] sm:$0x1]  ;;  %v2720_v59 = vld [vmem:[#allocation2 + $0x224] sm:$0x1]  ;;  %v3373_v14 = vrot.slane %v3371_v5, 5  ;;  %v8306_v36 = vrot.slane %v3778_v53, 4  ;;  %v6246_v51 = vcombine.low %v3479_v57, %v3480_v33 }
 0x1b6   :  { %v2901_v34 = vshll.u32 %v2719_v9, 16  ;;  %v2915_v40 = vshll.u32 %v2720_v59, 16  ;;  %v3360_v18 = vsel %vm7371_vm7, %v3355_v20, %v3359_v19  ;;  %v2926_v61 = vor.u32 %v8249_v26, %v8246_v3  ;;  %v3229_v53 = vld [vmem:[#allocation2 + $0xf4] sm:$0x1] }
 0x1b7   :  { %4443 = vrot.lane.b32.xlu0 %v6232_v50, %s6944_s14  ;;  %v3374_v45 = vsel %vm7371_vm7, %v3369_v41, %v3373_v14  ;;  %v8318_v54 = vrot.slane %v3781_v48, 5  ;;  %v3795_v15 = vshll.u32 %v3480_v33, 16  ;;  %4535 = vrot.lane.b32.xlu1 %v6246_v51, %s6944_s14  ;;  %v1358_v13 = vsel %vm7079_vm3, 0, %v1357_v63  ;;  %v2976_v33 = vld [vmem:[#allocation2 + $0x108] sm:$0xf] }
 0x1b8   :  { %v2903_v3 = vrot.slane %v2901_v34, 5  ;;  %v2917_v26 = vrot.slane %v2915_v40, 5  ;;  %v8325_v38 = vrot.slane %v3792_v42, 4  ;;  %1359 = vst [vmem:[#allocation2 + $0x22c] sm:$0x1] %v1358_v13  ;;  %v1362_v58 = vsel %vm7079_vm3, 0, %v1361_v32 }
 0x1b9   :  { %v6233_v55 = vcombine.low %v3360_v18, %v3374_v45  ;;  %v8329_v27 = vrot.slane %v3795_v15, 5  ;;  %1363 = vst [vmem:[#allocation2 + $0x234] sm:$0x1] %v1362_v58  ;;  %v2940_v6 = vor.u32 %v8262_v62, %v8251_v17  ;;  %v1082_v28 = vsel %vm7079_vm3, 0, %v1081_v35  ;;  %v3230_v41 = vld [vmem:[#allocation2 + $0xfc] sm:$0x1] }
 0x1ba   :  { %v2904_v37 = vsel %vm7371_vm7, %v8268_v44, %v2903_v3  ;;  %v2918_v31 = vsel %vm7371_vm7, %v8276_v1, %v2917_v26  ;;  %1083 = vst [vmem:[#allocation2 + $0x4] sm:$0x1] %v1082_v28  ;;  %v1972_v57 = vshrl.u32 %v8312_v56, 16  ;;  %v1975_v60 = vshll.u32 %v8312_v56, 16  ;;  %v8362_v3 = vld [vmem:[#allocation2 + $0x10] sm:$0xf] }
 0x1bb   :  { %v6203_v24 = vcombine.low %v2904_v37, %v2918_v31  ;;  %v2927_v17 = vrot.slane %v2926_v61, 4  ;;  %v1986_v62 = vshrl.u32 %v8323_v30, 16  ;;  %v1989_v8 = vshll.u32 %v8323_v30, 16  ;;  %v8366_v28 = vld [vmem:[#allocation2 + $0x18] sm:$0xf] }
 0x1bc   :  { %v2941_v39 = vrot.slane %v2940_v6, 4  ;;  %v1974_v0 = vrot.slane %v1972_v57, 4  ;;  %v1977_v44 = vrot.slane %v1975_v60, 5  ;;  %v1995_v49 = vshll.u32 %v1953_v12, 16  ;;  %v4054_v12 = vpop.permute.xlu0 %4053  ;;  %v1954_v60 = vld [vmem:[#allocation2 + $0x14] sm:$0x1] }
 0x1bd   :  { %4289 = vrot.lane.b32.xlu0 %v6203_v24, %s6944_s14  ;;  %v1988_v1 = vrot.slane %v1986_v62, 4  ;;  %v1991_v46 = vrot.slane %v1989_v8, 5  ;;  %v3404_v47 = vshrl.u32 %v2975_v52, 16  ;;  %v3407_v11 = vshll.u32 %v2975_v52, 16  ;;  %v1955_v8 = vld [vmem:[#allocation2 + $0x1c] sm:$0x1] }
 0x1be   :  { %v1978_v4 = vor.u32 %v1977_v44, %v1974_v0  ;;  %v1997_v5 = vrot.slane %v1995_v49, 5  ;;  %vm4613_vm4 = vcmask 523264   ;;  %v3418_v63 = vshrl.u32 %v2976_v33, 16 }
 0x1bf   :  { %v3421_v43 = vshll.u32 %v2976_v33, 16  ;;  %v2721_v48 = vld [vmem:[#allocation2 + $0x22c] sm:$0x1]  ;;  %v1992_v32 = vor.u32 %v1991_v46, %v1988_v1  ;;  %v8348_v25 = vrot.slane %v3404_v47, 4  ;;  %v8350_v20 = vrot.slane %v3407_v11, 5 }
 0x1c0   :  { %v6219_v19 = vcombine.low %v2975_v52, %v2976_v33  ;;  %v2722_v42 = vld [vmem:[#allocation2 + $0x234] sm:$0x1]  ;;  %v2929_v50 = vshll.u32 %v2721_v48, 16  ;;  %v1979_v9 = vrot.slane %v1978_v4, 4  ;;  %v8352_v59 = vrot.slane %v3418_v63, 4 }
 0x1c1   :  { %v8354_v14 = vrot.slane %v3421_v43, 5  ;;  %4445 = vrot.lane.b32.xlu0 %v6233_v55, %s6944_s14  ;;  %v2943_v51 = vshll.u32 %v2722_v42, 16  ;;  %v1952_v34 = vld [vmem:[#allocation2 + $0x4] sm:$0x1]  ;;  %v1993_v40 = vrot.slane %v1992_v32, 4  ;;  %v3382_v18 = vor.u32 %v8280_v29, %v8278_v16 }
 0x1c2   :  { %4385 = vrot.lane.b32.xlu1 %v6219_v19, %s6944_s14  ;;  %v3385_v61 = vshll.u32 %v3229_v53, 16  ;;  %v2931_v35 = vrot.slane %v2929_v50, 5  ;;  %v1981_v45 = vshll.u32 %v1952_v34, 16  ;;  %v3396_v15 = vor.u32 %v8296_v23, %v8282_v10  ;;  %v3736_v32 = vld [vmem:[#allocation2 + $0x1d4] sm:$0x1] }
 0x1c3   :  { %v3399_v13 = vshll.u32 %v3230_v41, 16  ;;  %v2945_v26 = vrot.slane %v2943_v51, 5  ;;  %v1998_v58 = vsel %vm7371_vm7, %v1993_v40, %v1997_v5  ;;  %v3383_v55 = vrot.slane %v3382_v18, 4  ;;  %v3735_v5 = vld [vmem:[#allocation2 + $0x1cc] sm:$0x1]  ;;  %v6859_v19 = vld [vmem:[%s9601_s3 + $0xf0] sm:$0xff]  }
 0x1c4   :  { %v3387_v6 = vrot.slane %v3385_v61, 5  ;;  %v2932_v16 = vsel %vm7371_vm7, %v2927_v17, %v2931_v35  ;;  %v1983_v29 = vrot.slane %v1981_v45, 5  ;;  %v3397_v37 = vrot.slane %v3396_v15, 4  ;;  %v2977_v51 = vld [vmem:[#allocation2 + $0x110] sm:$0xf] }
 0x1c5   :  { %v3401_v31 = vrot.slane %v3399_v13, 5  ;;  %v2946_v10 = vsel %vm7371_vm7, %v2941_v39, %v2945_v26  ;;  %v6141_v57 = vcombine.low %v8312_v56, %v8323_v30  ;;  %v2000_v52 = vshrl.u32 %v8362_v3, 16  ;;  %v3481_v39 = vld [vmem:[#allocation2 + $0x1d8] sm:$0xf]  ;;  %v3482_v30 = vld [vmem:[#allocation2 + $0x1e0] sm:$0xf] }
 0x1c6   :  { %v3388_v23 = vsel %vm7371_vm7, %v3383_v55, %v3387_v6  ;;  %v6204_v24 = vcombine.low %v2932_v16, %v2946_v10  ;;  %v1984_v17 = vsel %vm7371_vm7, %v1979_v9, %v1983_v29  ;;  %v2003_v33 = vshll.u32 %v8362_v3, 16  ;;  %v6853_v56 = vld [vmem:[%s9601_s3 + $0xb8] sm:$0xff]   ;;  %v6860_v34 = vld [vmem:[%s9601_s3 + $0xb0] sm:$0xff]  }
 0x1c7   :  { %v3402_v62 = vsel %vm7371_vm7, %v3397_v37, %v3401_v31  ;;  %v6157_v0 = vcombine.low %v1984_v17, %v1998_v58  ;;  %v4616_v49 = vsel %vm4613_vm4, %v6141_v57, %v4054_v12  ;;  %v2002_v1 = vrot.slane %v2000_v52, 4  ;;  %v2978_v35 = vld [vmem:[#allocation2 + $0x118] sm:$0xf]  ;;  %v4120_v58 = vpop.permute.xlu1 %4119  ;;  %v6864_v12 = vld [vmem:[%s9601_s3 + $0xe8] sm:$0xff]   ;;  %v3231_v52 = vld [vmem:[#allocation2 + $0x104] sm:$0x1] }
 0x1c8   :  { %v6234_v44 = vcombine.low %v3388_v23, %v3402_v62  ;;  %4291 = vrot.lane.b32.xlu0 %v6204_v24, %s6944_s14  ;;  %v2005_v46 = vrot.slane %v2003_v33, 5  ;;  %v2009_v47 = vshll.u32 %v1954_v60, 16  ;;  %v2014_v11 = vshrl.u32 %v8366_v28, 16 }
 0x1c9   :  { %v2017_v4 = vshll.u32 %v8366_v28, 16  ;;  %v4648_v63 = vsel %vm4613_vm4, %v6157_v0, %v8346_v2  ;;  %v2023_v43 = vshll.u32 %v1955_v8, 16  ;;  %v3806_v53 = vshrl.u32 %v3481_v39, 16  ;;  %v8418_v8 = vld [vmem:[#allocation2 + $0x20] sm:$0xf] }
 0x1ca   :  { %v3809_v48 = vshll.u32 %v3481_v39, 16  ;;  %5421 = vmatprep.mubr.bf16.mxu1 %v4648_v63  ;;  %v2006_v41 = vor.u32 %v2005_v46, %v2002_v1  ;;  %v2011_v42 = vrot.slane %v2009_v47, 5  ;;  %v2016_v50 = vrot.slane %v2014_v11, 4  ;;  %v6865_v1 = vld [vmem:[%s9601_s3 + $0xa8] sm:$0xff]  }
 0x1cb   :  { %v2019_v9 = vrot.slane %v2017_v4, 5  ;;  %5422 = vmatmul.mubr.bf16.vlgmr.msra.gmra.mxu1 %v4616_v49  ;;  %v2025_v2 = vrot.slane %v2023_v43, 5  ;;  %v8397_v40 = vrot.slane %v3806_v53, 4  ;;  %v3820_v61 = vshrl.u32 %v3482_v30, 16  ;;  %v1956_v49 = vld [vmem:[#allocation2 + $0x24] sm:$0x1] }
 0x1cc   :  { %v8399_v18 = vrot.slane %v3809_v48, 5  ;;  %4447 = vrot.lane.b32.xlu0 %v6234_v44, %s6944_s14  ;;  %v2007_v45 = vrot.slane %v2006_v41, 4  ;;  %6498 = vmatpush3.bf16.msra.mxu1 %v6853_v56  ;;  %v3823_v13 = vshll.u32 %v3482_v30, 16  ;;  %v6247_v26 = vcombine.low %v3481_v39, %v3482_v30  ;;  %v6871_v56 = vld [vmem:[%s9601_s3 + $0xe0] sm:$0xff]  }
 0x1cd   :  { %v2020_v15 = vor.u32 %v2019_v9, %v2016_v50  ;;  %v8402_v55 = vrot.slane %v3820_v61, 4  ;;  %v3784_v6 = vor.u32 %v8318_v54, %v8306_v36  ;;  %v3787_v16 = vshll.u32 %v3735_v5, 16  ;;  %6499 = vmatprep.subr.bf16.mxu1 %v6859_v19  ;;  %v4056_v5 = vpop.permute.xlu1 %4055  ;;  %v1957_v50 = vld [vmem:[#allocation2 + $0x2c] sm:$0x1]  ;;  %v6876_v61 = vld [vmem:[%s9601_s3 + $0xd8] sm:$0xff]  }
 0x1ce   :  { %v3798_v29 = vor.u32 %v8329_v27, %v8325_v38  ;;  %v2012_v37 = vsel %vm7371_vm7, %v2007_v45, %v2011_v42  ;;  %v8413_v10 = vrot.slane %v3823_v13, 5  ;;  %4537 = vrot.lane.b32.xlu1 %v6247_v26, %s6944_s14  ;;  %v3801_v23 = vshll.u32 %v3736_v32, 16  ;;  %v3232_v38 = vld [vmem:[#allocation2 + $0x10c] sm:$0x1]  ;;  %v8446_v42 = vld [vmem:[#allocation2 + $0x28] sm:$0xf] }
 0x1cf   :  { %v2021_v31 = vrot.slane %v2020_v15, 4  ;;  %v3785_v57 = vrot.slane %v3784_v6, 4  ;;  %v3789_v36 = vrot.slane %v3787_v16, 5  ;;  %v3432_v60 = vshrl.u32 %v2977_v51, 16  ;;  %v3484_v26 = vld [vmem:[#allocation2 + $0x1f0] sm:$0xf] }
 0x1d0   :  { %v3799_v54 = vrot.slane %v3798_v29, 4  ;;  %v3803_v24 = vrot.slane %v3801_v23, 5  ;;  %v3435_v17 = vshll.u32 %v2977_v51, 16  ;;  %v3446_v62 = vshrl.u32 %v2978_v35, 16  ;;  %6500 = vmatpush3.bf16.msra.mxu1 %v6860_v34 }
 0x1d1   :  { %v2026_v27 = vsel %vm7371_vm7, %v2021_v31, %v2025_v2  ;;  %v3790_v39 = vsel %vm7371_vm7, %v3785_v57, %v3789_v36  ;;  %v8422_v0 = vrot.slane %v3432_v60, 4  ;;  %v3449_v44 = vshll.u32 %v2978_v35, 16  ;;  %6501 = vmatprep.subr.bf16.mxu1 %v6864_v12  ;;  %v3737_v12 = vld [vmem:[#allocation2 + $0x1dc] sm:$0x1]  ;;  %v3738_v36 = vld [vmem:[#allocation2 + $0x1e4] sm:$0x1] }
 0x1d2   :  { %v6158_v33 = vcombine.low %v2012_v37, %v2026_v27  ;;  %v3804_v30 = vsel %vm7371_vm7, %v3799_v54, %v3803_v24  ;;  %v8432_v46 = vrot.slane %v3435_v17, 5  ;;  %v8434_v47 = vrot.slane %v3446_v62, 4  ;;  %v8464_v54 = vld [vmem:[#allocation2 + $0x1b8] sm:$0xf] }
 0x1d3   :  { %v6220_v11 = vcombine.low %v2977_v51, %v2978_v35  ;;  %v6262_v63 = vcombine.low %v3790_v39, %v3804_v30  ;;  %v8437_v43 = vrot.slane %v3449_v44, 5  ;;  %v3410_v53 = vor.u32 %v8350_v20, %v8348_v25  ;;  %v6877_v60 = vld [vmem:[%s9601_s3 + $0x98] sm:$0xff]  }
 0x1d4   :  { %v4652_v4 = vsel %vm4613_vm4, %v6158_v33, %v4120_v58  ;;  %v3413_v48 = vshll.u32 %v3231_v52, 16  ;;  %v3424_v32 = vor.u32 %v8354_v14, %v8352_v59  ;;  %v3427_v19 = vshll.u32 %v3232_v38, 16  ;;  %6502 = vmatpush3.bf16.msra.mxu1 %v6865_v1  ;;  %v6872_v59 = vld [vmem:[%s9601_s3 + $0xa0] sm:$0xff]   ;;  %v6881_v52 = vld [vmem:[%s9601_s3 + $0xd0] sm:$0xff]  }
 0x1d5   :  { %5429 = vmatprep.mubr.bf16.mxu1 %v4652_v4  ;;  %4387 = vrot.lane.b32.xlu1 %v6220_v11, %s6944_s14  ;;  %v6142_v41 = vcombine.low %v8362_v3, %v8366_v28  ;;  %v3411_v9 = vrot.slane %v3410_v53, 4  ;;  %v2028_v51 = vshrl.u32 %v8418_v8, 16  ;;  %v2031_v25 = vshll.u32 %v8418_v8, 16  ;;  %v3483_v28 = vld [vmem:[#allocation2 + $0x1e8] sm:$0xf] }
 0x1d6   :  { %4599 = vrot.lane.b32.xlu0 %v6262_v63, %s6944_s14  ;;  %v2037_v20 = vshll.u32 %v1956_v49, 16  ;;  %v3415_v14 = vrot.slane %v3413_v48, 5  ;;  %v3425_v34 = vrot.slane %v3424_v32, 4  ;;  %v3429_v2 = vrot.slane %v3427_v19, 5  ;;  %6503 = vmatprep.subr.bf16.mxu1 %v6871_v56  ;;  %v3478_v11 = vld [vmem:[#allocation2 + $0x1c0] sm:$0xf] }
 0x1d7   :  { %v4620_v3 = vsel %vm4613_vm4, %v6142_v41, %v4056_v5  ;;  %v2030_v35 = vrot.slane %v2028_v51, 4  ;;  %v2033_v45 = vrot.slane %v2031_v25, 5  ;;  %v2042_v13 = vshrl.u32 %v8446_v42, 16  ;;  %v1221_v48 = vld [vmem:[#allocation2 + $0x11c] sm:$0x1]  ;;  %v6882_v32 = vld [vmem:[%s9601_s3 + $0x90] sm:$0xff]  }
 0x1d8   :  { %5430 = vmatmul.mubr.bf16.gmra.mxu1 %v4620_v3  ;;  %v2039_v15 = vrot.slane %v2037_v20, 5  ;;  %v3416_v58 = vsel %vm7371_vm7, %v3411_v9, %v3415_v14  ;;  %v3430_v6 = vsel %vm7371_vm7, %v3425_v34, %v3429_v2  ;;  %v2045_v16 = vshll.u32 %v8446_v42, 16  ;;  %v3233_v25 = vld [vmem:[#allocation2 + $0x114] sm:$0x1]  ;;  %v4122_v20 = vpop.permute.xlu0 %4121  ;;  %v8500_v3 = vld [vmem:[#allocation2 + $0x30] sm:$0xf] }
 0x1d9   :  { %v2051_v29 = vshll.u32 %v1957_v50, 16  ;;  %v6235_v37 = vcombine.low %v3416_v58, %v3430_v6  ;;  %v2034_v31 = vor.u32 %v2033_v45, %v2030_v35  ;;  %v2044_v23 = vrot.slane %v2042_v13, 4  ;;  %6504 = vmatpush3.bf16.msra.mxu1 %v6872_v59  ;;  %v6884_v50 = vld [vmem:[%s9601_s3 + $0xc8] sm:$0xff]   ;;  %v1958_v13 = vld [vmem:[#allocation2 + $0x34] sm:$0x1]  ;;  %v6890_v58 = vld [vmem:[%s9601_s3 + $0xc0] sm:$0xff]  }
 0x1da   :  { %v3834_v57 = vshrl.u32 %v3483_v28, 16  ;;  %v2047_v38 = vrot.slane %v2045_v16, 5  ;;  %v3837_v24 = vshll.u32 %v3483_v28, 16  ;;  %v3848_v17 = vshrl.u32 %v3484_v26, 16  ;;  %6505 = vmatprep.subr.bf16.mxu1 %v6876_v61 }
 0x1db   :  { %v2053_v27 = vrot.slane %v2051_v29, 5  ;;  %4449 = vrot.lane.b32.xlu0 %v6235_v37, %s6944_s14  ;;  %v2035_v62 = vrot.slane %v2034_v31, 4  ;;  %v3851_v39 = vshll.u32 %v3484_v26, 16  ;;  %v6248_v44 = vcombine.low %v3483_v28, %v3484_v26  ;;  %v8502_v28 = vld [vmem:[#allocation2 + $0x38] sm:$0xf]  ;;  %v6885_v26 = vld [vmem:[%s9601_s3 + $0x88] sm:$0xff]   ;;  %v4058_v37 = vpop.permute.xlu1 %4057 }
 0x1dc   :  { %v8473_v33 = vrot.slane %v3834_v57, 4  ;;  %v2048_v49 = vor.u32 %v2047_v38, %v2044_v23  ;;  %v8475_v1 = vrot.slane %v3837_v24, 5  ;;  %v8477_v56 = vrot.slane %v3848_v17, 4  ;;  %v3485_v24 = vld [vmem:[#allocation2 + $0x200] sm:$0xf] }
 0x1dd   :  { %v3812_v30 = vor.u32 %v8399_v18, %v8397_v40  ;;  %v2040_v4 = vsel %vm7371_vm7, %v2035_v62, %v2039_v15  ;;  %v8483_v5 = vrot.slane %v3851_v39, 5  ;;  %4539 = vrot.lane.b32.xlu1 %v6248_v44, %s6944_s14  ;;  %v3815_v63 = vshll.u32 %v3737_v12, 16  ;;  %6506 = vmatpush3.bf16.msra.mxu1 %v6877_v60  ;;  %v3486_v44 = vld [vmem:[#allocation2 + $0x208] sm:$0xf] }
 0x1de   :  { %v3826_v53 = vor.u32 %v8413_v10, %v8402_v55  ;;  %v2049_v19 = vrot.slane %v2048_v49, 4  ;;  %v3829_v18 = vshll.u32 %v3738_v36, 16  ;;  %v3750_v41 = vshrl.u32 %v8464_v54, 16  ;;  %6507 = vmatprep.subr.bf16.mxu1 %v6881_v52  ;;  %v1959_v52 = vld [vmem:[#allocation2 + $0x3c] sm:$0x1] }
 0x1df   :  { %v3813_v40 = vrot.slane %v3812_v30, 4  ;;  %v3817_v9 = vrot.slane %v3815_v63, 5  ;;  %v3753_v55 = vshll.u32 %v8464_v54, 16  ;;  %v3764_v10 = vshrl.u32 %v3478_v11, 16  ;;  %v1329_v63 = vld [vmem:[#allocation2 + $0x1f4] sm:$0x1] }
 0x1e0   :  { %v3827_v51 = vrot.slane %v3826_v53, 4  ;;  %v2054_v59 = vsel %vm7371_vm7, %v2049_v19, %v2053_v27  ;;  %v3831_v14 = vrot.slane %v3829_v18, 5  ;;  %v8498_v34 = vrot.slane %v3750_v41, 4 }
 0x1e1   :  { %v3767_v2 = vshll.u32 %v3478_v11, 16  ;;  %v6159_v61 = vcombine.low %v2040_v4, %v2054_v59  ;;  %v3818_v35 = vsel %vm7371_vm7, %v3813_v40, %v3817_v9  ;;  %v8506_v45 = vrot.slane %v3753_v55, 5  ;;  %6508 = vmatpush3.bf16.msra.mxu1 %v6882_v32  ;;  %v3487_v40 = vld [vmem:[#allocation2 + $0x210] sm:$0xf] }
 0x1e2   :  { %v8508_v15 = vrot.slane %v3764_v10, 4  ;;  %v3832_v6 = vsel %vm7371_vm7, %v3827_v51, %v3831_v14  ;;  %v6245_v29 = vcombine.low %v8464_v54, %v3478_v11  ;;  %v1222_v12 = vsel %vm7079_vm3, 0, %v1221_v48  ;;  %6509 = vmatprep.subr.bf16.mxu1 %v6884_v50  ;;  %v3739_v51 = vld [vmem:[#allocation2 + $0x1ec] sm:$0x1] }
 0x1e3   :  { %v8518_v16 = vrot.slane %v3767_v2, 5  ;;  %v4656_v31 = vsel %vm4613_vm4, %v6159_v61, %v4122_v20  ;;  %v6263_v23 = vcombine.low %v3818_v35, %v3832_v6  ;;  %1223 = vst [vmem:[#allocation2 + $0x11c] sm:$0x1] %v1222_v12  ;;  %v3438_v57 = vor.u32 %v8432_v46, %v8422_v0 }
 0x1e4   :  { %v3441_v36 = vshll.u32 %v3233_v25, 16  ;;  %5437 = vmatprep.mubr.bf16.mxu1 %v4656_v31  ;;  %4533 = vrot.lane.b32.xlu1 %v6245_v29, %s6944_s14  ;;  %v3452_v60 = vor.u32 %v8437_v43, %v8434_v47  ;;  %v6143_v54 = vcombine.low %v8418_v8, %v8446_v42  ;;  %v2056_v38 = vshrl.u32 %v8500_v3, 16  ;;  %v6891_v47 = vld [vmem:[%s9601_s3 + $0x80] sm:$0xff]  }
 0x1e5   :  { %v2059_v27 = vshll.u32 %v8500_v3, 16  ;;  %4601 = vrot.lane.b32.xlu0 %v6263_v23, %s6944_s14  ;;  %v8534_v17 = vrot.slane %v3438_v57, 4  ;;  %v2065_v46 = vshll.u32 %v1958_v13, 16  ;;  %v2070_v62 = vshrl.u32 %v8502_v28, 16  ;;  %6510 = vmatpush3.bf16.msra.mxu1 %v6885_v26  ;;  %v3488_v13 = vld [vmem:[#allocation2 + $0x218] sm:$0xf] }
 0x1e6   :  { %v3443_v0 = vrot.slane %v3441_v36, 5  ;;  %v3453_v8 = vrot.slane %v3452_v60, 4  ;;  %v4624_v43 = vsel %vm4613_vm4, %v6143_v54, %v4058_v37  ;;  %v2058_v42 = vrot.slane %v2056_v38, 4  ;;  %6511 = vmatprep.subr.bf16.mxu1 %v6890_v58 }
 0x1e7   :  { %v2061_v39 = vrot.slane %v2059_v27, 5  ;;  %5438 = vmatmul.mubr.bf16.gmra.mxu1 %v4624_v43  ;;  %v2067_v30 = vrot.slane %v2065_v46, 5  ;;  %v2072_v11 = vrot.slane %v2070_v62, 4  ;;  %v2073_v4 = vshll.u32 %v8502_v28, 16  ;;  %v1117_v62 = vld [vmem:[#allocation2 + $0x4c] sm:$0x1] }
 0x1e8   :  { %v3444_v49 = vsel %vm7371_vm7, %v8534_v17, %v3443_v0  ;;  %v2079_v48 = vshll.u32 %v1959_v52, 16  ;;  %v3862_v32 = vshrl.u32 %v3485_v24, 16  ;;  %v3865_v19 = vshll.u32 %v3485_v24, 16  ;;  %v4124_v52 = vpop.permute.xlu0 %4123  ;;  %v3734_v17 = vld [vmem:[#allocation2 + $0x1c4] sm:$0x1] }
 0x1e9   :  { %v2062_v53 = vor.u32 %v2061_v39, %v2058_v42  ;;  %v2075_v18 = vrot.slane %v2073_v4, 5  ;;  %v3876_v41 = vshrl.u32 %v3486_v44, 16  ;;  %v3879_v50 = vshll.u32 %v3486_v44, 16  ;;  %6512 = vmatpush3.bf16.msra.mxu1 %v6891_v47  ;;  %v8583_v39 = vld [vmem:[#allocation2 + $0x48] sm:$0xf] }
 0x1ea   :  { %v6249_v9 = vcombine.low %v3485_v24, %v3486_v44  ;;  %v3234_v55 = vld [vmem:[#allocation2 + $0x11c] sm:$0x1]  ;;  %v2081_v25 = vrot.slane %v2079_v48, 5  ;;  %v8545_v20 = vrot.slane %v3862_v32, 4  ;;  %v8547_v59 = vrot.slane %v3865_v19, 5  ;;  %6755 = vmatprep.subr.bf16.mxu1 %v8301_v7  ;;  %v4060_v7 = vpop.permute.xlu1 %4059 }
 0x1eb   :  { %v2063_v10 = vrot.slane %v2062_v53, 4  ;;  %v3455_v14 = vshll.u32 %v3234_v55, 16  ;;  %v2076_v2 = vor.u32 %v2075_v18, %v2072_v11  ;;  %v8550_v61 = vrot.slane %v3876_v41, 4  ;;  %v3733_v24 = vld [vmem:[#allocation2 + $0x1bc] sm:$0x1] }
 0x1ec   :  { %v8552_v35 = vrot.slane %v3879_v50, 5  ;;  %4541 = vrot.lane.b32.xlu1 %v6249_v9, %s6944_s14  ;;  %v1330_v58 = vsel %vm7079_vm3, 0, %v1329_v63  ;;  %v3840_v6 = vor.u32 %v8475_v1, %v8473_v33  ;;  %v3843_v29 = vshll.u32 %v3739_v51, 16  ;;  %v8589_v4 = vld [vmem:[#allocation2 + $0x50] sm:$0xf] }
 0x1ed   :  { %v2068_v26 = vsel %vm7371_vm7, %v2063_v10, %v2067_v30  ;;  %v3457_v12 = vrot.slane %v3455_v14, 5  ;;  %v2077_v37 = vrot.slane %v2076_v2, 4  ;;  %1331 = vst [vmem:[#allocation2 + $0x1f4] sm:$0x1] %v1330_v58  ;;  %v3854_v31 = vor.u32 %v8483_v5, %v8477_v56  ;;  %v1961_v32 = vld [vmem:[#allocation2 + $0x54] sm:$0x1] }
 0x1ee   :  { %v3890_v23 = vshrl.u32 %v3487_v40, 16  ;;  %v8563_v57 = vrot.slane %v3840_v6, 4  ;;  %v8565_v36 = vrot.slane %v3843_v29, 5  ;;  %v3893_v60 = vshll.u32 %v3487_v40, 16  ;;  %v8591_v63 = vpop.permute.xlu1 %4061  ;;  %v3490_v41 = vld [vmem:[#allocation2 + $0x228] sm:$0xf] }
 0x1ef   :  { %v3904_v54 = vshrl.u32 %v3488_v13, 16  ;;  %v3458_v38 = vsel %vm7371_vm7, %v3453_v8, %v3457_v12  ;;  %v2082_v33 = vsel %vm7371_vm7, %v2077_v37, %v2081_v25  ;;  %v3855_v1 = vrot.slane %v3854_v31, 4 }
 0x1f0   :  { %v8571_v27 = vrot.slane %v3890_v23, 4  ;;  %v6236_v56 = vcombine.low %v3444_v49, %v3458_v38  ;;  %v6160_v5 = vcombine.low %v2068_v26, %v2082_v33  ;;  %v3846_v0 = vsel %vm7371_vm7, %v8563_v57, %v8565_v36 }
 0x1f1   :  { %v8577_v46 = vrot.slane %v3893_v60, 5  ;;  %v8579_v47 = vrot.slane %v3904_v54, 4  ;;  %v3907_v8 = vshll.u32 %v3488_v13, 16  ;;  %v6250_v43 = vcombine.low %v3487_v40, %v3488_v13  ;;  %v3491_v60 = vld [vmem:[#allocation2 + $0x230] sm:$0xf] }
 0x1f2   :  { %v3756_v42 = vor.u32 %v8506_v45, %v8498_v34  ;;  %4451 = vrot.lane.b32.xlu0 %v6236_v56, %s6944_s14  ;;  %v4660_v44 = vsel %vm4613_vm4, %v6160_v5, %v4124_v52  ;;  %v3759_v49 = vshll.u32 %v3733_v24, 16  ;;  %v3770_v30 = vor.u32 %v8518_v16, %v8508_v15  ;;  %v8609_v37 = vpop.permute.xlu1 %4063  ;;  %v3741_v24 = vld [vmem:[#allocation2 + $0x204] sm:$0x1] }
 0x1f3   :  { %v3773_v11 = vshll.u32 %v3734_v17, 16  ;;  %5445 = vmatprep.mubr.bf16.mxu1 %v4660_v44  ;;  %v8593_v53 = vrot.slane %v3907_v8, 5  ;;  %4543 = vrot.lane.b32.xlu1 %v6250_v43, %s6944_s14  ;;  %v6144_v45 = vcombine.low %v8500_v3, %v8502_v28  ;;  %v1118_v48 = vsel %vm7079_vm3, 0, %v1117_v62  ;;  %v3489_v3 = vld [vmem:[#allocation2 + $0x220] sm:$0xf] }
 0x1f4   :  { %v3757_v34 = vrot.slane %v3756_v42, 4  ;;  %v3740_v19 = vld [vmem:[#allocation2 + $0x1f4] sm:$0x1]  ;;  %v3761_v15 = vrot.slane %v3759_v49, 5  ;;  %v3771_v16 = vrot.slane %v3770_v30, 4  ;;  %v2084_v18 = vshrl.u32 %v8583_v39, 16 }
 0x1f5   :  { %v3775_v40 = vrot.slane %v3773_v11, 5  ;;  %1119 = vst [vmem:[#allocation2 + $0x4c] sm:$0x1] %v1118_v48  ;;  %v3857_v50 = vshll.u32 %v3740_v19, 16  ;;  %v4628_v9 = vsel %vm4613_vm4, %v6144_v45, %v4060_v7  ;;  %v2087_v51 = vshll.u32 %v8583_v39, 16 }
 0x1f6   :  { %v2098_v55 = vshrl.u32 %v8589_v4, 16  ;;  %v3762_v28 = vsel %vm7371_vm7, %v3757_v34, %v3761_v15  ;;  %5446 = vmatmul.mubr.bf16.gmra.mxu1 %v4628_v9  ;;  %v2086_v25 = vrot.slane %v2084_v18, 4  ;;  %v2101_v14 = vshll.u32 %v8589_v4, 16  ;;  %v3742_v17 = vld [vmem:[#allocation2 + $0x20c] sm:$0x1]  ;;  %v8629_v18 = vpop.permute.xlu1 %4065 }
 0x1f7   :  { %v3776_v10 = vsel %vm7371_vm7, %v3771_v16, %v3775_v40  ;;  %v3859_v2 = vrot.slane %v3857_v50, 5  ;;  %v2089_v26 = vrot.slane %v2087_v51, 5  ;;  %v2107_v29 = vshll.u32 %v1961_v32, 16  ;;  %v3492_v34 = vld [vmem:[#allocation2 + $0x238] sm:$0xf] }
 0x1f8   :  { %v6261_v13 = vcombine.low %v3762_v28, %v3776_v10  ;;  %v2100_v58 = vrot.slane %v2098_v55, 4  ;;  %v2103_v6 = vrot.slane %v2101_v14, 5  ;;  %v3918_v7 = vshrl.u32 %v3489_v3, 16  ;;  %v3743_v16 = vld [vmem:[#allocation2 + $0x214] sm:$0x1] }
 0x1f9   :  { %v3921_v12 = vshll.u32 %v3489_v3, 16  ;;  %v3860_v31 = vsel %vm7371_vm7, %v3855_v1, %v3859_v2  ;;  %v2090_v23 = vor.u32 %v2089_v26, %v2086_v25  ;;  %v3932_v57 = vshrl.u32 %v3490_v41, 16  ;;  %v3744_v40 = vld [vmem:[#allocation2 + $0x21c] sm:$0x1]  ;;  %v8642_v14 = vld [vmem:[#allocation2 + $0x58] sm:$0xf] }
 0x1fa   :  { %v3935_v36 = vshll.u32 %v3490_v41, 16  ;;  %v6264_v54 = vcombine.low %v3846_v0, %v3860_v31  ;;  %v2104_v52 = vor.u32 %v2103_v6, %v2100_v58  ;;  %v2109_v38 = vrot.slane %v2107_v29, 5  ;;  %v1962_v6 = vld [vmem:[#allocation2 + $0x5c] sm:$0x1] }
 0x1fb   :  { %v8613_v33 = vrot.slane %v3918_v7, 4  ;;  %v2091_v5 = vrot.slane %v2090_v23, 4  ;;  %v8615_v62 = vrot.slane %v3921_v12, 5  ;;  %v8617_v8 = vrot.slane %v3932_v57, 4  ;;  %v8654_v23 = vld [vmem:[#allocation2 + $0x60] sm:$0xf] }
 0x1fc   :  { %v1960_v56 = vld [vmem:[#allocation2 + $0x4c] sm:$0x1]  ;;  %v8619_v43 = vrot.slane %v3935_v36, 5  ;;  %4603 = vrot.lane.b32.xlu0 %v6264_v54, %s6944_s14  ;;  %v2105_v42 = vrot.slane %v2104_v52, 4  ;;  %v6251_v44 = vcombine.low %v3489_v3, %v3490_v41  ;;  %v3868_v0 = vor.u32 %v8547_v59, %v8545_v20 }
 0x1fd   :  { %v2093_v1 = vshll.u32 %v1960_v56, 16  ;;  %v3871_v49 = vshll.u32 %v3741_v24, 16  ;;  %v3882_v30 = vor.u32 %v8552_v35, %v8550_v61  ;;  %v3885_v11 = vshll.u32 %v3742_v17, 16  ;;  %v4126_v61 = vpop.permute.xlu0 %4125 }
 0x1fe   :  { %v3946_v45 = vshrl.u32 %v3491_v60, 16  ;;  %v2110_v32 = vsel %vm7371_vm7, %v2105_v42, %v2109_v38  ;;  %4545 = vrot.lane.b32.xlu1 %v6251_v44, %s6944_s14  ;;  %v3869_v19 = vrot.slane %v3868_v0, 4  ;;  %v3949_v15 = vshll.u32 %v3491_v60, 16 }
 0x1ff   :  { %v2095_v48 = vrot.slane %v2093_v1, 5  ;;  %v3873_v20 = vrot.slane %v3871_v49, 5  ;;  %v3883_v59 = vrot.slane %v3882_v30, 4  ;;  %v3887_v41 = vrot.slane %v3885_v11, 5  ;;  %v3745_v1 = vld [vmem:[#allocation2 + $0x224] sm:$0x1] }
 0x200   :  { %v8631_v50 = vrot.slane %v3946_v45, 4  ;;  %4597 = vrot.lane.b32.xlu0 %v6261_v13, %s6944_s14  ;;  %v8636_v9 = vrot.slane %v3949_v15, 5  ;;  %v3960_v51 = vshrl.u32 %v3492_v34, 16  ;;  %v3963_v55 = vshll.u32 %v3492_v34, 16  ;;  %v3746_v49 = vld [vmem:[#allocation2 + $0x22c] sm:$0x1] }
 0x201   :  { %v2096_v35 = vsel %vm7371_vm7, %v2091_v5, %v2095_v48  ;;  %v3874_v28 = vsel %vm7371_vm7, %v3869_v19, %v3873_v20  ;;  %v3888_v10 = vsel %vm7371_vm7, %v3883_v59, %v3887_v41  ;;  %v6252_v25 = vcombine.low %v3491_v60, %v3492_v34  ;;  %v8661_v60 = vpop.permute.xlu1 %4067  ;;  %v1365_v30 = vld [vmem:[#allocation2 + $0x23c] sm:$0x1] }
 0x202   :  { %v6161_v3 = vcombine.low %v2096_v35, %v2110_v32  ;;  %v6265_v2 = vcombine.low %v3874_v28, %v3888_v10  ;;  %v8644_v26 = vrot.slane %v3960_v51, 4  ;;  %v8646_v13 = vrot.slane %v3963_v55, 5 }
 0x203   :  { %v3896_v58 = vor.u32 %v8577_v46, %v8571_v27  ;;  %4547 = vrot.lane.b32.xlu1 %v6252_v25, %s6944_s14  ;;  %v3899_v7 = vshll.u32 %v3743_v16, 16  ;;  %v3910_v12 = vor.u32 %v8593_v53, %v8579_v47  ;;  %v3913_v31 = vshll.u32 %v3744_v40, 16  ;;  %v1963_v47 = vld [vmem:[#allocation2 + $0x64] sm:$0x1]  ;;  %v3747_v16 = vld [vmem:[#allocation2 + $0x234] sm:$0x1] }
 0x204   :  { %v4664_v29 = vsel %vm4613_vm4, %v6161_v3, %v4126_v61  ;;  %4605 = vrot.lane.b32.xlu0 %v6265_v2, %s6944_s14  ;;  %v6145_v36 = vcombine.low %v8583_v39, %v8589_v4  ;;  %v2112_v27 = vshrl.u32 %v8642_v14, 16  ;;  %v2115_v46 = vshll.u32 %v8642_v14, 16  ;;  %v4128_v39 = vpop.permute.xlu0 %4127 }
 0x205   :  { %5453 = vmatprep.mubr.bf16.mxu1 %v4664_v29  ;;  %v3897_v57 = vrot.slane %v3896_v58, 4  ;;  %v3901_v54 = vrot.slane %v3899_v7, 5  ;;  %v3911_v52 = vrot.slane %v3910_v12, 4  ;;  %v3915_v38 = vrot.slane %v3913_v31, 5  ;;  %v8675_v40 = vpop.permute.xlu1 %4213  ;;  %v1932_v29 = vld [vmem:[#allocation2 + $0x70] sm:$0xf] }
 0x206   :  { %v2121_v53 = vshll.u32 %v1962_v6, 16  ;;  %v4632_v24 = vsel %vm4613_vm4, %v6145_v36, %v8591_v63  ;;  %v2114_v17 = vrot.slane %v2112_v27, 4  ;;  %v2117_v56 = vrot.slane %v2115_v46, 5  ;;  %v1964_v7 = vld [vmem:[#allocation2 + $0x6c] sm:$0x1] }
 0x207   :  { %v2126_v5 = vshrl.u32 %v8654_v23, 16  ;;  %v3902_v4 = vsel %vm7371_vm7, %v3897_v57, %v3901_v54  ;;  %v3916_v42 = vsel %vm7371_vm7, %v3911_v52, %v3915_v38  ;;  %5454 = vmatmul.mubr.bf16.gmra.mxu1 %v4632_v24  ;;  %v2129_v0 = vshll.u32 %v8654_v23, 16  ;;  %v8696_v54 = vld [vmem:[#allocation2 + $0x78] sm:$0xf] }
 0x208   :  { %v2123_v44 = vrot.slane %v2121_v53, 5  ;;  %v6266_v11 = vcombine.low %v3902_v4, %v3916_v42  ;;  %v2118_v63 = vor.u32 %v2117_v56, %v2114_v17  ;;  %v2135_v45 = vshll.u32 %v1963_v47, 16  ;;  %v8684_v10 = vpop.permute.xlu0 %4129  ;;  %v1966_v4 = vld [vmem:[#allocation2 + $0x7c] sm:$0x1] }
 0x209   :  { %v2128_v34 = vrot.slane %v2126_v5, 4  ;;  %v2131_v48 = vrot.slane %v2129_v0, 5  ;;  %v3924_v32 = vor.u32 %v8615_v62, %v8613_v33  ;;  %v3927_v19 = vshll.u32 %v3745_v1, 16  ;;  %v1931_v33 = vld [vmem:[#allocation2 + $0x68] sm:$0xf] }
 0x20a   :  { %v3938_v15 = vor.u32 %v8619_v43, %v8617_v8  ;;  %4607 = vrot.lane.b32.xlu0 %v6266_v11, %s6944_s14  ;;  %v2119_v20 = vrot.slane %v2118_v63, 4  ;;  %v2137_v59 = vrot.slane %v2135_v45, 5  ;;  %v3941_v41 = vshll.u32 %v3746_v49, 16  ;;  %v8709_v11 = vld [vmem:[#allocation2 + $0x80] sm:$0xf] }
 0x20b   :  { %v1366_v61 = vsel %vm7079_vm3, 0, %v1365_v30  ;;  %v2132_v35 = vor.u32 %v2131_v48, %v2128_v34  ;;  %v3925_v51 = vrot.slane %v3924_v32, 4  ;;  %v3929_v55 = vrot.slane %v3927_v19, 5  ;;  %v1967_v45 = vld [vmem:[#allocation2 + $0x84] sm:$0x1] }
 0x20c   :  { %v3939_v3 = vrot.slane %v3938_v15, 4  ;;  %1367 = vst [vmem:[#allocation2 + $0x23c] sm:$0x1] %v1366_v61  ;;  %v2124_v62 = vsel %vm7371_vm7, %v2119_v20, %v2123_v44  ;;  %v3943_v8 = vrot.slane %v3941_v41, 5  ;;  %v3952_v43 = vor.u32 %v8636_v9, %v8631_v50  ;;  %v1965_v9 = vld [vmem:[#allocation2 + $0x74] sm:$0x1]  ;;  %v8707_v44 = vpop.permute.xlu0 %4131 }
 0x20d   :  { %v3955_v28 = vshll.u32 %v3747_v16, 16  ;;  %v2133_v25 = vrot.slane %v2132_v35, 4  ;;  %v3930_v2 = vsel %vm7371_vm7, %v3925_v51, %v3929_v55  ;;  %v3966_v58 = vor.u32 %v8646_v13, %v8644_v26  ;;  %v8698_v26 = vpop.permute.xlu1 %4215  ;;  %v2435_v51 = vld [vmem:[#allocation2 + $0x120] sm:$0xf] }
 0x20e   :  { %v6146_v6 = vcombine.low %v8642_v14, %v8654_v23  ;;  %v3944_v12 = vsel %vm7371_vm7, %v3939_v3, %v3943_v8  ;;  %v3953_v31 = vrot.slane %v3952_v43, 4  ;;  %v2140_v57 = vshrl.u32 %v1931_v33, 16  ;;  %v2436_v8 = vld [vmem:[#allocation2 + $0x128] sm:$0xf] }
 0x20f   :  { %v3957_v50 = vrot.slane %v3955_v28, 5  ;;  %v2138_v36 = vsel %vm7371_vm7, %v2133_v25, %v2137_v59  ;;  %v6267_v27 = vcombine.low %v3930_v2, %v3944_v12  ;;  %v3967_v46 = vrot.slane %v3966_v58, 4 }
 0x210   :  { %v6162_v13 = vcombine.low %v2124_v62, %v2138_v36  ;;  %v4636_v14 = vsel %vm4613_vm4, %v6146_v6, %v8609_v37  ;;  %v2142_v23 = vrot.slane %v2140_v57, 4  ;;  %v2143_v52 = vshll.u32 %v1931_v33, 16  ;;  %v8720_v43 = vpop.permute.xlu0 %4277  ;;  %v2467_v57 = vld [vmem:[#allocation2 + $0x124] sm:$0x1] }
 0x211   :  { %4609 = vrot.lane.b32.xlu0 %v6267_v27, %s6944_s14  ;;  %v2149_v38 = vshll.u32 %v1964_v7, 16  ;;  %v2154_v47 = vshrl.u32 %v1932_v29, 16  ;;  %v2157_v53 = vshll.u32 %v1932_v29, 16  ;;  %v2163_v24 = vshll.u32 %v1965_v9, 16  ;;  %v8712_v20 = vpop.permute.xlu1 %4217 }
 0x212   :  { %v4668_v17 = vsel %vm4613_vm4, %v6162_v13, %v4128_v39  ;;  %v3958_v5 = vsel %vm7371_vm7, %v3953_v31, %v3957_v50  ;;  %v2145_v1 = vrot.slane %v2143_v52, 5  ;;  %v2168_v42 = vshrl.u32 %v8696_v54, 16 }
 0x213   :  { %v3748_v56 = vld [vmem:[#allocation2 + $0x23c] sm:$0x1]  ;;  %5461 = vmatprep.mubr.bf16.mxu1 %v4668_v17  ;;  %v2156_v0 = vrot.slane %v2154_v47, 4  ;;  %v2159_v49 = vrot.slane %v2157_v53, 5  ;;  %v6147_v30 = vcombine.low %v1931_v33, %v1932_v29  ;;  %v2151_v39 = vrot.slane %v2149_v38, 5 }
 0x214   :  { %v3969_v37 = vshll.u32 %v3748_v56, 16  ;;  %5462 = vmatmul.mubr.bf16.gmra.mxu1 %v4636_v14  ;;  %v2146_v63 = vor.u32 %v2145_v1, %v2142_v23  ;;  %v2165_v34 = vrot.slane %v2163_v24, 5  ;;  %v2170_v48 = vrot.slane %v2168_v42, 4  ;;  %v2468_v14 = vld [vmem:[#allocation2 + $0x12c] sm:$0x1] }
 0x215   :  { %v2160_v19 = vor.u32 %v2159_v49, %v2156_v0  ;;  %v2171_v15 = vshll.u32 %v8696_v54, 16  ;;  %v2177_v16 = vshll.u32 %v1966_v4, 16  ;;  %v4640_v41 = vsel %vm4613_vm4, %v6147_v30, %v8629_v18  ;;  %v4374_v23 = vpop.permute.xlu1 %4373  ;;  %v2947_v24 = vld [vmem:[#allocation2 + $0x8] sm:$0xf]  ;;  %v8733_v4 = vpop.permute.xlu0 %4279  ;;  %v2948_v49 = vld [vmem:[#allocation2 + $0x10] sm:$0xf] }
 0x216   :  { %v3971_v32 = vrot.slane %v3969_v37, 5  ;;  %v2147_v59 = vrot.slane %v2146_v63, 4  ;;  %v2182_v61 = vshrl.u32 %v8709_v11, 16  ;;  %v2185_v35 = vshll.u32 %v8709_v11, 16 }
 0x217   :  { %v2161_v3 = vrot.slane %v2160_v19, 4  ;;  %v2173_v33 = vrot.slane %v2171_v15, 5  ;;  %v2191_v62 = vshll.u32 %v1967_v45, 16  ;;  %v2179_v25 = vrot.slane %v2177_v16, 5 }
 0x218   :  { %v3972_v55 = vsel %vm7371_vm7, %v3967_v46, %v3971_v32  ;;  %v2184_v2 = vrot.slane %v2182_v61, 4  ;;  %v2187_v58 = vrot.slane %v2185_v35, 5  ;;  %v2152_v18 = vsel %vm7371_vm7, %v2147_v59, %v2151_v39  ;;  %v2437_v32 = vld [vmem:[#allocation2 + $0x130] sm:$0xf] }
 0x219   :  { %v6268_v28 = vcombine.low %v3958_v5, %v3972_v55  ;;  %v2166_v6 = vsel %vm7371_vm7, %v2161_v3, %v2165_v34  ;;  %v2174_v29 = vor.u32 %v2173_v33, %v2170_v48  ;;  %v2484_v7 = vshrl.u32 %v2435_v51, 16  ;;  %v8745_v61 = vpop.permute.xlu1 %4219  ;;  %v2438_v55 = vld [vmem:[#allocation2 + $0x138] sm:$0xf] }
 0x21a   :  { %v6163_v12 = vcombine.low %v2152_v18, %v2166_v6  ;;  %v2188_v31 = vor.u32 %v2187_v58, %v2184_v2  ;;  %v2487_v50 = vshll.u32 %v2435_v51, 16  ;;  %v2498_v9 = vshrl.u32 %v2436_v8, 16  ;;  %v8753_v6 = vld [vmem:[#allocation2 + $0x140] sm:$0xf] }
 0x21b   :  { %4611 = vrot.lane.b32.xlu0 %v6268_v28, %s6944_s14  ;;  %v2175_v36 = vrot.slane %v2174_v29, 4  ;;  %v2193_v27 = vrot.slane %v2191_v62, 5  ;;  %v2486_v46 = vrot.slane %v2484_v7, 4  ;;  %v2501_v13 = vshll.u32 %v2436_v8, 16  ;;  %v2470_v62 = vld [vmem:[#allocation2 + $0x13c] sm:$0x1]  ;;  %v8751_v28 = vpop.permute.xlu0 %4281 }
 0x21c   :  { %v4672_v52 = vsel %vm4613_vm4, %v6163_v12, %v8684_v10  ;;  %v2189_v38 = vrot.slane %v2188_v31, 4  ;;  %v2489_v47 = vrot.slane %v2487_v50, 5  ;;  %v2500_v53 = vrot.slane %v2498_v9, 4  ;;  %v2471_v50 = vld [vmem:[#allocation2 + $0x144] sm:$0x1] }
 0x21d   :  { %5469 = vmatprep.mubr.bf16.mxu1 %v4672_v52  ;;  %v2180_v17 = vsel %vm7371_vm7, %v2175_v36, %v2179_v25  ;;  %v2503_v56 = vrot.slane %v2501_v13, 5  ;;  %v6173_v5 = vcombine.low %v2435_v51, %v2436_v8  ;;  %v6148_v1 = vcombine.low %v8696_v54, %v8709_v11 }
 0x21e   :  { %5470 = vmatmul.mubr.bf16.gmra.mxu1 %v4640_v41  ;;  %v2194_v42 = vsel %vm7371_vm7, %v2189_v38, %v2193_v27  ;;  %v2490_v10 = vor.u32 %v2489_v47, %v2486_v46  ;;  %v2493_v37 = vshll.u32 %v2467_v57, 16  ;;  %v2507_v0 = vshll.u32 %v2468_v14, 16  ;;  %v2469_v41 = vld [vmem:[#allocation2 + $0x134] sm:$0x1]  ;;  %v8760_v46 = vld [vmem:[#allocation2 + $0x148] sm:$0xf]  ;;  %v8762_v38 = vpop.permute.xlu1 %4375 }
 0x21f   :  { %v6164_v30 = vcombine.low %v2180_v17, %v2194_v42  ;;  %v8739_v63 = vsel %vm4613_vm4, %v6173_v5, %v8675_v40  ;;  %v2504_v39 = vor.u32 %v2503_v56, %v2500_v53  ;;  %v2996_v34 = vshrl.u32 %v2947_v24, 16  ;;  %v2472_v47 = vld [vmem:[#allocation2 + $0x14c] sm:$0x1] }
 0x220   :  { %v4644_v54 = vsel %vm4613_vm4, %v6148_v1, %v8661_v60  ;;  %v2491_v11 = vrot.slane %v2490_v10, 4  ;;  %v2495_v45 = vrot.slane %v2493_v37, 5  ;;  %v2999_v48 = vshll.u32 %v2947_v24, 16  ;;  %v8766_v1 = vpop.permute.xlu0 %4437  ;;  %v2979_v37 = vld [vmem:[#allocation2 + $0xc] sm:$0x1] }
 0x221   :  { %v4676_v19 = vsel %vm4613_vm4, %v6164_v30, %v8707_v44  ;;  %v2505_v15 = vrot.slane %v2504_v39, 4  ;;  %v2509_v16 = vrot.slane %v2507_v0, 5  ;;  %v3010_v59 = vshrl.u32 %v2948_v49, 16 }
 0x222   :  { %5477 = vmatprep.mubr.bf16.mxu1 %v4676_v19  ;;  %v2496_v40 = vsel %vm7371_vm7, %v2491_v11, %v2495_v45  ;;  %v2998_v35 = vrot.slane %v2996_v34, 4  ;;  %v3001_v51 = vrot.slane %v2999_v48, 5  ;;  %v3013_v60 = vshll.u32 %v2948_v49, 16  ;;  %v2980_v34 = vld [vmem:[#allocation2 + $0x14] sm:$0x1] }
 0x223   :  { %v2510_v3 = vsel %vm7371_vm7, %v2505_v15, %v2509_v16  ;;  %v6205_v33 = vcombine.low %v2947_v24, %v2948_v49  ;;  %v2512_v44 = vshrl.u32 %v2437_v32, 16  ;;  %v2515_v8 = vshll.u32 %v2437_v32, 16 }
 0x224   :  { %v6189_v25 = vcombine.low %v2496_v40, %v2510_v3  ;;  %v3012_v2 = vrot.slane %v3010_v59, 4  ;;  %v3015_v58 = vrot.slane %v3013_v60, 5  ;;  %v2521_v18 = vshll.u32 %v2469_v41, 16  ;;  %v8786_v41 = vld [vmem:[#allocation2 + $0x150] sm:$0xf] }
 0x225   :  { %v2514_v29 = vrot.slane %v2512_v44, 4  ;;  %v2517_v7 = vrot.slane %v2515_v8, 5  ;;  %v2526_v12 = vshrl.u32 %v2438_v55, 16  ;;  %v2529_v31 = vshll.u32 %v2438_v55, 16 }
 0x226   :  { %5478 = vmatmul.mubr.bf16.gmra.mxu1 %v4644_v54  ;;  %v4712_v9 = vsel %vm4613_vm4, %v6189_v25, %v8720_v43  ;;  %v8758_v57 = vsel %vm4613_vm4, %v6205_v33, %v4374_v23  ;;  %v2523_v36 = vrot.slane %v2521_v18, 5  ;;  %v2535_v27 = vshll.u32 %v2470_v62, 16  ;;  %v8777_v54 = vld [vmem:[%s9601_s3 + $0x1b8] sm:$0xff]   ;;  %v8796_v33 = vld [vmem:[%s9601_s3 + $0x1b0] sm:$0xff]  }
 0x227   :  { %5518 = vmatprep.mubr.bf16.mxu1 %v4712_v9  ;;  %v2518_v13 = vor.u32 %v2517_v7, %v2514_v29  ;;  %v2528_v14 = vrot.slane %v2526_v12, 4  ;;  %v2531_v52 = vrot.slane %v2529_v31, 5  ;;  %v2540_v53 = vshrl.u32 %v8753_v6, 16  ;;  %v8798_v25 = vld [vmem:[#allocation2 + $0x158] sm:$0xf]  ;;  %v8801_v29 = vpop.permute.xlu0 %4283  ;;  %v8812_v9 = vld [vmem:[%s9601_s3 + $0x1e8] sm:$0xff]  }
 0x228   :  { %v2537_v24 = vrot.slane %v2535_v27, 5  ;;  %v6174_v17 = vcombine.low %v2437_v32, %v2438_v55  ;;  %v2543_v43 = vshll.u32 %v8753_v6, 16  ;;  %v2549_v56 = vshll.u32 %v2471_v50, 16  ;;  %v2473_v7 = vld [vmem:[#allocation2 + $0x154] sm:$0x1] }
 0x229   :  { %v2519_v23 = vrot.slane %v2518_v13, 4  ;;  %v2532_v5 = vor.u32 %v2531_v52, %v2528_v14  ;;  %v2542_v42 = vrot.slane %v2540_v53, 4  ;;  %v2554_v10 = vshrl.u32 %v8760_v46, 16  ;;  %v2474_v13 = vld [vmem:[#allocation2 + $0x15c] sm:$0x1] }
 0x22a   :  { %v8771_v0 = vsel %vm4613_vm4, %v6174_v17, %v8698_v26  ;;  %v2545_v49 = vrot.slane %v2543_v43, 5  ;;  %v2557_v30 = vshll.u32 %v8760_v46, 16  ;;  %v2563_v39 = vshll.u32 %v2472_v47, 16  ;;  %v8784_v26 = vld [vmem:[%s9601_s3 + $0x1f0] sm:$0xff]   ;;  %v2949_v47 = vld [vmem:[#allocation2 + $0x18] sm:$0xf] }
 0x22b   :  { %v2533_v11 = vrot.slane %v2532_v5, 4  ;;  %v2551_v45 = vrot.slane %v2549_v56, 5  ;;  %v2556_v48 = vrot.slane %v2554_v10, 4  ;;  %v3002_v32 = vor.u32 %v3001_v51, %v2998_v35  ;;  %v8790_v35 = vpop.permute.xlu1 %4221  ;;  %v2950_v10 = vld [vmem:[#allocation2 + $0x20] sm:$0xf] }
 0x22c   :  { %v2524_v19 = vsel %vm7371_vm7, %v2519_v23, %v2523_v36  ;;  %v2546_v15 = vor.u32 %v2545_v49, %v2542_v42  ;;  %v2559_v16 = vrot.slane %v2557_v30, 5  ;;  %v3005_v59 = vshll.u32 %v2979_v37, 16  ;;  %v2981_v37 = vld [vmem:[#allocation2 + $0x1c] sm:$0x1] }
 0x22d   :  { %v2538_v40 = vsel %vm7371_vm7, %v2533_v11, %v2537_v24  ;;  %v3003_v60 = vrot.slane %v3002_v32, 4  ;;  %v3016_v55 = vor.u32 %v3015_v58, %v3012_v2  ;;  %v3019_v3 = vshll.u32 %v2980_v34, 16  ;;  %v2982_v34 = vld [vmem:[#allocation2 + $0x24] sm:$0x1] }
 0x22e   :  { %5519 = vmatmul.mubr.bf16.vlgmr.msra.gmra.mxu1 %v8739_v63  ;;  %v6190_v51 = vcombine.low %v2524_v19, %v2538_v40  ;;  %v2547_v62 = vrot.slane %v2546_v15, 4  ;;  %v2560_v44 = vor.u32 %v2559_v16, %v2556_v48  ;;  %v2565_v8 = vrot.slane %v2563_v39, 5  ;;  %v8847_v48 = vpop.permute.xlu0 %4439 }
 0x22f   :  { %6763 = vmatpush3.bf16.msra.mxu1 %v8777_v54  ;;  %v3007_v18 = vrot.slane %v3005_v59, 5  ;;  %v3017_v2 = vrot.slane %v3016_v55, 4  ;;  %v3021_v58 = vrot.slane %v3019_v3, 5  ;;  %v2568_v63 = vshrl.u32 %v8786_v41, 16  ;;  %v8830_v56 = vpop.permute.xlu1 %4377 }
 0x230   :  { %v4716_v12 = vsel %vm4613_vm4, %v6190_v51, %v8733_v4  ;;  %6756 = vmatprep.subr.bf16.mxu1 %v8784_v26  ;;  %v2552_v31 = vsel %vm7371_vm7, %v2547_v62, %v2551_v45  ;;  %v2561_v50 = vrot.slane %v2560_v44, 4  ;;  %v6175_v36 = vcombine.low %v8753_v6, %v8760_v46  ;;  %v8826_v6 = vld [vmem:[%s9601_s3 + $0x1a8] sm:$0xff]   ;;  %v8843_v45 = vld [vmem:[%s9601_s3 + $0x1e0] sm:$0xff]  }
 0x231   :  { %5526 = vmatprep.mubr.bf16.mxu1 %v4716_v12  ;;  %v3008_v27 = vsel %vm7371_vm7, %v3003_v60, %v3007_v18  ;;  %v3022_v4 = vsel %vm7371_vm7, %v3017_v2, %v3021_v58  ;;  %v2570_v14 = vrot.slane %v2568_v63, 4  ;;  %v2571_v52 = vshll.u32 %v8786_v41, 16  ;;  %v8855_v51 = vld [vmem:[%s9601_s3 + $0x1a0] sm:$0xff]   ;;  %v8857_v62 = vld [vmem:[#allocation2 + $0x168] sm:$0xf]  ;;  %v8864_v18 = vld [vmem:[%s9601_s3 + $0x1d8] sm:$0xff]  }
 0x232   :  { %v2566_v53 = vsel %vm7371_vm7, %v2561_v50, %v2565_v8  ;;  %v6221_v24 = vcombine.low %v3008_v27, %v3022_v4  ;;  %v2577_v46 = vshll.u32 %v2473_v7, 16  ;;  %v2582_v17 = vshrl.u32 %v8798_v25, 16  ;;  %v8875_v27 = vld [vmem:[#allocation2 + $0x170] sm:$0xf] }
 0x233   :  { %6764 = vmatpush3.bf16.msra.mxu1 %v8796_v33  ;;  %v6191_v43 = vcombine.low %v2552_v31, %v2566_v53  ;;  %v8834_v23 = vsel %vm4613_vm4, %v6175_v36, %v8712_v20  ;;  %v2573_v5 = vrot.slane %v2571_v52, 5  ;;  %v2585_v42 = vshll.u32 %v8798_v25, 16  ;;  %v8868_v12 = vpop.permute.xlu1 %4223  ;;  %v2475_v31 = vld [vmem:[#allocation2 + $0x16c] sm:$0x1]  ;;  %v8880_v52 = vpop.permute.xlu0 %4285 }
 0x234   :  { %v4776_v49 = vsel %vm4613_vm4, %v6221_v24, %v8766_v1  ;;  %6757 = vmatprep.subr.bf16.mxu1 %v8812_v9  ;;  %v2584_v30 = vrot.slane %v2582_v17, 4  ;;  %v2591_v39 = vshll.u32 %v2474_v13, 16  ;;  %v3024_v11 = vshrl.u32 %v2949_v47, 16 }
 0x235   :  { %v4720_v20 = vsel %vm4613_vm4, %v6191_v43, %v8751_v28  ;;  %5615 = vmatprep.mubr.bf16.mxu0 %v4776_v49  ;;  %v2574_v32 = vor.u32 %v2573_v5, %v2570_v14  ;;  %v2579_v19 = vrot.slane %v2577_v46, 5  ;;  %v2587_v1 = vrot.slane %v2585_v42, 5  ;;  %v8891_v5 = vld [vmem:[#allocation2 + $0x28] sm:$0xf] }
 0x236   :  { %5527 = vmatmul.mubr.bf16.gmra.mxu1 %v8771_v0  ;;  %5616 = vmatmul.mubr.bf16.vlgmr.msra.gmra.mxu0 %v8758_v57  ;;  %v3026_v15 = vrot.slane %v3024_v11, 4  ;;  %v3027_v16 = vshll.u32 %v2949_v47, 16  ;;  %v3033_v59 = vshll.u32 %v2981_v37, 16  ;;  %v3038_v40 = vshrl.u32 %v2950_v10, 16  ;;  %v2983_v11 = vld [vmem:[#allocation2 + $0x2c] sm:$0x1] }
 0x237   :  { %5534 = vmatprep.mubr.bf16.mxu1 %v4720_v20  ;;  %6765 = vmatpush3.bf16.msra.mxu1 %v8826_v6  ;;  %v2575_v60 = vrot.slane %v2574_v32, 4  ;;  %v2588_v55 = vor.u32 %v2587_v1, %v2584_v30  ;;  %v3041_v28 = vshll.u32 %v2950_v10, 16  ;;  %v3047_v3 = vshll.u32 %v2982_v34, 16  ;;  %v2952_v34 = vld [vmem:[#allocation2 + $0x30] sm:$0xf]  ;;  %v8912_v20 = vpop.permute.xlu1 %4379 }
 0x238   :  { %v2593_v0 = vrot.slane %v2591_v39, 5  ;;  %v3029_v57 = vrot.slane %v3027_v16, 5  ;;  %v3040_v44 = vrot.slane %v3038_v40, 4  ;;  %v6206_v8 = vcombine.low %v2949_v47, %v2950_v10  ;;  %6626 = vmatpush3.bf16.msra.mxu0 %v8777_v54  ;;  %6758 = vmatprep.subr.bf16.mxu1 %v8843_v45  ;;  %v2984_v16 = vld [vmem:[#allocation2 + $0x34] sm:$0x1]  ;;  %v8927_v40 = vld [vmem:[%s9601_s3 + $0x1c8] sm:$0xff]  }
 0x239   :  { %v2580_v2 = vsel %vm7371_vm7, %v2575_v60, %v2579_v19  ;;  %v2589_v58 = vrot.slane %v2588_v55, 4  ;;  %v3035_v7 = vrot.slane %v3033_v59, 5  ;;  %v3043_v63 = vrot.slane %v3041_v28, 5  ;;  %6627 = vmatprep.subr.bf16.mxu0 %v8784_v26  ;;  %v2476_v26 = vld [vmem:[#allocation2 + $0x174] sm:$0x1]  ;;  %v8929_v60 = vpop.permute.xlu0 %4441 }
 0x23a   :  { %v3030_v50 = vor.u32 %v3029_v57, %v3026_v15  ;;  %v3049_v54 = vrot.slane %v3047_v3, 5  ;;  %v8873_v36 = vsel %vm4613_vm4, %v6206_v8, %v8762_v38  ;;  %v2596_v4 = vshrl.u32 %v8857_v62, 16  ;;  %v8889_v38 = vld [vmem:[%s9601_s3 + $0x198] sm:$0xff]  }
 0x23b   :  { %v2594_v13 = vsel %vm7371_vm7, %v2589_v58, %v2593_v0  ;;  %v3044_v14 = vor.u32 %v3043_v63, %v3040_v44  ;;  %v6176_v47 = vcombine.low %v8786_v41, %v8798_v25  ;;  %6766 = vmatpush3.bf16.msra.mxu1 %v8855_v51  ;;  %v2599_v53 = vshll.u32 %v8857_v62, 16  ;;  %v8898_v41 = vld [vmem:[%s9601_s3 + $0x1d0] sm:$0xff]  }
 0x23c   :  { %v6192_v24 = vcombine.low %v2580_v2, %v2594_v13  ;;  %v3031_v46 = vrot.slane %v3030_v50, 4  ;;  %v2598_v17 = vrot.slane %v2596_v4, 4  ;;  %v2605_v43 = vshll.u32 %v2475_v31, 16  ;;  %6628 = vmatpush3.bf16.msra.mxu0 %v8796_v33  ;;  %6759 = vmatprep.subr.bf16.mxu1 %v8864_v18  ;;  %v8934_v2 = vld [vmem:[#allocation2 + $0x178] sm:$0xf] }
 0x23d   :  { %v3045_v25 = vrot.slane %v3044_v14, 4  ;;  %v4692_v42 = vsel %vm4613_vm4, %v6176_v47, %v8745_v61  ;;  %v2601_v10 = vrot.slane %v2599_v53, 5  ;;  %v2610_v37 = vshrl.u32 %v8875_v27, 16  ;;  %6629 = vmatprep.subr.bf16.mxu0 %v8812_v9  ;;  %v8945_v13 = vld [vmem:[#allocation2 + $0x180] sm:$0xf] }
 0x23e   :  { %5535 = vmatmul.mubr.bf16.gmra.mxu1 %v8834_v23  ;;  %v4724_v33 = vsel %vm4613_vm4, %v6192_v24, %v8801_v29  ;;  %v3036_v49 = vsel %vm7371_vm7, %v3031_v46, %v3035_v7  ;;  %v2613_v30 = vshll.u32 %v8875_v27, 16  ;;  %v2619_v39 = vshll.u32 %v2476_v26, 16  ;;  %v8919_v29 = vld [vmem:[%s9601_s3 + $0x190] sm:$0xff]   ;;  %v8951_v14 = vld [vmem:[%s9601_s3 + $0x1c0] sm:$0xff]   ;;  %v8953_v26 = vpop.permute.xlu1 %4225  ;;  %v2477_v24 = vld [vmem:[#allocation2 + $0x17c] sm:$0x1] }
 0x23f   :  { %5542 = vmatprep.mubr.bf16.mxu1 %v4724_v33  ;;  %v3050_v61 = vsel %vm7371_vm7, %v3045_v25, %v3049_v54  ;;  %v2602_v9 = vor.u32 %v2601_v10, %v2598_v17  ;;  %v2612_v32 = vrot.slane %v2610_v37, 4  ;;  %v3052_v23 = vshrl.u32 %v8891_v5, 16  ;;  %6767 = vmatpush3.bf16.msra.mxu1 %v8889_v38  ;;  %v2478_v37 = vld [vmem:[#allocation2 + $0x184] sm:$0x1] }
 0x240   :  { %v6222_v19 = vcombine.low %v3036_v49, %v3050_v61  ;;  %v2607_v1 = vrot.slane %v2605_v43, 5  ;;  %v2615_v15 = vrot.slane %v2613_v30, 5  ;;  %v3055_v59 = vshll.u32 %v8891_v5, 16  ;;  %6630 = vmatpush3.bf16.msra.mxu0 %v8826_v6  ;;  %6760 = vmatprep.subr.bf16.mxu1 %v8898_v41  ;;  %v8966_v49 = vpop.permute.xlu0 %4287 }
 0x241   :  { %v2603_v55 = vrot.slane %v2602_v9, 4  ;;  %v3054_v28 = vrot.slane %v3052_v23, 4  ;;  %v3061_v3 = vshll.u32 %v2983_v11, 16  ;;  %v3066_v0 = vshrl.u32 %v2952_v34, 16  ;;  %6631 = vmatprep.subr.bf16.mxu0 %v8843_v45  ;;  %v8942_v45 = vld [vmem:[%s9601_s3 + $0x188] sm:$0xff]  }
 0x242   :  { %v4780_v57 = vsel %vm4613_vm4, %v6222_v19, %v8847_v48  ;;  %v2616_v44 = vor.u32 %v2615_v15, %v2612_v32  ;;  %v3057_v6 = vrot.slane %v3055_v59, 5  ;;  %v3069_v8 = vshll.u32 %v2952_v34, 16  ;;  %v2954_v32 = vld [vmem:[#allocation2 + $0x40] sm:$0xf]  ;;  %v2985_v23 = vld [vmem:[#allocation2 + $0x3c] sm:$0x1] }
 0x243   :  { %5623 = vmatprep.mubr.bf16.mxu0 %v4780_v57  ;;  %v2608_v58 = vsel %vm7371_vm7, %v2603_v55, %v2607_v1  ;;  %v2621_v7 = vrot.slane %v2619_v39, 5  ;;  %v3068_v63 = vrot.slane %v3066_v0, 4  ;;  %v3075_v31 = vshll.u32 %v2984_v16, 16  ;;  %6768 = vmatpush3.bf16.msra.mxu1 %v8919_v29  ;;  %v8974_v39 = vld [vmem:[%s9601_s3 + $0x180] sm:$0xff]   ;;  %v8990_v16 = vpop.permute.xlu1 %4381 }
 0x244   :  { %5624 = vmatmul.mubr.bf16.gmra.mxu0 %v8873_v36  ;;  %v2617_v48 = vrot.slane %v2616_v44, 4  ;;  %v3058_v50 = vor.u32 %v3057_v6, %v3054_v28  ;;  %v3063_v54 = vrot.slane %v3061_v3, 5  ;;  %v3071_v4 = vrot.slane %v3069_v8, 5  ;;  %6761 = vmatprep.subr.bf16.mxu1 %v8927_v40  ;;  %v2986_v3 = vld [vmem:[#allocation2 + $0x44] sm:$0x1]  ;;  %v8996_v8 = vpop.permute.xlu0 %4443 }
 0x245   :  { %v3077_v47 = vrot.slane %v3075_v31, 5  ;;  %v6207_v53 = vcombine.low %v8891_v5, %v2952_v34  ;;  %v2624_v36 = vshrl.u32 %v8934_v2, 16  ;;  %v2627_v46 = vshll.u32 %v8934_v2, 16  ;;  %6632 = vmatpush3.bf16.msra.mxu0 %v8855_v51 }
 0x246   :  { %5543 = vmatmul.mubr.bf16.gmra.mxu1 %v4692_v42  ;;  %v2622_v17 = vsel %vm7371_vm7, %v2617_v48, %v2621_v7  ;;  %v3059_v43 = vrot.slane %v3058_v50, 4  ;;  %v3072_v25 = vor.u32 %v3071_v4, %v3068_v63  ;;  %v6177_v10 = vcombine.low %v8857_v62, %v8875_v27  ;;  %6633 = vmatprep.subr.bf16.mxu0 %v8864_v18  ;;  %v8968_v42 = vld [vmem:[#allocation2 + $0x38] sm:$0xf]  ;;  %v8998_v63 = vld [vmem:[#allocation2 + $0x188] sm:$0xf] }
 0x247   :  { %v6193_v5 = vcombine.low %v2608_v58, %v2622_v17  ;;  %v4752_v33 = vsel %vm4613_vm4, %v6207_v53, %v8830_v56  ;;  %v2626_v30 = vrot.slane %v2624_v36, 4  ;;  %v2629_v51 = vrot.slane %v2627_v46, 5  ;;  %6769 = vmatpush3.bf16.msra.mxu1 %v8942_v45  ;;  %v9007_v36 = vld [vmem:[#allocation2 + $0x190] sm:$0xf]  ;;  %v2479_v46 = vld [vmem:[#allocation2 + $0x18c] sm:$0x1] }
 0x248   :  { %v3073_v62 = vrot.slane %v3072_v25, 4  ;;  %v4696_v18 = vsel %vm4613_vm4, %v6177_v10, %v8790_v35  ;;  %v2633_v27 = vshll.u32 %v2477_v24, 16  ;;  %v2638_v56 = vshrl.u32 %v8945_v13, 16  ;;  %6762 = vmatprep.subr.bf16.mxu1 %v8951_v14 }
 0x249   :  { %v4728_v34 = vsel %vm4613_vm4, %v6193_v5, %v8880_v52  ;;  %v2630_v11 = vor.u32 %v2629_v51, %v2626_v30  ;;  %v2641_v61 = vshll.u32 %v8945_v13, 16  ;;  %v2647_v9 = vshll.u32 %v2478_v37, 16  ;;  %6634 = vmatpush3.bf16.msra.mxu0 %v8889_v38  ;;  %v9013_v5 = vpop.permute.xlu1 %4227 }
 0x24a   :  { %5550 = vmatprep.mubr.bf16.mxu1 %v4728_v34  ;;  %v3064_v35 = vsel %vm7371_vm7, %v3059_v43, %v3063_v54  ;;  %v3078_v19 = vsel %vm7371_vm7, %v3073_v62, %v3077_v47  ;;  %v2640_v1 = vrot.slane %v2638_v56, 4  ;;  %v3080_v15 = vshrl.u32 %v8968_v42, 16  ;;  %6635 = vmatprep.subr.bf16.mxu0 %v8898_v41  ;;  %v4290_v62 = vpop.permute.xlu0 %4289  ;;  %v9021_v34 = vld [vmem:[#allocation2 + $0x50] sm:$0xf] }
 0x24b   :  { %v6223_v52 = vcombine.low %v3064_v35, %v3078_v19  ;;  %v2631_v59 = vrot.slane %v2630_v11, 4  ;;  %v2635_v55 = vrot.slane %v2633_v27, 5  ;;  %v2643_v28 = vrot.slane %v2641_v61, 5  ;;  %6770 = vmatpush3.bf16.msra.mxu1 %v8974_v39  ;;  %v2987_v19 = vld [vmem:[#allocation2 + $0x54] sm:$0x1] }
 0x24c   :  { %v3082_v38 = vrot.slane %v3080_v15, 4  ;;  %v3083_v0 = vshll.u32 %v8968_v42, 16  ;;  %v3089_v57 = vshll.u32 %v2985_v23, 16  ;;  %v3094_v44 = vshrl.u32 %v2954_v32, 16  ;;  %v2988_v15 = vld [vmem:[#allocation2 + $0x5c] sm:$0x1] }
 0x24d   :  { %v4784_v6 = vsel %vm4613_vm4, %v6223_v52, %v8929_v60  ;;  %v2644_v41 = vor.u32 %v2643_v28, %v2640_v1  ;;  %v2649_v58 = vrot.slane %v2647_v9, 5  ;;  %v3097_v7 = vshll.u32 %v2954_v32, 16  ;;  %6636 = vmatpush3.bf16.msra.mxu0 %v8919_v29  ;;  %v9027_v9 = vld [vmem:[#allocation2 + $0x58] sm:$0xf] }
 0x24e   :  { %5631 = vmatprep.mubr.bf16.mxu0 %v4784_v6  ;;  %5551 = vmatmul.mubr.bf16.gmra.mxu1 %v4696_v18  ;;  %v2636_v31 = vsel %vm7371_vm7, %v2631_v59, %v2635_v55  ;;  %v3085_v48 = vrot.slane %v3083_v0, 5  ;;  %v3096_v50 = vrot.slane %v3094_v44, 4  ;;  %v3103_v54 = vshll.u32 %v2986_v3, 16  ;;  %v9035_v59 = vpop.permute.xlu1 %4383  ;;  %v3462_v0 = vld [vmem:[#allocation2 + $0x138] sm:$0xf] }
 0x24f   :  { %5632 = vmatmul.mubr.bf16.gmra.mxu0 %v4752_v33  ;;  %v2645_v4 = vrot.slane %v2644_v41, 4  ;;  %v3091_v60 = vrot.slane %v3089_v57, 5  ;;  %v3099_v47 = vrot.slane %v3097_v7, 5  ;;  %v6208_v53 = vcombine.low %v8968_v42, %v2954_v32  ;;  %6637 = vmatprep.subr.bf16.mxu0 %v8927_v40  ;;  %v2480_v33 = vld [vmem:[#allocation2 + $0x194] sm:$0x1] }
 0x250   :  { %v3086_v24 = vor.u32 %v3085_v48, %v3082_v38  ;;  %v6178_v29 = vcombine.low %v8934_v2, %v8945_v13  ;;  %v2652_v17 = vshrl.u32 %v8998_v63, 16  ;;  %v2655_v43 = vshll.u32 %v8998_v63, 16  ;;  %v3463_v41 = vld [vmem:[#allocation2 + $0x140] sm:$0xf] }
 0x251   :  { %v2650_v25 = vsel %vm7371_vm7, %v2645_v4, %v2649_v58  ;;  %v3100_v10 = vor.u32 %v3099_v47, %v3096_v50  ;;  %v3105_v37 = vrot.slane %v3103_v54, 5  ;;  %v4756_v40 = vsel %vm4613_vm4, %v6208_v53, %v8912_v20  ;;  %6638 = vmatpush3.bf16.msra.mxu0 %v8942_v45  ;;  %v4446_v58 = vpop.permute.xlu0 %4445 }
 0x252   :  { %v6194_v2 = vcombine.low %v2636_v31, %v2650_v25  ;;  %v3087_v13 = vrot.slane %v3086_v24, 4  ;;  %v2654_v30 = vrot.slane %v2652_v17, 4  ;;  %v2657_v51 = vrot.slane %v2655_v43, 5  ;;  %6639 = vmatprep.subr.bf16.mxu0 %v8951_v14  ;;  %v9046_v25 = vld [vmem:[#allocation2 + $0x198] sm:$0xf] }
 0x253   :  { %v3101_v42 = vrot.slane %v3100_v10, 4  ;;  %v2661_v18 = vshll.u32 %v2479_v46, 16  ;;  %v2666_v27 = vshrl.u32 %v9007_v36, 16  ;;  %v2669_v56 = vshll.u32 %v9007_v36, 16 }
 0x254   :  { %v4732_v20 = vsel %vm4613_vm4, %v6194_v2, %v8966_v49  ;;  %v4700_v45 = vsel %vm4613_vm4, %v6178_v29, %v8868_v12  ;;  %v2658_v11 = vor.u32 %v2657_v51, %v2654_v30  ;;  %v2675_v61 = vshll.u32 %v2480_v33, 16  ;;  %v4536_v2 = vpop.permute.xlu1 %4535 }
 0x255   :  { %5558 = vmatprep.mubr.bf16.mxu1 %v4732_v20  ;;  %v3092_v14 = vsel %vm7371_vm7, %v3087_v13, %v3091_v60  ;;  %v3106_v32 = vsel %vm7371_vm7, %v3101_v42, %v3105_v37  ;;  %v2668_v23 = vrot.slane %v2666_v27, 4  ;;  %v2671_v35 = vrot.slane %v2669_v56, 5  ;;  %6640 = vmatpush3.bf16.msra.mxu0 %v8974_v39  ;;  %v2481_v27 = vld [vmem:[#allocation2 + $0x19c] sm:$0x1]  ;;  %v9059_v20 = vpop.permute.xlu0 %4291 }
 0x256   :  { %v6224_v49 = vcombine.low %v3092_v14, %v3106_v32  ;;  %5559 = vmatmul.mubr.bf16.gmra.mxu1 %v4700_v45  ;;  %v2659_v1 = vrot.slane %v2658_v11, 4  ;;  %v2663_v12 = vrot.slane %v2661_v18, 5  ;;  %v3108_v52 = vshrl.u32 %v9021_v34, 16  ;;  %v9055_v18 = vld [vmem:[#allocation2 + $0x1a0] sm:$0xf] }
 0x257   :  { %v2672_v55 = vor.u32 %v2671_v35, %v2668_v23  ;;  %v2677_v28 = vrot.slane %v2675_v61, 5  ;;  %v3111_v3 = vshll.u32 %v9021_v34, 16  ;;  %v3122_v38 = vshrl.u32 %v9027_v9, 16  ;;  %v2482_v11 = vld [vmem:[#allocation2 + $0x1a4] sm:$0x1] }
 0x258   :  { %v4788_v57 = vsel %vm4613_vm4, %v6224_v49, %v8996_v8  ;;  %v3110_v39 = vrot.slane %v3108_v52, 4  ;;  %v3117_v44 = vshll.u32 %v2987_v19, 16  ;;  %v3125_v6 = vshll.u32 %v9027_v9, 16  ;;  %v9074_v19 = vld [vmem:[#allocation2 + $0x60] sm:$0xf] }
 0x259   :  { %5639 = vmatprep.mubr.bf16.mxu0 %v4788_v57  ;;  %v2664_v7 = vsel %vm7371_vm7, %v2659_v1, %v2663_v12  ;;  %v2673_v31 = vrot.slane %v2672_v55, 4  ;;  %v3113_v48 = vrot.slane %v3111_v3, 5  ;;  %v3124_v50 = vrot.slane %v3122_v38, 4  ;;  %v2989_v12 = vld [vmem:[#allocation2 + $0x64] sm:$0x1] }
 0x25a   :  { %5640 = vmatmul.mubr.bf16.gmra.mxu0 %v4756_v40  ;;  %v3127_v54 = vrot.slane %v3125_v6, 5  ;;  %v3131_v4 = vshll.u32 %v2988_v15, 16  ;;  %v3538_v60 = vshrl.u32 %v3462_v0, 16  ;;  %v3541_v47 = vshll.u32 %v3462_v0, 16  ;;  %v9080_v3 = vld [vmem:[#allocation2 + $0x68] sm:$0xf] }
 0x25b   :  { %v2678_v8 = vsel %vm7371_vm7, %v2673_v31, %v2677_v28  ;;  %v3114_v53 = vor.u32 %v3113_v48, %v3110_v39  ;;  %v3552_v24 = vshrl.u32 %v3463_v41, 16  ;;  %v3555_v29 = vshll.u32 %v3463_v41, 16  ;;  %v2990_v38 = vld [vmem:[#allocation2 + $0x6c] sm:$0x1] }
 0x25c   :  { %v6195_v46 = vcombine.low %v2664_v7, %v2678_v8  ;;  %v3119_v17 = vrot.slane %v3117_v44, 5  ;;  %v3128_v43 = vor.u32 %v3127_v54, %v3124_v50  ;;  %v3133_v37 = vrot.slane %v3131_v4, 5 }
 0x25d   :  { %v3115_v10 = vrot.slane %v3114_v53, 4  ;;  %v9048_v33 = vrot.slane %v3538_v60, 4  ;;  %v9050_v40 = vrot.slane %v3541_v47, 5  ;;  %v9053_v51 = vrot.slane %v3552_v24, 4  ;;  %v3495_v47 = vld [vmem:[#allocation2 + $0x13c] sm:$0x1] }
 0x25e   :  { %v4736_v13 = vsel %vm4613_vm4, %v6195_v46, %v4290_v62  ;;  %v3129_v30 = vrot.slane %v3128_v43, 4  ;;  %v6238_v42 = vcombine.low %v3462_v0, %v3463_v41  ;;  %v9057_v56 = vrot.slane %v3555_v29, 5  ;;  %v4448_v41 = vpop.permute.xlu0 %4447 }
 0x25f   :  { %5566 = vmatprep.mubr.bf16.mxu1 %v4736_v13  ;;  %v6179_v45 = vcombine.low %v8998_v63, %v9007_v36  ;;  %v2680_v61 = vshrl.u32 %v9046_v25, 16  ;;  %v2683_v62 = vshll.u32 %v9046_v25, 16  ;;  %v3120_v14 = vsel %vm7371_vm7, %v3115_v10, %v3119_v17 }
 0x260   :  { %v3134_v32 = vsel %vm7371_vm7, %v3129_v30, %v3133_v37  ;;  %v9070_v23 = vsel %vm4613_vm4, %v6238_v42, %v4536_v2  ;;  %v6209_v35 = vcombine.low %v9021_v34, %v9027_v9  ;;  %v2689_v15 = vshll.u32 %v2481_v27, 16  ;;  %v3496_v2 = vld [vmem:[#allocation2 + $0x144] sm:$0x1]  ;;  %v2959_v42 = vld [vmem:[#allocation2 + $0x70] sm:$0xf] }
 0x261   :  { %v6225_v63 = vcombine.low %v3120_v14, %v3134_v32  ;;  %v4704_v36 = vsel %vm4613_vm4, %v6179_v45, %v8953_v26  ;;  %v2682_v49 = vrot.slane %v2680_v61, 4  ;;  %v2685_v1 = vrot.slane %v2683_v62, 5  ;;  %v2991_v62 = vld [vmem:[#allocation2 + $0x74] sm:$0x1] }
 0x262   :  { %5567 = vmatmul.mubr.bf16.gmra.mxu1 %v4704_v36  ;;  %v2694_v52 = vshrl.u32 %v9055_v18, 16  ;;  %v2697_v55 = vshll.u32 %v9055_v18, 16  ;;  %v2703_v28 = vshll.u32 %v2482_v11, 16  ;;  %v3136_v0 = vshrl.u32 %v9074_v19, 16 }
 0x263   :  { %v4792_v34 = vsel %vm4613_vm4, %v6225_v63, %v4446_v58  ;;  %v2686_v9 = vor.u32 %v2685_v1, %v2682_v49  ;;  %v3139_v26 = vshll.u32 %v9074_v19, 16  ;;  %v4760_v57 = vsel %vm4613_vm4, %v6209_v35, %v8990_v16 }
 0x264   :  { %5647 = vmatprep.mubr.bf16.mxu0 %v4792_v34  ;;  %v2696_v39 = vrot.slane %v2694_v52, 4  ;;  %v2699_v44 = vrot.slane %v2697_v55, 5  ;;  %v3145_v6 = vshll.u32 %v2989_v12, 16  ;;  %v3138_v31 = vrot.slane %v3136_v0, 4 }
 0x265   :  { %5648 = vmatmul.mubr.bf16.gmra.mxu0 %v4760_v57  ;;  %v2687_v7 = vrot.slane %v2686_v9, 4  ;;  %v3141_v48 = vrot.slane %v3139_v26, 5  ;;  %v3150_v58 = vshrl.u32 %v9080_v3, 16  ;;  %v2691_v50 = vrot.slane %v2689_v15, 5 }
 0x266   :  { %v2700_v54 = vor.u32 %v2699_v44, %v2696_v39  ;;  %v3153_v4 = vshll.u32 %v9080_v3, 16  ;;  %v3159_v60 = vshll.u32 %v2990_v38, 16  ;;  %v2705_v8 = vrot.slane %v2703_v28, 5  ;;  %v9111_v38 = vld [vmem:[#allocation2 + $0x128] sm:$0xf] }
 0x267   :  { %v3142_v53 = vor.u32 %v3141_v48, %v3138_v31  ;;  %v3147_v24 = vrot.slane %v3145_v6, 5  ;;  %v3152_v16 = vrot.slane %v3150_v58, 4  ;;  %v2692_v29 = vsel %vm7371_vm7, %v2687_v7, %v2691_v50  ;;  %v9117_v44 = vld [vmem:[#allocation2 + $0x130] sm:$0xf] }
 0x268   :  { %v2701_v46 = vrot.slane %v2700_v54, 4  ;;  %v3155_v17 = vrot.slane %v3153_v4, 5  ;;  %v6210_v43 = vcombine.low %v9074_v19, %v9080_v3  ;;  %v6180_v37 = vcombine.low %v9046_v25, %v9055_v18  ;;  %v4600_v25 = vpop.permute.xlu0 %4599 }
 0x269   :  { %v3143_v10 = vrot.slane %v3142_v53, 4  ;;  %v3544_v13 = vor.u32 %v9050_v40, %v9048_v33  ;;  %v3547_v30 = vshll.u32 %v3495_v47, 16  ;;  %v3161_v11 = vrot.slane %v3159_v60, 5  ;;  %v2960_v40 = vld [vmem:[#allocation2 + $0x78] sm:$0xf] }
 0x26a   :  { %v2706_v27 = vsel %vm7371_vm7, %v2701_v46, %v2705_v8  ;;  %v3156_v45 = vor.u32 %v3155_v17, %v3152_v16  ;;  %v3558_v61 = vor.u32 %v9057_v56, %v9053_v51  ;;  %v4708_v18 = vsel %vm4613_vm4, %v6180_v37, %v9013_v5  ;;  %v2992_v51 = vld [vmem:[#allocation2 + $0x7c] sm:$0x1]  ;;  %v9122_v60 = vld [vmem:[#allocation2 + $0x148] sm:$0xf] }
 0x26b   :  { %v6196_v14 = vcombine.low %v2692_v29, %v2706_v27  ;;  %v3148_v32 = vsel %vm7371_vm7, %v3143_v10, %v3147_v24  ;;  %v3545_v33 = vrot.slane %v3544_v13, 4  ;;  %v3561_v63 = vshll.u32 %v3496_v2, 16  ;;  %v3497_v24 = vld [vmem:[#allocation2 + $0x14c] sm:$0x1]  ;;  %v3498_v13 = vld [vmem:[#allocation2 + $0x154] sm:$0x1] }
 0x26c   :  { %v3157_v35 = vrot.slane %v3156_v45, 4  ;;  %v3559_v19 = vrot.slane %v3558_v61, 4  ;;  %v3164_v36 = vshrl.u32 %v2959_v42, 16  ;;  %v3549_v1 = vrot.slane %v3547_v30, 5  ;;  %v4450_v7 = vpop.permute.xlu0 %4449 }
 0x26d   :  { %v4740_v49 = vsel %vm4613_vm4, %v6196_v14, %v9059_v20  ;;  %v3167_v56 = vshll.u32 %v2959_v42, 16  ;;  %v3173_v12 = vshll.u32 %v2991_v62, 16  ;;  %v3563_v52 = vrot.slane %v3561_v63, 5  ;;  %v4386_v20 = vpop.permute.xlu1 %4385  ;;  %v2961_v62 = vld [vmem:[#allocation2 + $0x80] sm:$0xf] }
 0x26e   :  { %5574 = vmatprep.mubr.bf16.mxu1 %v4740_v49  ;;  %v3162_v15 = vsel %vm7371_vm7, %v3157_v35, %v3161_v11  ;;  %v3166_v55 = vrot.slane %v3164_v36, 4  ;;  %v3178_v5 = vshrl.u32 %v2960_v40, 16  ;;  %v4764_v3 = vsel %vm4613_vm4, %v6210_v43, %v9035_v59  ;;  %v9130_v43 = vld [vmem:[#allocation2 + $0x150] sm:$0xf]  ;;  %v2962_v49 = vld [vmem:[#allocation2 + $0x88] sm:$0xf] }
 0x26f   :  { %v6226_v28 = vcombine.low %v3148_v32, %v3162_v15  ;;  %5575 = vmatmul.mubr.bf16.gmra.mxu1 %v4708_v18  ;;  %v3169_v34 = vrot.slane %v3167_v56, 5  ;;  %v3181_v9 = vshll.u32 %v2960_v40, 16  ;;  %v3550_v0 = vsel %vm7371_vm7, %v3545_v33, %v3549_v1  ;;  %v2994_v56 = vld [vmem:[#allocation2 + $0x8c] sm:$0x1] }
 0x270   :  { %v3564_v26 = vsel %vm7371_vm7, %v3559_v19, %v3563_v52  ;;  %v3180_v57 = vrot.slane %v3178_v5, 4  ;;  %v3187_v39 = vshll.u32 %v2992_v51, 16  ;;  %v3175_v58 = vrot.slane %v3173_v12, 5  ;;  %v4602_v32 = vpop.permute.xlu0 %4601 }
 0x271   :  { %v4796_v6 = vsel %vm4613_vm4, %v6226_v28, %v4448_v41  ;;  %v6254_v59 = vcombine.low %v3550_v0, %v3564_v26  ;;  %v3170_v31 = vor.u32 %v3169_v34, %v3166_v55  ;;  %v3183_v48 = vrot.slane %v3181_v9, 5 }
 0x272   :  { %5655 = vmatprep.mubr.bf16.mxu0 %v4796_v6  ;;  %v6211_v50 = vcombine.low %v2959_v42, %v2960_v40  ;;  %v3510_v54 = vshrl.u32 %v9111_v38, 16  ;;  %v3513_v4 = vshll.u32 %v9111_v38, 16  ;;  %v3524_v41 = vshrl.u32 %v9117_v44, 16  ;;  %v4538_v42 = vpop.permute.xlu1 %4537  ;;  %v2993_v40 = vld [vmem:[#allocation2 + $0x84] sm:$0x1] }
 0x273   :  { %5656 = vmatmul.mubr.bf16.gmra.mxu0 %v4764_v3  ;;  %v4844_v47 = vsel %vm4613_vm4, %v6254_v59, %v4600_v25  ;;  %v3171_v8 = vrot.slane %v3170_v31, 4  ;;  %v3184_v53 = vor.u32 %v3183_v48, %v3180_v57  ;;  %v3189_v16 = vrot.slane %v3187_v39, 5  ;;  %v1257_v6 = vld [vmem:[#allocation2 + $0x164] sm:$0x1] }
 0x274   :  { %5720 = vmatprep.mubr.bf16.mxu1 %v4844_v47  ;;  %v4768_v29 = vsel %vm4613_vm4, %v6211_v50, %v4386_v20  ;;  %v9127_v46 = vrot.slane %v3510_v54, 4  ;;  %v3527_v17 = vshll.u32 %v9117_v44, 16  ;;  %v9132_v37 = vrot.slane %v3513_v4, 5  ;;  %v4452_v59 = vpop.permute.xlu0 %4451  ;;  %v9150_v50 = vld [vmem:[#allocation2 + $0x158] sm:$0xf] }
 0x275   :  { %v3185_v10 = vrot.slane %v3184_v53, 4  ;;  %v6237_v2 = vcombine.low %v9111_v38, %v9117_v44  ;;  %v3566_v30 = vshrl.u32 %v9122_v60, 16  ;;  %v3176_v27 = vsel %vm7371_vm7, %v3171_v8, %v3175_v58  ;;  %v9154_v53 = vld [vmem:[#allocation2 + $0x160] sm:$0xf] }
 0x276   :  { %v9139_v45 = vrot.slane %v3524_v41, 4  ;;  %v3569_v11 = vshll.u32 %v9122_v60, 16  ;;  %v3575_v61 = vshll.u32 %v3497_v24, 16  ;;  %v3580_v18 = vshrl.u32 %v9130_v43, 16  ;;  %v4388_v20 = vpop.permute.xlu1 %4387  ;;  %v3499_v41 = vld [vmem:[#allocation2 + $0x15c] sm:$0x1] }
 0x277   :  { %v3190_v14 = vsel %vm7371_vm7, %v3185_v10, %v3189_v16  ;;  %5721 = vmatmul.mubr.bf16.vlgmr.msra.gmra.mxu1 %v9070_v23  ;;  %v3568_v25 = vrot.slane %v3566_v30, 4  ;;  %v3583_v33 = vshll.u32 %v9130_v43, 16  ;;  %v9147_v19 = vrot.slane %v3527_v17, 5 }
 0x278   :  { %v6227_v35 = vcombine.low %v3176_v27, %v3190_v14  ;;  %v3571_v63 = vrot.slane %v3569_v11, 5  ;;  %v3589_v36 = vshll.u32 %v3498_v13, 16  ;;  %v3582_v1 = vrot.slane %v3580_v18, 4 }
 0x279   :  { %v3585_v51 = vrot.slane %v3583_v33, 5  ;;  %v3192_v12 = vshrl.u32 %v2961_v62, 16  ;;  %v3195_v15 = vshll.u32 %v2961_v62, 16  ;;  %v3577_v55 = vrot.slane %v3575_v61, 5 }
 0x27a   :  { %v4800_v52 = vsel %vm4613_vm4, %v6227_v35, %v4450_v7  ;;  %v3572_v23 = vor.u32 %v3571_v63, %v3568_v25  ;;  %v3201_v5 = vshll.u32 %v2993_v40, 16  ;;  %v3206_v9 = vshrl.u32 %v2962_v49, 16  ;;  %v3493_v25 = vld [vmem:[#allocation2 + $0x12c] sm:$0x1]  ;;  %v4540_v18 = vpop.permute.xlu1 %4539  ;;  %v3494_v35 = vld [vmem:[#allocation2 + $0x134] sm:$0x1] }
 0x27b   :  { %5663 = vmatprep.mubr.bf16.mxu0 %v4800_v52  ;;  %v3586_v28 = vor.u32 %v3585_v51, %v3582_v1  ;;  %v3194_v3 = vrot.slane %v3192_v12, 4  ;;  %v3197_v34 = vrot.slane %v3195_v15, 5  ;;  %v3591_v26 = vrot.slane %v3589_v36, 5  ;;  %v9171_v36 = vpop.permute.xlu0 %4603  ;;  %v9179_v15 = vld [vmem:[#allocation2 + $0x170] sm:$0xf] }
 0x27c   :  { %5664 = vmatmul.mubr.bf16.gmra.mxu0 %v4768_v29  ;;  %v3573_v0 = vrot.slane %v3572_v23, 4  ;;  %v3209_v57 = vshll.u32 %v2962_v49, 16  ;;  %v3215_v39 = vshll.u32 %v2994_v56, 16  ;;  %v3203_v58 = vrot.slane %v3201_v5, 5 }
 0x27d   :  { %v3587_v31 = vrot.slane %v3586_v28, 4  ;;  %v3198_v48 = vor.u32 %v3197_v34, %v3194_v3  ;;  %v3208_v7 = vrot.slane %v3206_v9, 4  ;;  %v6212_v8 = vcombine.low %v2961_v62, %v2962_v49  ;;  %v9181_v28 = vld [vmem:[#allocation2 + $0x178] sm:$0xf]  ;;  %v3501_v9 = vld [vmem:[#allocation2 + $0x174] sm:$0x1] }
 0x27e   :  { %v3578_v54 = vsel %vm7371_vm7, %v3573_v0, %v3577_v55  ;;  %v3211_v4 = vrot.slane %v3209_v57, 5  ;;  %v3217_v47 = vrot.slane %v3215_v39, 5  ;;  %v6239_v29 = vcombine.low %v9122_v60, %v9130_v43 }
 0x27f   :  { %v3592_v24 = vsel %vm7371_vm7, %v3587_v31, %v3591_v26  ;;  %v3199_v16 = vrot.slane %v3198_v48, 4  ;;  %v1258_v17 = vsel %vm7079_vm3, 0, %v1257_v6  ;;  %v4772_v30 = vsel %vm4613_vm4, %v6212_v8, %v4388_v20 }
 0x280   :  { %v6255_v10 = vcombine.low %v3578_v54, %v3592_v24  ;;  %v3212_v13 = vor.u32 %v3211_v4, %v3208_v7  ;;  %1259 = vst [vmem:[#allocation2 + $0x164] sm:$0x1] %v1258_v17  ;;  %v3594_v27 = vshrl.u32 %v9150_v50, 16  ;;  %v4816_v11 = vsel %vm4613_vm4, %v6239_v29, %v4538_v42  ;;  %v4598_v7 = vpop.permute.xlu0 %4597 }
 0x281   :  { %v3597_v61 = vshll.u32 %v9150_v50, 16  ;;  %v3603_v62 = vshll.u32 %v3499_v41, 16  ;;  %v3608_v14 = vshrl.u32 %v9154_v53, 16  ;;  %v3611_v40 = vshll.u32 %v9154_v53, 16 }
 0x282   :  { %v4848_v60 = vsel %vm4613_vm4, %v6255_v10, %v4602_v32  ;;  %v3213_v43 = vrot.slane %v3212_v13, 4  ;;  %v3596_v33 = vrot.slane %v3594_v27, 4  ;;  %v3204_v63 = vsel %vm7371_vm7, %v3199_v16, %v3203_v58  ;;  %v3502_v58 = vld [vmem:[#allocation2 + $0x17c] sm:$0x1]  ;;  %v9200_v10 = vld [vmem:[#allocation2 + $0x180] sm:$0xf] }
 0x283   :  { %5728 = vmatprep.mubr.bf16.mxu1 %v4848_v60  ;;  %v3599_v42 = vrot.slane %v3597_v61, 5  ;;  %v3610_v49 = vrot.slane %v3608_v14, 4  ;;  %v3516_v1 = vor.u32 %v9132_v37, %v9127_v46  ;;  %v3613_v32 = vrot.slane %v3611_v40, 5  ;;  %v3504_v40 = vld [vmem:[#allocation2 + $0x18c] sm:$0x1] }
 0x284   :  { %v3218_v51 = vsel %vm7371_vm7, %v3213_v43, %v3217_v47  ;;  %5729 = vmatmul.mubr.bf16.gmra.mxu1 %v4816_v11  ;;  %v3519_v56 = vshll.u32 %v3493_v25, 16  ;;  %v3530_v12 = vor.u32 %v9147_v19, %v9139_v45  ;;  %v3533_v5 = vshll.u32 %v3494_v35, 16  ;;  %v4534_v19 = vpop.permute.xlu1 %4533  ;;  %v3503_v25 = vld [vmem:[#allocation2 + $0x184] sm:$0x1] }
 0x285   :  { %v6228_v52 = vcombine.low %v3204_v63, %v3218_v51  ;;  %v3600_v23 = vor.u32 %v3599_v42, %v3596_v33  ;;  %v3517_v55 = vrot.slane %v3516_v1, 4  ;;  %v3605_v3 = vrot.slane %v3603_v62, 5  ;;  %v9208_v62 = vld [vmem:[#allocation2 + $0x188] sm:$0xf]  ;;  %v9219_v51 = vld [vmem:[#allocation2 + $0x190] sm:$0xf] }
 0x286   :  { %v3614_v34 = vor.u32 %v3613_v32, %v3610_v49  ;;  %v3521_v46 = vrot.slane %v3519_v56, 5  ;;  %v3531_v37 = vrot.slane %v3530_v12, 4  ;;  %v3535_v57 = vrot.slane %v3533_v5, 5 }
 0x287   :  { %v4804_v20 = vsel %vm4613_vm4, %v6228_v52, %v4452_v59  ;;  %v3500_v0 = vld [vmem:[#allocation2 + $0x164] sm:$0x1]  ;;  %v3601_v26 = vrot.slane %v3600_v23, 4  ;;  %v3622_v45 = vshrl.u32 %v9179_v15, 16  ;;  %v6240_v48 = vcombine.low %v9150_v50, %v9154_v53 }
 0x288   :  { %5671 = vmatprep.mubr.bf16.mxu0 %v4804_v20  ;;  %v3615_v39 = vrot.slane %v3614_v34, 4  ;;  %v3617_v6 = vshll.u32 %v3500_v0, 16  ;;  %v3522_v31 = vsel %vm7371_vm7, %v3517_v55, %v3521_v46  ;;  %v3536_v54 = vsel %vm7371_vm7, %v3531_v37, %v3535_v57  ;;  %v4542_v56 = vpop.permute.xlu1 %4541  ;;  %v9226_v37 = vld [vmem:[#allocation2 + $0x198] sm:$0xf] }
 0x289   :  { %5672 = vmatmul.mubr.bf16.gmra.mxu0 %v4772_v30  ;;  %v3606_v59 = vsel %vm7371_vm7, %v3601_v26, %v3605_v3  ;;  %v3624_v4 = vrot.slane %v3622_v45, 4  ;;  %v3625_v47 = vshll.u32 %v9179_v15, 16  ;;  %v6253_v41 = vcombine.low %v3522_v31, %v3536_v54  ;;  %v4606_v3 = vpop.permute.xlu0 %4605  ;;  %v3505_v26 = vld [vmem:[#allocation2 + $0x194] sm:$0x1] }
 0x28a   :  { %v3619_v8 = vrot.slane %v3617_v6, 5  ;;  %v3631_v24 = vshll.u32 %v3501_v9, 16  ;;  %v3636_v16 = vshrl.u32 %v9181_v28, 16  ;;  %v4808_v50 = vsel %vm4613_vm4, %v6237_v2, %v4534_v19 }
 0x28b   :  { %v3627_v53 = vrot.slane %v3625_v47, 5  ;;  %v3639_v29 = vshll.u32 %v9181_v28, 16  ;;  %v3645_v17 = vshll.u32 %v3502_v58, 16  ;;  %v9202_v13 = vpop.f32.mrf.mxu1  ;;  %v4840_v27 = vsel %vm4613_vm4, %v6253_v41, %v4598_v7  ;;  %v1293_v58 = vld [vmem:[#allocation2 + $0x1ac] sm:$0x1] }
 0x28c   :  { %v3620_v30 = vsel %vm7371_vm7, %v3615_v39, %v3619_v8  ;;  %v4820_v11 = vsel %vm4613_vm4, %v6240_v48, %v4540_v18  ;;  %v3638_v61 = vrot.slane %v3636_v16, 4  ;;  %5712 = vmatprep.mubr.bf16.mxu0 %v4840_v27  ;;  %v6241_v14 = vcombine.low %v9179_v15, %v9181_v28  ;;  %v3506_v48 = vld [vmem:[#allocation2 + $0x19c] sm:$0x1]  ;;  %v9234_v47 = vld [vmem:[#allocation2 + $0x1a0] sm:$0xf] }
 0x28d   :  { %v6256_v38 = vcombine.low %v3606_v59, %v3620_v30  ;;  %v3628_v44 = vor.u32 %v3627_v53, %v3624_v4  ;;  %v3641_v2 = vrot.slane %v3639_v29, 5  ;;  %v9212_v60 = vpop.f32.mrf.mxu1  ;;  %v3633_v43 = vrot.slane %v3631_v24, 5  ;;  %v4608_v27 = vpop.permute.xlu0 %4607 }
 0x28e   :  { %v3647_v33 = vrot.slane %v3645_v17, 5  ;;  %v3650_v35 = vshrl.u32 %v9200_v10, 16  ;;  %v3653_v18 = vshll.u32 %v9200_v10, 16  ;;  %v3664_v1 = vshrl.u32 %v9208_v62, 16 }
 0x28f   :  { %v4852_v63 = vsel %vm4613_vm4, %v6256_v38, %v9171_v36  ;;  %v3629_v42 = vrot.slane %v3628_v44, 4  ;;  %v3642_v49 = vor.u32 %v3641_v2, %v3638_v61  ;;  %v9221_v32 = vpop.f32.mrf.mxu1  ;;  %v3659_v52 = vshll.u32 %v3503_v25, 16  ;;  %v9244_v44 = vld [vmem:[#allocation2 + $0x1a8] sm:$0xf] }
 0x290   :  { %5736 = vmatprep.mubr.bf16.mxu1 %v4852_v63  ;;  %v3652_v12 = vrot.slane %v3650_v35, 4  ;;  %v3655_v15 = vrot.slane %v3653_v18, 5  ;;  %v3667_v23 = vshll.u32 %v9208_v62, 16  ;;  %v3666_v5 = vrot.slane %v3664_v1, 4 }
 0x291   :  { %5713 = vmatmul.mubr.bf16.vlgmr.msra.gmra.mxu0 %v4808_v50  ;;  %5737 = vmatmul.mubr.bf16.gmra.mxu1 %v4820_v11  ;;  %v3634_v36 = vsel %vm7371_vm7, %v3629_v42, %v3633_v43  ;;  %v3643_v55 = vrot.slane %v3642_v49, 4  ;;  %v3673_v28 = vshll.u32 %v3504_v40, 16  ;;  %v3678_v9 = vshrl.u32 %v9219_v51, 16  ;;  %v6453_v45 = vpop.f32.mrf.mxu1  ;;  %v3507_v42 = vld [vmem:[#allocation2 + $0x1a4] sm:$0x1] }
 0x292   :  { %v3656_v34 = vor.u32 %v3655_v15, %v3652_v12  ;;  %v3669_v46 = vrot.slane %v3667_v23, 5  ;;  %v4824_v0 = vsel %vm4613_vm4, %v6241_v14, %v4542_v56  ;;  %v3681_v57 = vshll.u32 %v9219_v51, 16 }
 0x293   :  { %v3648_v20 = vsel %vm7371_vm7, %v3643_v55, %v3647_v33  ;;  %v3661_v6 = vrot.slane %v3659_v52, 5  ;;  %v3675_v7 = vrot.slane %v3673_v28, 5  ;;  %v3680_v59 = vrot.slane %v3678_v9, 4 }
 0x294   :  { %v6257_v19 = vcombine.low %v3634_v36, %v3648_v20  ;;  %v3657_v39 = vrot.slane %v3656_v34, 4  ;;  %v3670_v31 = vor.u32 %v3669_v46, %v3666_v5  ;;  %v3683_v54 = vrot.slane %v3681_v57, 5  ;;  %v4544_v36 = vpop.permute.xlu1 %4543 }
 0x295   :  { %v3692_v4 = vshrl.u32 %v9226_v37, 16  ;;  %v3687_v24 = vshll.u32 %v3505_v26, 16  ;;  %v3695_v16 = vshll.u32 %v9226_v37, 16  ;;  %v3701_v17 = vshll.u32 %v3506_v48, 16 }
 0x296   :  { %v4856_v8 = vsel %vm4613_vm4, %v6257_v19, %v4606_v3  ;;  %v3671_v41 = vrot.slane %v3670_v31, 4  ;;  %v3662_v50 = vsel %vm7371_vm7, %v3657_v39, %v3661_v6  ;;  %v3684_v53 = vor.u32 %v3683_v54, %v3680_v59  ;;  %v4610_v3 = vpop.permute.xlu0 %4609 }
 0x297   :  { %5744 = vmatprep.mubr.bf16.mxu1 %v4856_v8  ;;  %v3694_v29 = vrot.slane %v3692_v4, 4  ;;  %v3697_v61 = vrot.slane %v3695_v16, 5  ;;  %v1294_v38 = vsel %vm7079_vm3, 0, %v1293_v58  ;;  %v3706_v2 = vshrl.u32 %v9234_v47, 16 }
 0x298   :  { %v6455_v30 = vpop.f32.mrf.mxu1  ;;  %v3676_v11 = vsel %vm7371_vm7, %v3671_v41, %v3675_v7  ;;  %v3685_v25 = vrot.slane %v3684_v53, 4  ;;  %1295 = vst [vmem:[#allocation2 + $0x1ac] sm:$0x1] %v1294_v38  ;;  %v3689_v33 = vrot.slane %v3687_v24, 5  ;;  %v3709_v18 = vshll.u32 %v9234_v47, 16  ;;  %v4546_v58 = vpop.permute.xlu1 %4545 }
 0x299   :  { %5745 = vmatmul.mubr.bf16.gmra.mxu1 %v4824_v0  ;;  %v6258_v14 = vcombine.low %v3662_v50, %v3676_v11  ;;  %v3698_v40 = vor.u32 %v3697_v61, %v3694_v29  ;;  %v3708_v35 = vrot.slane %v3706_v2, 4  ;;  %v6242_v21 = vcombine.low %v9200_v10, %v9208_v62 }
 0x29a   :  { %v6456_v43 = vpop.f32.mrf.mxu1  ;;  %v3720_v49 = vshrl.u32 %v9244_v44, 16  ;;  %v3723_v1 = vshll.u32 %v9244_v44, 16  ;;  %v3690_v12 = vsel %vm7371_vm7, %v3685_v25, %v3689_v33  ;;  %v3703_v52 = vrot.slane %v3701_v17, 5  ;;  %v4612_v59 = vpop.permute.xlu0 %4611 }
 0x29b   :  { %v4860_v63 = vsel %vm4613_vm4, %v6258_v14, %v4608_v27  ;;  %v3699_v15 = vrot.slane %v3698_v40, 4  ;;  %v3711_v23 = vrot.slane %v3709_v18, 5  ;;  %v9257_v28 = vadd.f32 %v9212_v60, %v9202_v13 }
 0x29c   :  { %v6458_v56 = vpop.f32.mrf.mxu1  ;;  %5752 = vmatprep.mubr.bf16.mxu1 %v4860_v63  ;;  %v3722_v55 = vrot.slane %v3720_v49, 4  ;;  %v3725_v5 = vrot.slane %v3723_v1, 5  ;;  %v9260_v10 = vadd.f32 %v6453_v45, %v9221_v32  ;;  %v3715_v9 = vshll.u32 %v3507_v42, 16  ;;  %v4548_v29 = vpop.permute.xlu1 %4547 }
 0x29d   :  { %v3704_v34 = vsel %vm7371_vm7, %v3699_v15, %v3703_v52  ;;  %v3712_v46 = vor.u32 %v3711_v23, %v3708_v35  ;;  %v9264_v20 = vadd.f32 %v6456_v43, %v6455_v30  ;;  %v4828_v57 = vsel %vm4613_vm4, %v6242_v21, %v4544_v36 }
 0x29e   :  { %v6459_v62 = vpop.f32.mrf.mxu1  ;;  %v6259_v0 = vcombine.low %v3690_v12, %v3704_v34  ;;  %v3726_v26 = vor.u32 %v3725_v5, %v3722_v55  ;;  %v3717_v6 = vrot.slane %v3715_v9, 5  ;;  %v6243_v54 = vcombine.low %v9219_v51, %v9226_v37  ;;  %v9308_v34 = vld [vmem:[%s9602_s4] ss:$0 sm:$0xff] }
 0x29f   :  { %v3508_v19 = vld [vmem:[#allocation2 + $0x1ac] sm:$0x1]  ;;  %v3713_v39 = vrot.slane %v3712_v46, 4  ;;  %v9267_v13 = vadd.f32 %v6459_v62, %v6458_v56  ;;  %v6244_v22 = vcombine.low %v9234_v47, %v9244_v44 }
 0x2a0   :  { %v4864_v60 = vsel %vm4613_vm4, %v6259_v0, %v4610_v3  ;;  %v3727_v32 = vrot.slane %v3726_v26, 4  ;;  %v3729_v45 = vshll.u32 %v3508_v19, 16  ;;  %v4832_v41 = vsel %vm4613_vm4, %v6243_v54, %v4546_v58 }
 0x2a1   :  { %5753 = vmatmul.mubr.bf16.gmra.mxu1 %v4828_v57  ;;  %v3718_v48 = vsel %vm7371_vm7, %v3713_v39, %v3717_v6  ;;  %v4836_v51 = vsel %vm4613_vm4, %v6244_v22, %v4548_v29  ;;  %v5424_v0 = vadd.f32 %v9257_v28, %v9308_v34 }
 0x2a2   :  { %5760 = vmatprep.mubr.bf16.mxu1 %v4864_v60  ;;  %v3731_v31 = vrot.slane %v3729_v45, 5  ;;  %v5427_v60 = vadd.f32 %v9260_v10, %v9308_v34  ;;  %v5435_v10 = vadd.f32 %v9267_v13, %v9308_v34 }
 0x2a4   :  { %v3732_v7 = vsel %vm7371_vm7, %v3727_v32, %v3731_v31 }
 0x2a5   :  { %v6260_v4 = vcombine.low %v3718_v48, %v3732_v7  ;;  %v5432_v7 = vadd.f32 %v9264_v20, %v9308_v34 }
 0x2a7   :  { %v6461_v8 = vpop.f32.mrf.mxu1  ;;  %v4868_v24 = vsel %vm4613_vm4, %v6260_v4, %v4612_v59 }
 0x2a9   :  { %5761 = vmatmul.mubr.bf16.gmra.mxu1 %v4832_v41  ;;  %v6462_v16 = vpop.f32.mrf.mxu1 }
 0x2aa   :  { %5768 = vmatprep.mubr.bf16.mxu1 %v4868_v24  ;;  %v9278_v50 = vadd.f32 %v6462_v16, %v6461_v8 }
 0x2ab   :  { %v6464_v53 = vpop.f32.mrf.mxu1 }
 0x2ad   :  { %v6465_v17 = vpop.f32.mrf.mxu1 }
 0x2ae   :  { %v9282_v30 = vadd.f32 %v6465_v17, %v6464_v53 }
 0x2b0   :  { %v5443_v13 = vadd.f32 %v9282_v30, %v9308_v34 }
 0x2b1   :  { %5769 = vmatmul.mubr.bf16.gmra.mxu1 %v4836_v51 }
 0x2b6   :  { %v6467_v37 = vpop.f32.mrf.mxu1 }
 0x2b8   :  { %v6468_v27 = vpop.f32.mrf.mxu1 }
 0x2b9   :  { %v9285_v11 = vadd.f32 %v6468_v27, %v6467_v37  ;;  %v5440_v37 = vadd.f32 %v9278_v50, %v9308_v34 }
 0x2ba   :  { %v6470_v61 = vpop.f32.mrf.mxu1 }
 0x2bb   :  { %v5448_v50 = vadd.f32 %v9285_v11, %v9308_v34 }
 0x2bc   :  { %v6471_v38 = vpop.f32.mrf.mxu1 }
 0x2bd   :  { %v9287_v2 = vadd.f32 %v6471_v38, %v6470_v61 }
 0x2bf   :  { %v5451_v30 = vadd.f32 %v9287_v2, %v9308_v34 }
 0x2c7   :  { %v6473_v14 = vpop.f32.mrf.mxu1 }
 0x2c9   :  { %v6474_v25 = vpop.f32.mrf.mxu1 }
 0x2ca   :  { %v9289_v43 = vadd.f32 %v6474_v25, %v6473_v14 }
 0x2cb   :  { %v6476_v33 = vpop.f32.mrf.mxu1 }
 0x2cd   :  { %v6477_v40 = vpop.f32.mrf.mxu1 }
 0x2ce   :  { %v9291_v47 = vadd.f32 %v6477_v40, %v6476_v33 }
 0x2d4   :  { %v6479_v44 = vpop.f32.mrf.mxu1 }
 0x2d6   :  { %v6480_v35 = vpop.f32.mrf.mxu1 }
 0x2d7   :  { %v9293_v18 = vadd.f32 %v6480_v35, %v6479_v44 }
 0x2d8   :  { %v6482_v63 = vpop.f32.mrf.mxu1 }
 0x2da   :  { %v6483_v21 = vpop.f32.mrf.mxu1 }
 0x2db   :  { %v9295_v42 = vadd.f32 %v6483_v21, %v6482_v63 }
 0x2de   :  { %v6485_v49 = vpop.f32.mrf.mxu1 }
 0x2e0   :  { %v6486_v1 = vpop.f32.mrf.mxu1 }
 0x2e1   :  { %v9297_v56 = vadd.f32 %v6486_v1, %v6485_v49 }
 0x2e2   :  { %v6488_v12 = vpop.f32.mrf.mxu1 }
 0x2e4   :  { %v6489_v15 = vpop.f32.mrf.mxu1 }
 0x2e5   :  { %v9299_v52 = vadd.f32 %v6489_v15, %v6488_v12 }
 0x2e6   :  { %v6491_v23 = vpop.f32.mrf.mxu1 }
 0x2e8   :  { %v6492_v36 = vpop.f32.mrf.mxu1 }
 0x2e9   :  { %v9301_v55 = vadd.f32 %v6492_v36, %v6491_v23 }
 0x2ea   :  { %v6494_v5 = vpop.f32.mrf.mxu1 }
 0x2ec   :  { %v6495_v62 = vpop.f32.mrf.mxu1 }
 0x2ed   :  { %v9303_v3 = vadd.f32 %v6495_v62, %v6494_v5 }
 0x2ee   :  { %v6513_v46 = vpop.f32.mrf.mxu1 }
 0x2ef   :  { %9614 = vst [vmem:[#allocation4_spill] sm:$0xff] %v9303_v3 }
 0x2f0   :  { %v6514_v9 = vpop.f32.mrf.mxu1 }
 0x2f1   :  { %v6515_v26 = vadd.f32 %v6514_v9, %v6513_v46 }
 0x2f2   :  { %v6516_v57 = vpop.f32.mrf.mxu1 }
 0x2f3   :  { %v5521_v19 = vadd.f32 %v6515_v26, %v5424_v0  ;;  %v5456_v0 = vadd.f32 %v9289_v43, %v9308_v34 }
 0x2f4   :  { %v6517_v39 = vpop.f32.mrf.mxu1 }
 0x2f5   :  { %v6518_v32 = vadd.f32 %v6517_v39, %v6516_v57 }
 0x2f6   :  { %v6519_v45 = vpop.f32.mrf.mxu1  ;;  %v6577_v6 = vpop.f32.mrf.mxu0 }
 0x2f7   :  { %v5524_v31 = vadd.f32 %v6518_v32, %v5427_v60  ;;  %v5459_v32 = vadd.f32 %v9291_v47, %v9308_v34 }
 0x2f8   :  { %v6520_v48 = vpop.f32.mrf.mxu1  ;;  %v6578_v58 = vpop.f32.mrf.mxu0 }
 0x2f9   :  { %v6521_v59 = vadd.f32 %v6520_v48, %v6519_v45  ;;  %v6579_v54 = vadd.f32 %v6578_v58, %v6577_v6  ;;  %v5464_v58 = vadd.f32 %v9293_v18, %v9308_v34 }
 0x2fa   :  { %v6522_v4 = vpop.f32.mrf.mxu1  ;;  %v6580_v28 = vpop.f32.mrf.mxu0 }
 0x2fb   :  { %v9316_v8 = vadd.f32 %v6521_v59, %v5432_v7  ;;  %v9318_v41 = vadd.f32 %v6579_v54, %v5521_v19 }
 0x2fc   :  { %v6523_v24 = vpop.f32.mrf.mxu1  ;;  %v6581_v16 = vpop.f32.mrf.mxu0 }
 0x2fd   :  { %v6524_v53 = vadd.f32 %v6523_v24, %v6522_v4  ;;  %v6582_v29 = vadd.f32 %v6581_v16, %v6580_v28 }
 0x2fe   :  { %v6525_v17 = vpop.f32.mrf.mxu1 }
 0x2ff   :  { %v9322_v22 = vadd.f32 %v6524_v53, %v5435_v10  ;;  %v9324_v51 = vadd.f32 %v6582_v29, %v5524_v31 }
 0x300   :  { %v6526_v20 = vpop.f32.mrf.mxu1 }
 0x301   :  { %v6527_v27 = vadd.f32 %v6526_v20, %v6525_v17 }
 0x302   :  { %v6528_v61 = vpop.f32.mrf.mxu1 }
 0x303   :  { %v9328_v38 = vadd.f32 %v6527_v27, %v5440_v37 }
 0x304   :  { %v9330_v14 = vpop.f32.mrf.mxu0  ;;  %v6529_v25 = vpop.f32.mrf.mxu1 }
 0x305   :  { %v6530_v33 = vadd.f32 %v6529_v25, %v6528_v61 }
 0x306   :  { %v9334_v40 = vpop.f32.mrf.mxu0  ;;  %v6531_v44 = vpop.f32.mrf.mxu1 }
 0x307   :  { %v9336_v35 = vadd.f32 %v6530_v33, %v5443_v13 }
 0x308   :  { %v9338_v63 = vpop.f32.mrf.mxu0  ;;  %v6532_v21 = vpop.f32.mrf.mxu1 }
 0x309   :  { %v6533_v49 = vadd.f32 %v6532_v21, %v6531_v44 }
 0x30a   :  { %v6534_v1 = vpop.f32.mrf.mxu1  ;;  %v9344_v15 = vpop.f32.mrf.mxu0 }
 0x30b   :  { %v9342_v12 = vadd.f32 %v6533_v49, %v5448_v50 }
 0x30c   :  { %v6535_v23 = vpop.f32.mrf.mxu1 }
 0x30d   :  { %v6536_v36 = vadd.f32 %v6535_v23, %v6534_v1 }
 0x30e   :  { %v6537_v5 = vpop.f32.mrf.mxu1 }
 0x30f   :  { %v6589_v62 = vpop.f32.mrf.mxu0  ;;  %v9348_v46 = vadd.f32 %v6536_v36, %v5451_v30 }
 0x310   :  { %v6538_v9 = vpop.f32.mrf.mxu1 }
 0x311   :  { %v6590_v11 = vpop.f32.mrf.mxu0  ;;  %v6539_v26 = vadd.f32 %v6538_v9, %v6537_v5 }
 0x312   :  { %v6540_v57 = vpop.f32.mrf.mxu1  ;;  %v6591_v3 = vadd.f32 %v6590_v11, %v6589_v62 }
 0x313   :  { %v6592_v19 = vpop.f32.mrf.mxu0  ;;  %v9352_v39 = vadd.f32 %v6539_v26, %v5456_v0 }
 0x314   :  { %v6541_v60 = vpop.f32.mrf.mxu1 }
 0x315   :  { %v6542_v2 = vadd.f32 %v6541_v60, %v6540_v57  ;;  %v6593_v45 = vpop.f32.mrf.mxu0 }
 0x316   :  { %v6543_v6 = vpop.f32.mrf.mxu1 }
 0x317   :  { %v9356_v31 = vadd.f32 %v6542_v2, %v5459_v32 }
 0x318   :  { %v6544_v48 = vpop.f32.mrf.mxu1 }
 0x319   :  { %v6545_v43 = vadd.f32 %v6544_v48, %v6543_v6 }
 0x31a   :  { %v6595_v7 = vpop.f32.mrf.mxu0  ;;  %v6546_v59 = vpop.f32.mrf.mxu1 }
 0x31b   :  { %v9360_v54 = vadd.f32 %v6545_v43, %v5464_v58  ;;  %v6585_v58 = vadd.f32 %v9334_v40, %v9330_v14  ;;  %v5472_v14 = vadd.f32 %v9297_v56, %v9308_v34 }
 0x31c   :  { %v6596_v4 = vpop.f32.mrf.mxu0  ;;  %v6547_v24 = vpop.f32.mrf.mxu1 }
 0x31d   :  { %v6597_v40 = vadd.f32 %v6596_v4, %v6595_v7  ;;  %v5634_v7 = vadd.f32 %v6591_v3, %v9328_v38 }
 0x31e   :  { %v6598_v28 = vpop.f32.mrf.mxu0 }
 0x320   :  { %v6599_v16 = vpop.f32.mrf.mxu0 }
 0x322   :  { %v6549_v10 = vpop.f32.mrf.mxu1 }
 0x324   :  { %v6550_v47 = vpop.f32.mrf.mxu1 }
 0x325   :  { %v6601_v53 = vpop.f32.mrf.mxu0 }
 0x326   :  { %v9362_v17 = vpop.f32.mrf.mxu1 }
 0x327   :  { %v6602_v29 = vpop.f32.mrf.mxu0 }
 0x328   :  { %v9364_v37 = vpop.f32.mrf.mxu1 }
 0x329   :  { %v6604_v20 = vpop.f32.mrf.mxu0 }
 0x32b   :  { %v6605_v27 = vpop.f32.mrf.mxu0 }
 0x32f   :  { %v9366_v18 = vpop.f32.mrf.mxu1 }
 0x331   :  { %v9368_v61 = vpop.f32.mrf.mxu1 }
 0x333   :  { %v9370_v25 = vpop.f32.mrf.mxu0  ;;  %v9372_v13 = vpop.f32.mrf.mxu1 }
 0x334   :  { %9615 = vst [vmem:[#allocation5_spill] sm:$0xff] %v9372_v13  ;;  %v6588_v13 = vadd.f32 %v9344_v15, %v9338_v63  ;;  %v5626_v63 = vadd.f32 %v6585_v58, %v9316_v8  ;;  %v6600_v15 = vadd.f32 %v6599_v16, %v6598_v28  ;;  %v5642_v28 = vadd.f32 %v6597_v40, %v9342_v12 }
 0x335   :  { %v9374_v33 = vpop.f32.mrf.mxu0  ;;  %v9376_v44 = vpop.f32.mrf.mxu1 }
 0x336   :  { %9616 = vst [vmem:[#allocation6_spill] sm:$0xff] %v9376_v44  ;;  %v14_v44 = vstv %s9603_s8 }
 0x337   :  { %v9378_v21 = vpop.f32.mrf.mxu0  ;;  %v6647_v50 = vpop.f32.mrf.mxu1  ;;  %15 = vst [vmem:[#allocation3] sm:$0x1] %v14_v44  ;;  %v6551_v44 = vadd.f32 %v6550_v47, %v6549_v10 }
 0x339   :  { %v9380_v49 = vpop.f32.mrf.mxu0  ;;  %v6648_v1 = vpop.f32.mrf.mxu1  ;;  %v9426_v38 = vadd.f32 %v6551_v44, %v5472_v14 }
 0x33b   :  { %v6650_v30 = vpop.f32.mrf.mxu1 }
 0x33c   :  { %v9382_v23 = vpop.f32.mrf.mxu0 }
 0x33d   :  { %v6651_v5 = vpop.f32.mrf.mxu1 }
 0x33e   :  { %v9384_v36 = vpop.f32.mrf.mxu0  ;;  %v6652_v62 = vadd.f32 %v6651_v5, %v6650_v30 }
 0x33f   :  { %9617 = vst [vmem:[#allocation7_spill] sm:$0xff] %v9384_v36  ;;  %v9411_v36 = vadd.f32 %v9299_v52, %v9308_v34  ;;  %v6603_v52 = vadd.f32 %v6602_v29, %v6601_v53 }
 0x340   :  { %v9386_v9 = vpop.f32.mrf.mxu0 }
 0x341   :  { %9618 = vst [vmem:[#allocation8_spill] sm:$0xff] %v9386_v9  ;;  %v5650_v29 = vadd.f32 %v6603_v52, %v9352_v39 }
 0x342   :  { %v9388_v26 = vpop.f32.mrf.mxu0 }
 0x343   :  { %9619 = vst [vmem:[#allocation9_spill] sm:$0xff] %v9388_v26  ;;  %v6649_v26 = vadd.f32 %v6648_v1, %v6647_v50  ;;  %v5645_v1 = vadd.f32 %v6600_v15, %v9348_v46 }
 0x344   :  { %v6653_v0 = vpop.f32.mrf.mxu1 }
 0x345   :  { %v5723_v4 = vadd.f32 %v6649_v26, %v5626_v63 }
 0x346   :  { %v6654_v57 = vpop.f32.mrf.mxu1 }
 0x347   :  { %v6655_v50 = vadd.f32 %v6654_v57, %v6653_v0  ;;  %v5795_v30 = vmul.f32 0.2, %v5723_v4  ;;  %vm5779_vm7 = vcmp.ge.f32.partialorder %v5723_v4, 0.0 }
 0x348   :  { %v6656_v32 = vpop.f32.mrf.mxu1 }
 0x349   :  { %v9390_v60 = vpop.f32.mrf.mxu0 }
 0x34a   :  { %9620 = vst [vmem:[#allocation10_spill] sm:$0xff] %v9390_v60  ;;  %v6657_v48 = vpop.f32.mrf.mxu1  ;;  %v6594_v60 = vadd.f32 %v6593_v45, %v6592_v19  ;;  %v9416_v45 = vadd.f32 %v9301_v55, %v9308_v34 }
 0x34b   :  { %v9392_v2 = vpop.f32.mrf.mxu0  ;;  %v6658_v47 = vadd.f32 %v6657_v48, %v6656_v32 }
 0x34c   :  { %9621 = vst [vmem:[#allocation11_spill] sm:$0xff] %v9392_v2 }
 0x34d   :  { %v9394_v6 = vpop.f32.mrf.mxu0 }
 0x34e   :  { %9622 = vst [vmem:[#allocation12_spill] sm:$0xff] %v9394_v6  ;;  %v5467_v6 = vadd.f32 %v9295_v42, %v9308_v34  ;;  %v5629_v42 = vadd.f32 %v6588_v13, %v9322_v22  ;;  %v6606_v22 = vadd.f32 %v6605_v27, %v6604_v20  ;;  %v5731_v20 = vadd.f32 %v6655_v50, %v5634_v7 }
 0x34f   :  { %v9398_v43 = vpop.f32.mrf.mxu0 }
 0x350   :  { %9623 = vst [vmem:[#allocation13_spill] sm:$0xff] %v9398_v43  ;;  %v6548_v43 = vadd.f32 %v6547_v24, %v6546_v59  ;;  %v5637_v59 = vadd.f32 %v6594_v60, %v9336_v35  ;;  %v5726_v10 = vadd.f32 %v6652_v62, %v5629_v42  ;;  %v9430_v35 = vadd.f32 %v9364_v37, %v9362_v17 }
 0x351   :  { %v6641_v2 = vpop.f32.mrf.mxu0  ;;  %v6659_v9 = vpop.f32.mrf.mxu1  ;;  %v5653_v0 = vadd.f32 %v6606_v22, %v9356_v31  ;;  %v9439_v17 = vadd.f32 %v9368_v61, %v9366_v18  ;;  %v5797_v32 = vmul.f32 0.2, %v5731_v20  ;;  %vm5781_vm13 = vcmp.ge.f32.partialorder %v5731_v20, 0.0 }
 0x352   :  { %v9422_v16 = vadd.f32 %v6548_v43, %v5467_v6  ;;  %v5796_v37 = vmul.f32 0.2, %v5726_v10  ;;  %v5734_v26 = vadd.f32 %v6658_v47, %v5637_v59  ;;  %vm5780_vm14 = vcmp.ge.f32.partialorder %v5726_v10, 0.0 }
 0x353   :  { %v6642_v11 = vpop.f32.mrf.mxu0  ;;  %v6660_v19 = vpop.f32.mrf.mxu1  ;;  %v9463_v42 = vsel %vm5781_vm13, %v5731_v20, %v5797_v32 }
 0x354   :  { %v6643_v56 = vadd.f32 %v6642_v11, %v6641_v2  ;;  %v6661_v5 = vadd.f32 %v6660_v19, %v6659_v9  ;;  %v9446_v9 = vsel %vm5779_vm7, %v5723_v4, %v5795_v30  ;;  %v5798_v58 = vmul.f32 0.2, %v5734_v26  ;;  %v9624_v11 = vld [vmem:[#allocation7_spill] sm:$0xff] }
 0x355   :  { %v6644_v24 = vpop.f32.mrf.mxu0  ;;  %v6662_v8 = vpop.f32.mrf.mxu1  ;;  %v5848_v40 = vmul.f32 %v9446_v9, %v9446_v9  ;;  %vm5782_vm15 = vcmp.ge.f32.partialorder %v5734_v26, 0.0  ;;  %v6615_v19 = vadd.f32 %v9624_v11, %v9382_v23  ;;  %v5850_v23 = vmul.f32 %v9463_v42, %v9463_v42  ;;  %v9627_v11 = vld [vmem:[#allocation10_spill] sm:$0xff] }
 0x356   :  { %v5715_v55 = vadd.f32 %v6643_v56, %v9318_v41  ;;  %v6609_v41 = vadd.f32 %v9374_v33, %v9370_v25  ;;  %v5739_v61 = vadd.f32 %v6661_v5, %v5642_v28  ;;  %vm5987_vm7 = vcmask 1041408  }
 0x357   :  { %v6645_v13 = vpop.f32.mrf.mxu0  ;;  %v6663_v3 = vpop.f32.mrf.mxu1  ;;  %v5666_v30 = vadd.f32 %v6615_v19, %v9426_v38  ;;  %v9628_v19 = vld [vmem:[#allocation11_spill] sm:$0xff] }
 0x358   :  { %v5793_v53 = vmul.f32 0.2, %v5715_v55  ;;  %v6646_v12 = vadd.f32 %v6645_v13, %v6644_v24  ;;  %vm5777_vm3 = vcmp.ge.f32.partialorder %v5715_v55, 0.0  ;;  %v6664_v33 = vadd.f32 %v6663_v3, %v6662_v8 }
 0x359   :  { %v6665_v46 = vpop.f32.mrf.mxu1  ;;  %v5658_v60 = vadd.f32 %v6609_v41, %v9360_v54  ;;  %v5799_v44 = vmul.f32 0.2, %v5739_v61  ;;  %vm5783_vm0 = vcmp.ge.f32.partialorder %v5739_v61, 0.0  ;;  %v9468_v24 = vsel %vm5782_vm15, %v5734_v26, %v5798_v58  ;;  %v9625_v26 = vld [vmem:[#allocation8_spill] sm:$0xff] }
 0x35a   :  { %v5718_v27 = vadd.f32 %v6646_v12, %v9324_v51  ;;  %v9441_v57 = vsel %vm5777_vm3, %v5715_v55, %v5793_v53  ;;  %v6612_v51 = vadd.f32 %v9380_v49, %v9378_v21  ;;  %v9456_v49 = vsel %vm5780_vm14, %v5726_v10, %v5796_v37 }
 0x35b   :  { %v6666_v39 = vpop.f32.mrf.mxu1  ;;  %v5846_v6 = vmul.f32 %v9441_v57, %v9441_v57  ;;  %v5742_v43 = vadd.f32 %v6664_v33, %v5645_v1  ;;  %v5849_v7 = vmul.f32 %v9456_v49, %v9456_v49  ;;  %v9474_v47 = vsel %vm5783_vm0, %v5739_v61, %v5799_v44 }
 0x35c   :  { %vm5778_vm12 = vcmp.ge.f32.partialorder %v5718_v27, 0.0  ;;  %v5794_v25 = vmul.f32 0.2, %v5718_v27  ;;  %v6667_v2 = vadd.f32 %v6666_v39, %v6665_v46  ;;  %v5661_v10 = vadd.f32 %v6612_v51, %v9422_v16  ;;  %v9626_v39 = vld [vmem:[#allocation9_spill] sm:$0xff] }
 0x35d   :  { %v6668_v31 = vpop.f32.mrf.mxu1  ;;  %v5800_v8 = vmul.f32 0.2, %v5742_v43  ;;  %vm5784_vm1 = vcmp.ge.f32.partialorder %v5742_v43, 0.0  ;;  %v5851_v53 = vmul.f32 %v9468_v24, %v9468_v24  ;;  %v5852_v5 = vmul.f32 %v9474_v47, %v9474_v47 }
 0x35e   :  { %v9448_v18 = vsel %vm5778_vm12, %v5718_v27, %v5794_v25  ;;  %v5747_v56 = vadd.f32 %v6667_v2, %v5650_v29  ;;  %v6618_v25 = vadd.f32 %v9626_v39, %v9625_v26  ;;  %v6621_v44 = vadd.f32 %v9628_v19, %v9627_v11 }
 0x35f   :  { %v5825_v48 = vadd.f32 %v9448_v18, %v9441_v57  ;;  %v5847_v54 = vmul.f32 %v9448_v18, %v9448_v18  ;;  %v6669_v21 = vpop.f32.mrf.mxu1  ;;  %v9480_v46 = vsel %vm5784_vm1, %v5742_v43, %v5800_v8  ;;  %vm5984_vm3 = vcmask 1041409  }
 0x360   :  { %v6670_v14 = vadd.f32 %v6669_v21, %v6668_v31  ;;  %v5801_v13 = vmul.f32 0.2, %v5747_v56  ;;  %vm5785_vm2 = vcmp.ge.f32.partialorder %v5747_v56, 0.0  ;;  %v5853_v32 = vmul.f32 %v9480_v46, %v9480_v46 }
 0x361   :  { %v5826_v63 = vadd.f32 %v5825_v48, %v9446_v9  ;;  %v5862_v15 = vadd.f32 %v5847_v54, %v5846_v6  ;;  %v6671_v62 = vpop.f32.mrf.mxu1  ;;  %v5572_v54 = vadd.f32 %v9430_v35, %v9411_v36  ;;  %vm6005_vm12 = vcmask 1024  }
 0x362   :  { %v5750_v28 = vadd.f32 %v6670_v14, %v5653_v0  ;;  %v9487_v33 = vsel %vm5785_vm2, %v5747_v56, %v5801_v13 }
 0x363   :  { %v5827_v59 = vadd.f32 %v5826_v63, %v9456_v49  ;;  %v5863_v52 = vadd.f32 %v5862_v15, %v5848_v40  ;;  %v6672_v4 = vpop.f32.mrf.mxu1  ;;  %v5854_v43 = vmul.f32 %v9487_v33, %v9487_v33  ;;  %v5577_v40 = vadd.f32 %v9439_v17, %v9416_v45 }
 0x364   :  { %v6673_v50 = vadd.f32 %v6672_v4, %v6671_v62  ;;  %v5802_v20 = vmul.f32 0.2, %v5750_v28  ;;  %vm5786_vm5 = vcmp.ge.f32.partialorder %v5750_v28, 0.0 }
 0x365   :  { %v5864_v55 = vadd.f32 %v5863_v52, %v5849_v7  ;;  %v5828_v1 = vadd.f32 %v5827_v59, %v9463_v42  ;;  %v6674_v22 = vpop.f32.mrf.mxu1  ;;  %v5669_v59 = vadd.f32 %v6618_v25, %v5572_v54 }
 0x366   :  { %v5755_v3 = vadd.f32 %v6673_v50, %v5658_v60  ;;  %v9492_v2 = vsel %vm5786_vm5, %v5750_v28, %v5802_v20  ;;  %v9632_v20 = vld [vmem:[#allocation12_spill] sm:$0xff] }
 0x367   :  { %v5829_v12 = vadd.f32 %v5828_v1, %v9468_v24  ;;  %v5865_v29 = vadd.f32 %v5864_v55, %v5850_v23  ;;  %v6675_v41 = vpop.f32.mrf.mxu1  ;;  %v5855_v35 = vmul.f32 %v9492_v2, %v9492_v2  ;;  %v9629_v23 = vld [vmem:[#allocation4_spill] sm:$0xff]  ;;  %v9630_v1 = vld [vmem:[#allocation5_spill] sm:$0xff] }
 0x368   :  { %v6676_v27 = vadd.f32 %v6675_v41, %v6674_v22  ;;  %v5803_v60 = vmul.f32 0.2, %v5755_v3  ;;  %vm5787_vm6 = vcmp.ge.f32.partialorder %v5755_v3, 0.0  ;;  %v5483_v55 = vadd.f32 %v9629_v23, %v9308_v34  ;;  %v9631_v22 = vld [vmem:[#allocation6_spill] sm:$0xff] }
 0x369   :  { %v5830_v16 = vadd.f32 %v5829_v12, %v9474_v47  ;;  %v5866_v0 = vadd.f32 %v5865_v29, %v5851_v53  ;;  %v6677_v37 = vpop.f32.mrf.mxu1  ;;  %v5674_v53 = vadd.f32 %v6621_v44, %v5577_v40 }
 0x36a   :  { %v5758_v51 = vadd.f32 %v6676_v27, %v5661_v10  ;;  %v9501_v63 = vsel %vm5787_vm6, %v5755_v3, %v5803_v60  ;;  %v6560_v10 = vadd.f32 %v9631_v22, %v9630_v1  ;;  %v9633_v27 = vld [vmem:[#allocation13_spill] sm:$0xff] }
 0x36b   :  { %v5867_v38 = vadd.f32 %v5866_v0, %v5852_v5  ;;  %v5831_v31 = vadd.f32 %v5830_v16, %v9480_v46  ;;  %v6678_v61 = vpop.f32.mrf.mxu1  ;;  %v5856_v8 = vmul.f32 %v9501_v63, %v9501_v63  ;;  %v6624_v16 = vadd.f32 %v9633_v27, %v9632_v20 }
 0x36c   :  { %vm5788_vm8 = vcmp.ge.f32.partialorder %v5758_v51, 0.0  ;;  %v5804_v6 = vmul.f32 0.2, %v5758_v51  ;;  %v6679_v48 = vadd.f32 %v6678_v61, %v6677_v37  ;;  %v5580_v39 = vadd.f32 %v6560_v10, %v5483_v55 }
 0x36d   :  { %v5868_v21 = vadd.f32 %v5867_v38, %v5853_v32  ;;  %v5832_v58 = vadd.f32 %v5831_v31, %v9487_v33  ;;  %v6680_v14 = vpop.f32.mrf.mxu1 }
 0x36e   :  { %v9503_v15 = vsel %vm5788_vm8, %v5758_v51, %v5804_v6  ;;  %v5763_v62 = vadd.f32 %v6679_v48, %v5666_v30  ;;  %v5677_v61 = vadd.f32 %v6624_v16, %v5580_v39  ;;  %v5901_v39 = vld [vmem:[%s9604_s7 + $0x30] sm:$0xff] }
 0x36f   :  { %v5869_v56 = vadd.f32 %v5868_v21, %v5854_v43  ;;  %v5833_v36 = vadd.f32 %v5832_v58, %v9492_v2  ;;  %v6681_v7 = vpop.f32.mrf.mxu1  ;;  %v5857_v28 = vmul.f32 %v9503_v15, %v9503_v15 }
 0x370   :  { %vm5789_vm9 = vcmp.ge.f32.partialorder %v5763_v62, 0.0  ;;  %v5805_v52 = vmul.f32 0.2, %v5763_v62  ;;  %v6682_v4 = vadd.f32 %v6681_v7, %v6680_v14 }
 0x371   :  { %v5870_v45 = vadd.f32 %v5869_v56, %v5855_v35  ;;  %v5834_v17 = vadd.f32 %v5833_v36, %v9501_v63  ;;  %v6683_v50 = vpop.f32.mrf.mxu1 }
 0x372   :  { %v9519_v13 = vsel %vm5789_vm9, %v5763_v62, %v5805_v52  ;;  %v5766_v3 = vadd.f32 %v6682_v4, %v5669_v59 }
 0x373   :  { %v5871_v12 = vadd.f32 %v5870_v45, %v5856_v8  ;;  %v5835_v29 = vadd.f32 %v5834_v17, %v9503_v15  ;;  %v5858_v41 = vmul.f32 %v9519_v13, %v9519_v13  ;;  %v6684_v30 = vpop.f32.mrf.mxu1 }
 0x374   :  { %vm5790_vm10 = vcmp.ge.f32.partialorder %v5766_v3, 0.0  ;;  %v5806_v5 = vmul.f32 0.2, %v5766_v3  ;;  %v6685_v34 = vadd.f32 %v6684_v30, %v6683_v50  ;;  %v5896_v50 = vld [vmem:[%s9604_s7 + $0x8] sm:$0xff]  ;;  %v5898_v30 = vld [vmem:[%s9604_s7 + $0x18] sm:$0xff] }
 0x375   :  { %v5872_v0 = vadd.f32 %v5871_v12, %v5857_v28  ;;  %v5836_v37 = vadd.f32 %v5835_v29, %v9519_v13  ;;  %v6686_v26 = vpop.f32.mrf.mxu1  ;;  %v5895_v28 = vld [vmem:[%s9604_s7] sm:$0xff] }
 0x376   :  { %v9527_v25 = vsel %vm5790_vm10, %v5766_v3, %v5806_v5  ;;  %v5771_v60 = vadd.f32 %v6685_v34, %v5674_v53  ;;  %v5959_v1 = vadd.f32 %v5896_v50, %v5895_v28  ;;  %v5897_v3 = vld [vmem:[%s9604_s7 + $0x10] sm:$0xff]  ;;  %v5899_v5 = vld [vmem:[%s9604_s7 + $0x20] sm:$0xff] }
 0x377   :  { %v5873_v51 = vadd.f32 %v5872_v0, %v5858_v41  ;;  %v5837_v38 = vadd.f32 %v5836_v37, %v9527_v25  ;;  %v5859_v31 = vmul.f32 %v9527_v25, %v9527_v25  ;;  %v6687_v32 = vpop.f32.mrf.mxu1  ;;  %v5900_v0 = vld [vmem:[%s9604_s7 + $0x28] sm:$0xff]  ;;  %v5904_v37 = vlaneseq }
 0x378   :  { %vm5791_vm11 = vcmp.ge.f32.partialorder %v5771_v60, 0.0  ;;  %v5807_v6 = vmul.f32 0.2, %v5771_v60  ;;  %v6688_v48 = vadd.f32 %v6687_v32, %v6686_v26  ;;  %v5960_v29 = vadd.f32 %v5959_v1, %v5897_v3 }
 0x379   :  { %v5874_v54 = vadd.f32 %v5873_v51, %v5859_v31  ;;  %v5888_v31 = vld [vmem:[%s9605_s5] sm:$0x1] }
 0x37a   :  { %v9532_v21 = vsel %vm5791_vm11, %v5771_v60, %v5807_v6  ;;  %v5774_v58 = vadd.f32 %v6688_v48, %v5677_v61  ;;  %v5961_v27 = vadd.f32 %v5960_v29, %v5898_v30  ;;  %v9563_v60 = vshrl.u32 %v5904_v37, 7 }
 0x37b   :  { %v5838_v43 = vadd.f32 %v5837_v38, %v9532_v21  ;;  %v5860_v14 = vmul.f32 %v9532_v21, %v9532_v21  ;;  %v5902_v38 = vld [vmem:[%s9604_s7 + $0x38] sm:$0xff] }
 0x37c   :  { %vm5792_vm4 = vcmp.ge.f32.partialorder %v5774_v58, 0.0  ;;  %v5808_v40 = vmul.f32 0.2, %v5774_v58  ;;  %v5962_v34 = vadd.f32 %v5961_v27, %v5899_v5  ;;  %v5906_v32 = vsub.s32 0, %v9563_v60 }
 0x37d   :  { %v5875_v62 = vadd.f32 %v5874_v54, %v5860_v14 }
 0x37e   :  { %v9537_v11 = vsel %vm5792_vm4, %v5774_v58, %v5808_v40  ;;  %v5963_v26 = vadd.f32 %v5962_v34, %v5900_v0 }
 0x37f   :  { %v5839_v19 = vadd.f32 %v5838_v43, %v9537_v11  ;;  %v5861_v44 = vmul.f32 %v9537_v11, %v9537_v11 }
 0x380   :  { %v5964_v51 = vadd.f32 %v5963_v26, %v5901_v39 }
 0x381   :  { %v5840_v56 = vrot.slane %v5839_v19, 4  ;;  %v5876_v36 = vadd.f32 %v5875_v62, %v5861_v44 }
 0x382   :  { %v5965_v6 = vadd.f32 %v5964_v51, %v5902_v38 }
 0x383   :  { %v5841_v35 = vadd.f32 %v5840_v56, %v5839_v19  ;;  %v5877_v7 = vrot.slane %v5876_v36, 4 }
 0x384   :  { %v5966_v43 = vrot.slane %v5965_v6, 4 }
 0x385   :  { %v5842_v59 = vrot.slane %v5841_v35, 2  ;;  %v5878_v52 = vadd.f32 %v5877_v7, %v5876_v36 }
 0x387   :  { %v5843_v4 = vadd.f32 %v5842_v59, %v5841_v35  ;;  %v5879_v45 = vrot.slane %v5878_v52, 2 }
 0x389   :  { %v5844_v17 = vrot.slane %v5843_v4, 1  ;;  %v5880_v8 = vadd.f32 %v5879_v45, %v5878_v52 }
 0x38b   :  { %v5845_v23 = vadd.f32 %v5844_v17, %v5843_v4  ;;  %v5881_v55 = vrot.slane %v5880_v8, 1 }
 0x38d   :  { %v5882_v22 = vadd.f32 %v5881_v55, %v5880_v8  ;;  %v5883_v10 = vmul.f32 0.0078125, %v5845_v23  ;;  %v5967_v23 = vadd.f32 %v5966_v43, %v5965_v6 }
 0x38f   :  { %v5884_v53 = vmul.f32 0.0078125, %v5882_v22  ;;  %v5885_v12 = vmul.f32 %v5883_v10, %v5883_v10 }
 0x391   :  { %v5886_v41 = vsub.f32 %v5884_v53, %v5885_v12 }
 0x393   :  { %v5887_v20 = vmax.f32 %v5886_v41, 0.0 }
 0x395   :  { %v5889_v16 = vadd.f32 1e-05, %v5887_v20 }
 0x397   :  { %6933 = vrsqrt.f32 %v5889_v16 }
 0x3a4   :  { %v6934_v61 = vpop.eup %6933 }
 0x3a5   :  { %v5891_v48 = vmul.f32 %v6934_v61, %v5888_v31 }
 0x3a7   :  { %v5907_v54 = vrot.slane %v5891_v48, %v5906_v32  ;;  %v5893_v58 = vmul.f32 %v5891_v48, %v5883_v10 }
 0x3a9   :  { %v5909_v14 = vmul.f32 %v5907_v54, %v5895_v28  ;;  %v5910_v40 = vmul.f32 %v5907_v54, %v5896_v50  ;;  %v5911_v62 = vmul.f32 %v5907_v54, %v5897_v3  ;;  %v5912_v19 = vmul.f32 %v5907_v54, %v5898_v30 }
 0x3aa   :  { %v5913_v44 = vmul.f32 %v5907_v54, %v5899_v5  ;;  %v5914_v56 = vmul.f32 %v5907_v54, %v5900_v0  ;;  %v5915_v36 = vmul.f32 %v5907_v54, %v5901_v39  ;;  %v5916_v35 = vmul.f32 %v5907_v54, %v5902_v38 }
 0x3ab   :  { %v5925_v7 = vmul.f32 %v5909_v14, %v9487_v33  ;;  %v5926_v59 = vmul.f32 %v5910_v40, %v9492_v2  ;;  %v5927_v52 = vmul.f32 %v5911_v62, %v9501_v63  ;;  %v5928_v4 = vmul.f32 %v5912_v19, %v9503_v15 }
 0x3ac   :  { %v5929_v45 = vmul.f32 %v5913_v44, %v9519_v13  ;;  %v5930_v17 = vmul.f32 %v5914_v56, %v9527_v25  ;;  %v5931_v8 = vmul.f32 %v5915_v36, %v9532_v21  ;;  %v5932_v28 = vmul.f32 %v5916_v35, %v9537_v11 }
 0x3ad   :  { %v5946_v50 = vadd.f32 %v5926_v59, %v5925_v7  ;;  %v5917_v55 = vmul.f32 %v5909_v14, %v9441_v57  ;;  %v5918_v33 = vmul.f32 %v5910_v40, %v9448_v18  ;;  %v5919_v2 = vmul.f32 %v5911_v62, %v9446_v9  ;;  %v6334_v62 = vld [vmem:[#allocation3] ss:$0 sm:$0xff] }
 0x3ae   :  { %v5968_v15 = vrot.slane %v5967_v23, 2  ;;  %v5920_v13 = vmul.f32 %v5912_v19, %v9456_v49  ;;  %v5921_v21 = vmul.f32 %v5913_v44, %v9463_v42  ;;  %v5922_v12 = vmul.f32 %v5914_v56, %v9468_v24  ;;  %v5892_v49 = vld [vmem:[%s9606_s6] sm:$0x1] }
 0x3af   :  { %v5947_v1 = vadd.f32 %v5946_v50, %v5927_v52  ;;  %v5933_v63 = vadd.f32 %v5918_v33, %v5917_v55  ;;  %v5923_v18 = vmul.f32 %v5915_v36, %v9474_v47  ;;  %v5924_v20 = vmul.f32 %v5916_v35, %v9480_v46 }
 0x3b0   :  { %v5969_v53 = vadd.f32 %v5968_v15, %v5967_v23  ;;  %v5894_v5 = vsub.f32 %v5892_v49, %v5893_v58 }
 0x3b1   :  { %v5948_v22 = vadd.f32 %v5947_v1, %v5928_v4  ;;  %v5934_v10 = vadd.f32 %v5933_v63, %v5919_v2 }
 0x3b2   :  { %v5970_v30 = vrot.slane %v5969_v53, 1 }
 0x3b3   :  { %v5949_v25 = vadd.f32 %v5948_v22, %v5929_v45  ;;  %v5935_v3 = vadd.f32 %v5934_v10, %v5920_v13 }
 0x3b4   :  { %v5971_v0 = vadd.f32 %v5970_v30, %v5969_v53 }
 0x3b5   :  { %v5950_v11 = vadd.f32 %v5949_v25, %v5930_v17  ;;  %v5936_v57 = vadd.f32 %v5935_v3, %v5921_v21 }
 0x3b6   :  { %v5972_v47 = vmul.f32 %v5971_v0, %v5894_v5 }
 0x3b7   :  { %v5951_v29 = vadd.f32 %v5950_v11, %v5931_v8  ;;  %v5937_v41 = vadd.f32 %v5936_v57, %v5922_v12 }
 0x3b8   :  { %v5977_v46 = vrot.slane %v5972_v47, %v5906_v32 }
 0x3b9   :  { %v5952_v9 = vadd.f32 %v5951_v29, %v5932_v28  ;;  %v5938_v27 = vadd.f32 %v5937_v41, %v5923_v18 }
 0x3bb   :  { %v5953_v42 = vrot.slane %v5952_v9, 4  ;;  %v5939_v16 = vadd.f32 %v5938_v27, %v5924_v20 }
 0x3bd   :  { %v5954_v34 = vadd.f32 %v5953_v42, %v5952_v9  ;;  %v5940_v24 = vrot.slane %v5939_v16, 4 }
 0x3bf   :  { %v5955_v37 = vrot.slane %v5954_v34, 2  ;;  %v5941_v26 = vadd.f32 %v5940_v24, %v5939_v16 }
 0x3c1   :  { %v5956_v39 = vadd.f32 %v5955_v37, %v5954_v34  ;;  %v5942_v51 = vrot.slane %v5941_v26, 2 }
 0x3c3   :  { %v5957_v38 = vrot.slane %v5956_v39, 1  ;;  %v5943_v31 = vadd.f32 %v5942_v51, %v5941_v26 }
 0x3c5   :  { %v5958_v61 = vadd.f32 %v5957_v38, %v5956_v39  ;;  %v5944_v6 = vrot.slane %v5943_v31, 1 }
 0x3c7   :  { %v5980_v48 = vadd.f32 %v5977_v46, %v5958_v61  ;;  %v5945_v54 = vadd.f32 %v5944_v6, %v5943_v31 }
 0x3c9   :  { %v5983_v43 = vrot.slane %v5980_v48, 7  ;;  %v5979_v58 = vadd.f32 %v5977_v46, %v5945_v54 }
 0x3cb   :  { %v5985_v14 = vsel %vm5984_vm3, %v5983_v43, %v5979_v58 }
 0x3cc   :  { %v5988_v40 = vsel %vm5987_vm7, %v5985_v14, 0.0 }
 0x3cd   :  { %5989 = vadd.xlane.f32.xlu0 %v5988_v40 }
 0x456   :  { %v5990_v19 = vpop.xlane.xlu0 %5989 }
 0x457   :  { %v5998_v44 = vadd.f32 %v6334_v62, %v5990_v19 }
 0x459   :  { %v6335_v56 = vmul.f32 -1.442695, %v5998_v44 }
 0x45b   :  { %6935 = vpow2.f32 %v6335_v56 }
 0x468   :  { %v6936_v36 = vpop.eup %6935 }
 0x469   :  { %v6002_v35 = vadd.f32 1.0, %v6936_v36 }
 0x46b   :  { %6937 = vrcp.f32 %v6002_v35 }
 0x478   :  { %v6938_v60 = vpop.eup %6937 }
 0x479   :  { %6006 = vst.msk [vmem:[%s9607_s9] sm:$0x3] %vm6005_vm12, %v6938_v60 }

</bundles_post_ra>
